<compile_context>
chip_gen: v6e
topology: v6e:2x2x1
jax: 0.10.0
libtpu: 0.0.40
codegen_flags: <defaults>
</compile_context>

<pallas_src>
import functools

import numpy as np
import jax
import jax.numpy as jnp
from jax.experimental import pallas as pl
from jax.experimental.pallas import tpu as pltpu


def _full_spec(shape):
    # Whole array in VMEM as a single block (empty grid).
    return pl.BlockSpec(shape, lambda: (0,) * len(shape))


# --------------------------------------------------------------------------- kernel
def _lenet_kernel(x_ref, b1_ref, bz1_ref, b2_hbm, bz2_ref,
                  f1_hbm, fz1_ref, f2_hbm, fz2_ref, f3_hbm, fz3_ref,
                  out_ref,
                  buf1, buf2, fcbuf, b2_vmem, f1_vmem, f2_vmem, f3_vmem, sem,
                  *, n_img, rows_in):
    f32 = jnp.float32
    R = n_img * 32            # valid rows, row r = n*32 + h
    RC = R + 8                # rows computed per conv stage (covers pool shifts)

    # Prefetch stage-2 / FC weights: overlap their HBM->VMEM DMA with conv1.
    cp_b2 = pltpu.make_async_copy(b2_hbm, b2_vmem, sem.at[0]); cp_b2.start()
    cp_f1 = pltpu.make_async_copy(f1_hbm, f1_vmem, sem.at[1]); cp_f1.start()
    cp_f2 = pltpu.make_async_copy(f2_hbm, f2_vmem, sem.at[2]); cp_f2.start()
    cp_f3 = pltpu.make_async_copy(f3_hbm, f3_vmem, sem.at[3]); cp_f3.start()

    # Only buf1's tail rows (>= R) are read by the row-shifted stage-2 loads;
    # rows 0..R-1 are fully overwritten below.  buf2 needs no zeroing (the FC
    # gather only reads rows n*32 + 4h <= 48 < R, all written).
    buf1[R:rows_in, :] = jnp.zeros((rows_in - R, 128), f32)
    fcbuf[...] = jnp.zeros(fcbuf.shape, f32)

    # ---- stage 1: conv1 (3->6, 5x5) + ReLU + 2x2 max-pool --------------------
    # Output lanes: even wo -> 6*(wo//2)+co in [0,128), odd wo -> same + 128.
    acc = jnp.zeros((RC, 256), f32)
    for di in range(5):                              # 5 row-shifted banded matmuls
        acc = acc + jnp.dot(x_ref[di:di + RC, :], b1_ref[di],
                            preferred_element_type=f32)
    r1 = jnp.maximum(acc + bz1_ref[...], 0.0)                      # ReLU
    wmax = jnp.maximum(r1[:, 0:128], r1[:, 128:256])               # pool over W
    buf1[0:R, :] = jnp.maximum(wmax[0:R, :], wmax[1:R + 1, :])     # pool over H
    # pooled-1 now compact: row n*32 + 2*hp, lane 6*wp + ci  (84/128 lanes used)

    # ---- stage 2: conv2 (6->16, 5x5) + ReLU + 2x2 max-pool -------------------
    cp_b2.wait()
    acc = jnp.zeros((RC, 256), f32)
    for di in range(5):
        acc = acc + jnp.dot(buf1[2 * di: 2 * di + RC, :], b2_vmem[di],
                            preferred_element_type=f32)
    r2 = jnp.maximum(acc + bz2_ref[...], 0.0)
    wmax = jnp.maximum(r2[:, 0:128], r2[:, 128:256])
    buf2[0:R, :] = jnp.maximum(wmax[0:R, :], wmax[2:R + 2, :])
    # pooled-2: row n*32 + 4*hp, lane 16*wp + co  (80/128 lanes used)

    # ---- FC head on a compact (FCM, 640) slab --------------------------------
    # Gather the 5 pooled rows per image that feed the flatten; rows >= n_img
    # stay zero (their outputs are never read host-side).
    for n in range(n_img):
        for h in range(5):
            fcbuf[n:n + 1, 128 * h:128 * (h + 1)] = \
                buf2[32 * n + 4 * h: 32 * n + 4 * h + 1, :]
    cp_f1.wait(); cp_f2.wait(); cp_f3.wait()
    a = jnp.maximum(jnp.dot(fcbuf[...], f1_vmem[...],
                            preferred_element_type=f32) + fz1_ref[...], 0.0)
    a = jnp.maximum(jnp.dot(a, f2_vmem[...],
                            preferred_element_type=f32) + fz2_ref[...], 0.0)
    out_ref[...] = jnp.dot(a, f3_vmem[...],
                           preferred_element_type=f32) + fz3_ref[...]


# --------------------------------------------------------------------------- host-side weight prep (one-time)
def _prepare_weights(p):
    w1 = np.asarray(p["w1"], np.float32); b1 = np.asarray(p["b1"], np.float32)
    w2 = np.asarray(p["w2"], np.float32); b2 = np.asarray(p["b2"], np.float32)
    f1w = np.asarray(p["fc1_w"], np.float32); f1b = np.asarray(p["fc1_b"], np.float32)
    f2w = np.asarray(p["fc2_w"], np.float32); f2b = np.asarray(p["fc2_b"], np.float32)
    f3w = np.asarray(p["fc3_w"], np.float32); f3b = np.asarray(p["fc3_b"], np.float32)

    # conv1 band matrices.  Input lanes l = ci*32 + w (96 used / 128).
    # Output column for (wo, co): even wo -> 6*(wo//2)+co, odd wo -> +128, so
    # the two 2x2-pool partners sit exactly 128 lanes apart.
    B1 = np.zeros((5, 128, 256), np.float32)
    bz1 = np.zeros((1, 256), np.float32)
    for wo in range(28):
        base = 6 * (wo // 2) + 128 * (wo % 2)
        for co in range(6):
            col = base + co
            bz1[0, col] = b1[co]
            for ci in range(3):
                for di in range(5):
                    B1[di, ci * 32 + wo: ci * 32 + wo + 5, col] = w1[co, ci, di, :]

    # conv2 band matrices.  Input lanes = compact pooled-1 lanes 6*wp + ci;
    # output columns: even wo -> 16*(wo//2)+co, odd wo -> +128.
    B2 = np.zeros((5, 128, 256), np.float32)
    bz2 = np.zeros((1, 256), np.float32)
    for wo in range(10):
        base = 16 * (wo // 2) + 128 * (wo % 2)
        for co in range(16):
            col = base + co
            bz2[0, col] = b2[co]
            for ci in range(6):
                lanes = 6 * np.arange(wo, wo + 5) + ci
                for di in range(5):
                    B2[di, lanes, col] = w2[co, ci, di, :]

    # fc1 as a single (640,128) matrix acting on the gathered slab whose lanes
    # are 128*h + 16*wp + c.  Torch fc1 column index = c*25 + h*5 + wp
    # (NCHW .view flatten).
    F1 = np.zeros((640, 128), np.float32)
    for h in range(5):
        for wp in range(5):
            for c in range(16):
                F1[128 * h + 16 * wp + c, :120] = f1w[:, c * 25 + h * 5 + wp]
    fz1 = np.zeros((1, 128), np.float32); fz1[0, :120] = f1b

    F2 = np.zeros((128, 128), np.float32); F2[:120, :84] = f2w.T
    fz2 = np.zeros((1, 128), np.float32); fz2[0, :84] = f2b
    F3 = np.zeros((128, 128), np.float32); F3[:84, :10] = f3w.T
    fz3 = np.zeros((1, 128), np.float32); fz3[0, :10] = f3b

    arrs = (B1, bz1, B2, bz2, F1, fz1, F2, fz2, F3, fz3)
    return tuple(jnp.asarray(a) for a in arrs)


# --------------------------------------------------------------------------- forward builder
def make_forward(params, n_img):
    B1, bz1, B2, bz2, F1, fz1, F2, fz2, F3, fz3 = _prepare_weights(params)
    R = n_img * 32
    rows_in = R + 16                      # valid rows + headroom for row shifts
    FCM = 8 * pl.cdiv(n_img, 8)           # logits rows, padded to 8 sublanes

    in_specs = [
        _full_spec((rows_in, 128)),           # x slab (needed immediately)
        _full_spec(tuple(B1.shape)),          # conv1 banded weights (needed first)
        _full_spec(tuple(bz1.shape)),
        pl.BlockSpec(memory_space=pl.ANY),    # conv2 banded weights (prefetched)
        _full_spec(tuple(bz2.shape)),
        pl.BlockSpec(memory_space=pl.ANY),    # fc1 weights (prefetched)
        _full_spec(tuple(fz1.shape)),
        pl.BlockSpec(memory_space=pl.ANY),    # fc2 weights (prefetched)
        _full_spec(tuple(fz2.shape)),
        pl.BlockSpec(memory_space=pl.ANY),    # fc3 weights (prefetched)
        _full_spec(tuple(fz3.shape)),
    ]

    call = pl.pallas_call(
        functools.partial(_lenet_kernel, n_img=n_img, rows_in=rows_in),
        out_shape=jax.ShapeDtypeStruct((FCM, 128), jnp.float32),
        in_specs=in_specs,
        out_specs=_full_spec((FCM, 128)),
        scratch_shapes=[
            pltpu.VMEM((rows_in, 128), jnp.float32),   # pooled-1 (buf1)
            pltpu.VMEM((R, 128), jnp.float32),         # pooled-2 (buf2)
            pltpu.VMEM((FCM, 640), jnp.float32),       # gathered FC input
            pltpu.VMEM((5, 128, 256), jnp.float32),    # conv2 weights landing buf
            pltpu.VMEM((640, 128), jnp.float32),       # fc1 weights landing buf
            pltpu.VMEM((128, 128), jnp.float32),       # fc2 weights landing buf
            pltpu.VMEM((128, 128), jnp.float32),       # fc3 weights landing buf
            pltpu.SemaphoreType.DMA((4,)),             # one sem per prefetch DMA
        ],
    )
    # Total VMEM footprint ~2.9 MB (weights + scratch) -> fits the scoped
    # default on v5e/v6e/v7x; no vmem_limit override needed.

    def forward(x):
        # (N, 3, 32, 32) -> rows (n, h), lanes (ci*32 + w), zero-padded slab.
        xr = jnp.transpose(x, (0, 2, 1, 3)).reshape(n_img * 32, 96)
        xr = jnp.pad(xr, ((0, 16), (0, 32)))
        out = call(xr, B1, bz1, B2, bz2, F1, fz1, F2, fz2, F3, fz3)
        return out[:n_img, :10]

    # TODO(synk): for large batches, add a leading "parallel" grid axis over
    # 32-row image blocks (shards across v7x's two TensorCores) instead of the
    # single grid-less step used here for batch 2.
    return jax.jit(forward)


# --------------------------------------------------------------------------- pure-JAX reference
def reference_forward(x, p):
    def conv(x, w, b):
        y = jax.lax.conv_general_dilated(
            x, w, (1, 1), "VALID", dimension_numbers=("NCHW", "OIHW", "NCHW"))
        return jax.nn.relu(y + b.reshape(1, -1, 1, 1))

    def pool(x):
        return jax.lax.reduce_window(x, -jnp.inf, jax.lax.max,
                                     (1, 1, 2, 2), (1, 1, 2, 2), "VALID")

    x = pool(conv(x, p["w1"], p["b1"]))
    x = pool(conv(x, p["w2"], p["b2"]))
    x = x.reshape(x.shape[0], -1)
    x = jax.nn.relu(x @ p["fc1_w"].T + p["fc1_b"])
    x = jax.nn.relu(x @ p["fc2_w"].T + p["fc2_b"])
    x = x @ p["fc3_w"].T + p["fc3_b"]
    return x


if __name__ == "__main__":
    key = jax.random.PRNGKey(0)
    ks = jax.random.split(key, 12)

    def init(k, shape, scale=0.1):
        return jax.random.normal(k, shape, jnp.float32) * scale

    # Parameter shapes exactly as in the PyTorch module's __init__.
    params = {
        "w1": init(ks[0], (6, 3, 5, 5)),    "b1": init(ks[1], (6,)),
        "w2": init(ks[2], (16, 6, 5, 5)),   "b2": init(ks[3], (16,)),
        "fc1_w": init(ks[4], (120, 400)),   "fc1_b": init(ks[5], (120,)),
        "fc2_w": init(ks[6], (84, 120)),    "fc2_b": init(ks[7], (84,)),
        "fc3_w": init(ks[8], (10, 84)),     "fc3_b": init(ks[9], (10,)),
    }

    # The architecture requires 32x32 spatial input (-> 16*5*5 flatten).
    x = jax.random.normal(ks[10], (2, 3, 32, 32), jnp.float32)

    fwd = make_forward(params, n_img=2)
    out = jax.block_until_ready(fwd(x))
    ref = jax.block_until_ready(reference_forward(x, params))

    assert out.shape == (2, 10), out.shape
    assert jnp.allclose(out, ref, rtol=1e-4, atol=1e-4), \
        f"max abs err = {jnp.max(jnp.abs(out - ref))}"
    print("KERNEL_OK")
</pallas_src>

<mosaic_0001>
module attributes {stable_mosaic.version = 11 : i64} {
  func.func @_lenet_kernel(%arg0: memref<80x128xf32, #tpu.memory_space<vmem>>, %arg1: memref<5x128x256xf32, #tpu.memory_space<vmem>>, %arg2: memref<1x256xf32, #tpu.memory_space<vmem>>, %arg3: memref<5x128x256xf32, #tpu.memory_space<any>>, %arg4: memref<1x256xf32, #tpu.memory_space<vmem>>, %arg5: memref<640x128xf32, #tpu.memory_space<any>>, %arg6: memref<1x128xf32, #tpu.memory_space<vmem>>, %arg7: memref<128x128xf32, #tpu.memory_space<any>>, %arg8: memref<1x128xf32, #tpu.memory_space<vmem>>, %arg9: memref<128x128xf32, #tpu.memory_space<any>>, %arg10: memref<1x128xf32, #tpu.memory_space<vmem>>, %arg11: memref<8x128xf32, #tpu.memory_space<vmem>>, %arg12: memref<80x128xf32, #tpu.memory_space<vmem>>, %arg13: memref<64x128xf32, #tpu.memory_space<vmem>>, %arg14: memref<8x640xf32, #tpu.memory_space<vmem>>, %arg15: memref<5x128x256xf32, #tpu.memory_space<vmem>>, %arg16: memref<640x128xf32, #tpu.memory_space<vmem>>, %arg17: memref<128x128xf32, #tpu.memory_space<vmem>>, %arg18: memref<128x128xf32, #tpu.memory_space<vmem>>, %arg19: memref<4x!tpu.dma_semaphore, #tpu.memory_space<semaphore_mem>>) attributes {dimension_semantics = [], scalar_prefetch = 0 : i64, scratch_operands = 8 : i64, tpu.core_type = #tpu.core_type<tc>} {
    %c0_i32 = arith.constant 0 : i32
    %0 = tpu.memref_slice %arg19[%c0_i32] : memref<4x!tpu.dma_semaphore, #tpu.memory_space<semaphore_mem>> -> memref<1x!tpu.dma_semaphore, #tpu.memory_space<semaphore_mem>>
    %1 = tpu.memref_squeeze %0 : memref<1x!tpu.dma_semaphore, #tpu.memory_space<semaphore_mem>> -> memref<!tpu.dma_semaphore, #tpu.memory_space<semaphore_mem>>
    tpu.enqueue_dma source(%arg3 : memref<5x128x256xf32, #tpu.memory_space<any>>) target(%arg15 : memref<5x128x256xf32, #tpu.memory_space<vmem>>) target_semaphore(%1 : memref<!tpu.dma_semaphore, #tpu.memory_space<semaphore_mem>>)
    %c1_i32 = arith.constant 1 : i32
    %2 = tpu.memref_slice %arg19[%c1_i32] : memref<4x!tpu.dma_semaphore, #tpu.memory_space<semaphore_mem>> -> memref<1x!tpu.dma_semaphore, #tpu.memory_space<semaphore_mem>>
    %3 = tpu.memref_squeeze %2 : memref<1x!tpu.dma_semaphore, #tpu.memory_space<semaphore_mem>> -> memref<!tpu.dma_semaphore, #tpu.memory_space<semaphore_mem>>
    tpu.enqueue_dma source(%arg5 : memref<640x128xf32, #tpu.memory_space<any>>) target(%arg16 : memref<640x128xf32, #tpu.memory_space<vmem>>) target_semaphore(%3 : memref<!tpu.dma_semaphore, #tpu.memory_space<semaphore_mem>>)
    %c2_i32 = arith.constant 2 : i32
    %4 = tpu.memref_slice %arg19[%c2_i32] : memref<4x!tpu.dma_semaphore, #tpu.memory_space<semaphore_mem>> -> memref<1x!tpu.dma_semaphore, #tpu.memory_space<semaphore_mem>>
    %5 = tpu.memref_squeeze %4 : memref<1x!tpu.dma_semaphore, #tpu.memory_space<semaphore_mem>> -> memref<!tpu.dma_semaphore, #tpu.memory_space<semaphore_mem>>
    tpu.enqueue_dma source(%arg7 : memref<128x128xf32, #tpu.memory_space<any>>) target(%arg17 : memref<128x128xf32, #tpu.memory_space<vmem>>) target_semaphore(%5 : memref<!tpu.dma_semaphore, #tpu.memory_space<semaphore_mem>>)
    %c3_i32 = arith.constant 3 : i32
    %6 = tpu.memref_slice %arg19[%c3_i32] : memref<4x!tpu.dma_semaphore, #tpu.memory_space<semaphore_mem>> -> memref<1x!tpu.dma_semaphore, #tpu.memory_space<semaphore_mem>>
    %7 = tpu.memref_squeeze %6 : memref<1x!tpu.dma_semaphore, #tpu.memory_space<semaphore_mem>> -> memref<!tpu.dma_semaphore, #tpu.memory_space<semaphore_mem>>
    tpu.enqueue_dma source(%arg9 : memref<128x128xf32, #tpu.memory_space<any>>) target(%arg18 : memref<128x128xf32, #tpu.memory_space<vmem>>) target_semaphore(%7 : memref<!tpu.dma_semaphore, #tpu.memory_space<semaphore_mem>>)
    %cst = arith.constant 0.000000e+00 : f32
    %8 = vector.broadcast %cst : f32 to vector<16x128xf32>
    %c64 = arith.constant 64 : index
    %c0 = arith.constant 0 : index
    %9 = vector.load %arg12[%c64, %c0] : memref<80x128xf32, #tpu.memory_space<vmem>>, vector<16x128xf32>
    tpu.vector_store %arg12[%c64, %c0], %8 {strides = array<i32>} : memref<80x128xf32, #tpu.memory_space<vmem>>, vector<16x128xf32>,
    %cst_0 = arith.constant 0.000000e+00 : f32
    %10 = vector.broadcast %cst_0 : f32 to vector<8x640xf32>
    %c0_1 = arith.constant 0 : index
    %c0_2 = arith.constant 0 : index
    %11 = vector.load %arg14[%c0_1, %c0_2] : memref<8x640xf32, #tpu.memory_space<vmem>>, vector<8x640xf32>
    tpu.vector_store %arg14[%c0_1, %c0_2], %10 {strides = array<i32>} : memref<8x640xf32, #tpu.memory_space<vmem>>, vector<8x640xf32>,
    %cst_3 = arith.constant 0.000000e+00 : f32
    %12 = vector.broadcast %cst_3 : f32 to vector<72x256xf32>
    %c0_4 = arith.constant 0 : index
    %c0_5 = arith.constant 0 : index
    %13 = vector.load %arg0[%c0_4, %c0_5] : memref<80x128xf32, #tpu.memory_space<vmem>>, vector<72x128xf32>
    %c0_6 = arith.constant 0 : index
    %c0_7 = arith.constant 0 : index
    %c0_8 = arith.constant 0 : index
    %14 = vector.load %arg1[%c0_6, %c0_7, %c0_8] : memref<5x128x256xf32, #tpu.memory_space<vmem>>, vector<1x128x256xf32>
    %15 = vector.shape_cast %14 : vector<1x128x256xf32> to vector<128x256xf32>
    %cst_9 = arith.constant dense<0.000000e+00> : vector<72x256xf32>
    %16 = tpu.matmul %13, %15, %cst_9 {dimension_numbers = #tpu.dot_dimension_numbers<[1], [0], [0], [1], [0, 0, 1, 1], [], []>} : vector<72x128xf32>, vector<128x256xf32>, vector<72x256xf32> -> vector<72x256xf32>
    %17 = arith.addf %12, %16 : vector<72x256xf32>
    %c1 = arith.constant 1 : index
    %c0_10 = arith.constant 0 : index
    %18 = vector.load %arg0[%c1, %c0_10] : memref<80x128xf32, #tpu.memory_space<vmem>>, vector<72x128xf32>
    %c1_11 = arith.constant 1 : index
    %c0_12 = arith.constant 0 : index
    %c0_13 = arith.constant 0 : index
    %19 = vector.load %arg1[%c1_11, %c0_12, %c0_13] : memref<5x128x256xf32, #tpu.memory_space<vmem>>, vector<1x128x256xf32>
    %20 = vector.shape_cast %19 : vector<1x128x256xf32> to vector<128x256xf32>
    %cst_14 = arith.constant dense<0.000000e+00> : vector<72x256xf32>
    %21 = tpu.matmul %18, %20, %cst_14 {dimension_numbers = #tpu.dot_dimension_numbers<[1], [0], [0], [1], [0, 0, 1, 1], [], []>} : vector<72x128xf32>, vector<128x256xf32>, vector<72x256xf32> -> vector<72x256xf32>
    %22 = arith.addf %17, %21 : vector<72x256xf32>
    %c2 = arith.constant 2 : index
    %c0_15 = arith.constant 0 : index
    %23 = vector.load %arg0[%c2, %c0_15] : memref<80x128xf32, #tpu.memory_space<vmem>>, vector<72x128xf32>
    %c2_16 = arith.constant 2 : index
    %c0_17 = arith.constant 0 : index
    %c0_18 = arith.constant 0 : index
    %24 = vector.load %arg1[%c2_16, %c0_17, %c0_18] : memref<5x128x256xf32, #tpu.memory_space<vmem>>, vector<1x128x256xf32>
    %25 = vector.shape_cast %24 : vector<1x128x256xf32> to vector<128x256xf32>
    %cst_19 = arith.constant dense<0.000000e+00> : vector<72x256xf32>
    %26 = tpu.matmul %23, %25, %cst_19 {dimension_numbers = #tpu.dot_dimension_numbers<[1], [0], [0], [1], [0, 0, 1, 1], [], []>} : vector<72x128xf32>, vector<128x256xf32>, vector<72x256xf32> -> vector<72x256xf32>
    %27 = arith.addf %22, %26 : vector<72x256xf32>
    %c3 = arith.constant 3 : index
    %c0_20 = arith.constant 0 : index
    %28 = vector.load %arg0[%c3, %c0_20] : memref<80x128xf32, #tpu.memory_space<vmem>>, vector<72x128xf32>
    %c3_21 = arith.constant 3 : index
    %c0_22 = arith.constant 0 : index
    %c0_23 = arith.constant 0 : index
    %29 = vector.load %arg1[%c3_21, %c0_22, %c0_23] : memref<5x128x256xf32, #tpu.memory_space<vmem>>, vector<1x128x256xf32>
    %30 = vector.shape_cast %29 : vector<1x128x256xf32> to vector<128x256xf32>
    %cst_24 = arith.constant dense<0.000000e+00> : vector<72x256xf32>
    %31 = tpu.matmul %28, %30, %cst_24 {dimension_numbers = #tpu.dot_dimension_numbers<[1], [0], [0], [1], [0, 0, 1, 1], [], []>} : vector<72x128xf32>, vector<128x256xf32>, vector<72x256xf32> -> vector<72x256xf32>
    %32 = arith.addf %27, %31 : vector<72x256xf32>
    %c4 = arith.constant 4 : index
    %c0_25 = arith.constant 0 : index
    %33 = vector.load %arg0[%c4, %c0_25] : memref<80x128xf32, #tpu.memory_space<vmem>>, vector<72x128xf32>
    %c4_26 = arith.constant 4 : index
    %c0_27 = arith.constant 0 : index
    %c0_28 = arith.constant 0 : index
    %34 = vector.load %arg1[%c4_26, %c0_27, %c0_28] : memref<5x128x256xf32, #tpu.memory_space<vmem>>, vector<1x128x256xf32>
    %35 = vector.shape_cast %34 : vector<1x128x256xf32> to vector<128x256xf32>
    %cst_29 = arith.constant dense<0.000000e+00> : vector<72x256xf32>
    %36 = tpu.matmul %33, %35, %cst_29 {dimension_numbers = #tpu.dot_dimension_numbers<[1], [0], [0], [1], [0, 0, 1, 1], [], []>} : vector<72x128xf32>, vector<128x256xf32>, vector<72x256xf32> -> vector<72x256xf32>
    %37 = arith.addf %32, %36 : vector<72x256xf32>
    %c0_30 = arith.constant 0 : index
    %c0_31 = arith.constant 0 : index
    %38 = vector.load %arg2[%c0_30, %c0_31] : memref<1x256xf32, #tpu.memory_space<vmem>>, vector<1x256xf32>
    %39 = vector.broadcast %38 : vector<1x256xf32> to vector<72x256xf32>
    %40 = arith.addf %37, %39 : vector<72x256xf32>
    %cst_32 = arith.constant 0.000000e+00 : f32
    %41 = vector.broadcast %cst_32 : f32 to vector<72x256xf32>
    %42 = arith.maximumf %40, %41 : vector<72x256xf32>
    %43 = vector.extract_strided_slice %42 {offsets = [0, 0], sizes = [72, 128], strides = [1, 1]} : vector<72x256xf32> to vector<72x128xf32>
    %44 = vector.extract_strided_slice %42 {offsets = [0, 128], sizes = [72, 128], strides = [1, 1]} : vector<72x256xf32> to vector<72x128xf32>
    %45 = arith.maximumf %43, %44 : vector<72x128xf32>
    %46 = vector.extract_strided_slice %45 {offsets = [0, 0], sizes = [64, 128], strides = [1, 1]} : vector<72x128xf32> to vector<64x128xf32>
    %47 = vector.extract_strided_slice %45 {offsets = [1, 0], sizes = [64, 128], strides = [1, 1]} : vector<72x128xf32> to vector<64x128xf32>
    %48 = arith.maximumf %46, %47 : vector<64x128xf32>
    %c0_33 = arith.constant 0 : index
    %c0_34 = arith.constant 0 : index
    %49 = vector.load %arg12[%c0_33, %c0_34] : memref<80x128xf32, #tpu.memory_space<vmem>>, vector<64x128xf32>
    tpu.vector_store %arg12[%c0_33, %c0_34], %48 {strides = array<i32>} : memref<80x128xf32, #tpu.memory_space<vmem>>, vector<64x128xf32>,
    %c0_i32_35 = arith.constant 0 : i32
    %50 = tpu.memref_slice %arg19[%c0_i32_35] : memref<4x!tpu.dma_semaphore, #tpu.memory_space<semaphore_mem>> -> memref<1x!tpu.dma_semaphore, #tpu.memory_space<semaphore_mem>>
    %51 = tpu.memref_squeeze %50 : memref<1x!tpu.dma_semaphore, #tpu.memory_space<semaphore_mem>> -> memref<!tpu.dma_semaphore, #tpu.memory_space<semaphore_mem>>
    tpu.wait_dma2 semaphore(%51 : memref<!tpu.dma_semaphore, #tpu.memory_space<semaphore_mem>>) src(%arg3 : memref<5x128x256xf32, #tpu.memory_space<any>>) dst(%arg15 : memref<5x128x256xf32, #tpu.memory_space<vmem>>)
    %cst_36 = arith.constant 0.000000e+00 : f32
    %52 = vector.broadcast %cst_36 : f32 to vector<72x256xf32>
    %c0_37 = arith.constant 0 : index
    %c0_38 = arith.constant 0 : index
    %53 = vector.load %arg12[%c0_37, %c0_38] : memref<80x128xf32, #tpu.memory_space<vmem>>, vector<72x128xf32>
    %c0_39 = arith.constant 0 : index
    %c0_40 = arith.constant 0 : index
    %c0_41 = arith.constant 0 : index
    %54 = vector.load %arg15[%c0_39, %c0_40, %c0_41] : memref<5x128x256xf32, #tpu.memory_space<vmem>>, vector<1x128x256xf32>
    %55 = vector.shape_cast %54 : vector<1x128x256xf32> to vector<128x256xf32>
    %cst_42 = arith.constant dense<0.000000e+00> : vector<72x256xf32>
    %56 = tpu.matmul %53, %55, %cst_42 {dimension_numbers = #tpu.dot_dimension_numbers<[1], [0], [0], [1], [0, 0, 1, 1], [], []>} : vector<72x128xf32>, vector<128x256xf32>, vector<72x256xf32> -> vector<72x256xf32>
    %57 = arith.addf %52, %56 : vector<72x256xf32>
    %c2_43 = arith.constant 2 : index
    %c0_44 = arith.constant 0 : index
    %58 = vector.load %arg12[%c2_43, %c0_44] : memref<80x128xf32, #tpu.memory_space<vmem>>, vector<72x128xf32>
    %c1_45 = arith.constant 1 : index
    %c0_46 = arith.constant 0 : index
    %c0_47 = arith.constant 0 : index
    %59 = vector.load %arg15[%c1_45, %c0_46, %c0_47] : memref<5x128x256xf32, #tpu.memory_space<vmem>>, vector<1x128x256xf32>
    %60 = vector.shape_cast %59 : vector<1x128x256xf32> to vector<128x256xf32>
    %cst_48 = arith.constant dense<0.000000e+00> : vector<72x256xf32>
    %61 = tpu.matmul %58, %60, %cst_48 {dimension_numbers = #tpu.dot_dimension_numbers<[1], [0], [0], [1], [0, 0, 1, 1], [], []>} : vector<72x128xf32>, vector<128x256xf32>, vector<72x256xf32> -> vector<72x256xf32>
    %62 = arith.addf %57, %61 : vector<72x256xf32>
    %c4_49 = arith.constant 4 : index
    %c0_50 = arith.constant 0 : index
    %63 = vector.load %arg12[%c4_49, %c0_50] : memref<80x128xf32, #tpu.memory_space<vmem>>, vector<72x128xf32>
    %c2_51 = arith.constant 2 : index
    %c0_52 = arith.constant 0 : index
    %c0_53 = arith.constant 0 : index
    %64 = vector.load %arg15[%c2_51, %c0_52, %c0_53] : memref<5x128x256xf32, #tpu.memory_space<vmem>>, vector<1x128x256xf32>
    %65 = vector.shape_cast %64 : vector<1x128x256xf32> to vector<128x256xf32>
    %cst_54 = arith.constant dense<0.000000e+00> : vector<72x256xf32>
    %66 = tpu.matmul %63, %65, %cst_54 {dimension_numbers = #tpu.dot_dimension_numbers<[1], [0], [0], [1], [0, 0, 1, 1], [], []>} : vector<72x128xf32>, vector<128x256xf32>, vector<72x256xf32> -> vector<72x256xf32>
    %67 = arith.addf %62, %66 : vector<72x256xf32>
    %c6 = arith.constant 6 : index
    %c0_55 = arith.constant 0 : index
    %68 = vector.load %arg12[%c6, %c0_55] : memref<80x128xf32, #tpu.memory_space<vmem>>, vector<72x128xf32>
    %c3_56 = arith.constant 3 : index
    %c0_57 = arith.constant 0 : index
    %c0_58 = arith.constant 0 : index
    %69 = vector.load %arg15[%c3_56, %c0_57, %c0_58] : memref<5x128x256xf32, #tpu.memory_space<vmem>>, vector<1x128x256xf32>
    %70 = vector.shape_cast %69 : vector<1x128x256xf32> to vector<128x256xf32>
    %cst_59 = arith.constant dense<0.000000e+00> : vector<72x256xf32>
    %71 = tpu.matmul %68, %70, %cst_59 {dimension_numbers = #tpu.dot_dimension_numbers<[1], [0], [0], [1], [0, 0, 1, 1], [], []>} : vector<72x128xf32>, vector<128x256xf32>, vector<72x256xf32> -> vector<72x256xf32>
    %72 = arith.addf %67, %71 : vector<72x256xf32>
    %c8 = arith.constant 8 : index
    %c0_60 = arith.constant 0 : index
    %73 = vector.load %arg12[%c8, %c0_60] : memref<80x128xf32, #tpu.memory_space<vmem>>, vector<72x128xf32>
    %c4_61 = arith.constant 4 : index
    %c0_62 = arith.constant 0 : index
    %c0_63 = arith.constant 0 : index
    %74 = vector.load %arg15[%c4_61, %c0_62, %c0_63] : memref<5x128x256xf32, #tpu.memory_space<vmem>>, vector<1x128x256xf32>
    %75 = vector.shape_cast %74 : vector<1x128x256xf32> to vector<128x256xf32>
    %cst_64 = arith.constant dense<0.000000e+00> : vector<72x256xf32>
    %76 = tpu.matmul %73, %75, %cst_64 {dimension_numbers = #tpu.dot_dimension_numbers<[1], [0], [0], [1], [0, 0, 1, 1], [], []>} : vector<72x128xf32>, vector<128x256xf32>, vector<72x256xf32> -> vector<72x256xf32>
    %77 = arith.addf %72, %76 : vector<72x256xf32>
    %c0_65 = arith.constant 0 : index
    %c0_66 = arith.constant 0 : index
    %78 = vector.load %arg4[%c0_65, %c0_66] : memref<1x256xf32, #tpu.memory_space<vmem>>, vector<1x256xf32>
    %79 = vector.broadcast %78 : vector<1x256xf32> to vector<72x256xf32>
    %80 = arith.addf %77, %79 : vector<72x256xf32>
    %cst_67 = arith.constant 0.000000e+00 : f32
    %81 = vector.broadcast %cst_67 : f32 to vector<72x256xf32>
    %82 = arith.maximumf %80, %81 : vector<72x256xf32>
    %83 = vector.extract_strided_slice %82 {offsets = [0, 0], sizes = [72, 128], strides = [1, 1]} : vector<72x256xf32> to vector<72x128xf32>
    %84 = vector.extract_strided_slice %82 {offsets = [0, 128], sizes = [72, 128], strides = [1, 1]} : vector<72x256xf32> to vector<72x128xf32>
    %85 = arith.maximumf %83, %84 : vector<72x128xf32>
    %86 = vector.extract_strided_slice %85 {offsets = [0, 0], sizes = [64, 128], strides = [1, 1]} : vector<72x128xf32> to vector<64x128xf32>
    %87 = vector.extract_strided_slice %85 {offsets = [2, 0], sizes = [64, 128], strides = [1, 1]} : vector<72x128xf32> to vector<64x128xf32>
    %88 = arith.maximumf %86, %87 : vector<64x128xf32>
    %c0_68 = arith.constant 0 : index
    %c0_69 = arith.constant 0 : index
    %89 = vector.load %arg13[%c0_68, %c0_69] : memref<64x128xf32, #tpu.memory_space<vmem>>, vector<64x128xf32>
    tpu.vector_store %arg13[%c0_68, %c0_69], %88 {strides = array<i32>} : memref<64x128xf32, #tpu.memory_space<vmem>>, vector<64x128xf32>,
    %c0_70 = arith.constant 0 : index
    %c0_71 = arith.constant 0 : index
    %90 = vector.load %arg13[%c0_70, %c0_71] : memref<64x128xf32, #tpu.memory_space<vmem>>, vector<1x128xf32>
    %c0_72 = arith.constant 0 : index
    %c0_73 = arith.constant 0 : index
    %91 = vector.load %arg14[%c0_72, %c0_73] : memref<8x640xf32, #tpu.memory_space<vmem>>, vector<1x128xf32>
    tpu.vector_store %arg14[%c0_72, %c0_73], %90 {strides = array<i32>} : memref<8x640xf32, #tpu.memory_space<vmem>>, vector<1x128xf32>,
    %c4_74 = arith.constant 4 : index
    %c0_75 = arith.constant 0 : index
    %92 = vector.load %arg13[%c4_74, %c0_75] : memref<64x128xf32, #tpu.memory_space<vmem>>, vector<1x128xf32>
    %c0_76 = arith.constant 0 : index
    %c128 = arith.constant 128 : index
    %93 = vector.load %arg14[%c0_76, %c128] : memref<8x640xf32, #tpu.memory_space<vmem>>, vector<1x128xf32>
    tpu.vector_store %arg14[%c0_76, %c128], %92 {strides = array<i32>} : memref<8x640xf32, #tpu.memory_space<vmem>>, vector<1x128xf32>,
    %c8_77 = arith.constant 8 : index
    %c0_78 = arith.constant 0 : index
    %94 = vector.load %arg13[%c8_77, %c0_78] : memref<64x128xf32, #tpu.memory_space<vmem>>, vector<1x128xf32>
    %c0_79 = arith.constant 0 : index
    %c256 = arith.constant 256 : index
    %95 = vector.load %arg14[%c0_79, %c256] : memref<8x640xf32, #tpu.memory_space<vmem>>, vector<1x128xf32>
    tpu.vector_store %arg14[%c0_79, %c256], %94 {strides = array<i32>} : memref<8x640xf32, #tpu.memory_space<vmem>>, vector<1x128xf32>,
    %c12 = arith.constant 12 : index
    %c0_80 = arith.constant 0 : index
    %96 = vector.load %arg13[%c12, %c0_80] : memref<64x128xf32, #tpu.memory_space<vmem>>, vector<1x128xf32>
    %c0_81 = arith.constant 0 : index
    %c384 = arith.constant 384 : index
    %97 = vector.load %arg14[%c0_81, %c384] : memref<8x640xf32, #tpu.memory_space<vmem>>, vector<1x128xf32>
    tpu.vector_store %arg14[%c0_81, %c384], %96 {strides = array<i32>} : memref<8x640xf32, #tpu.memory_space<vmem>>, vector<1x128xf32>,
    %c16 = arith.constant 16 : index
    %c0_82 = arith.constant 0 : index
    %98 = vector.load %arg13[%c16, %c0_82] : memref<64x128xf32, #tpu.memory_space<vmem>>, vector<1x128xf32>
    %c0_83 = arith.constant 0 : index
    %c512 = arith.constant 512 : index
    %99 = vector.load %arg14[%c0_83, %c512] : memref<8x640xf32, #tpu.memory_space<vmem>>, vector<1x128xf32>
    tpu.vector_store %arg14[%c0_83, %c512], %98 {strides = array<i32>} : memref<8x640xf32, #tpu.memory_space<vmem>>, vector<1x128xf32>,
    %c32 = arith.constant 32 : index
    %c0_84 = arith.constant 0 : index
    %100 = vector.load %arg13[%c32, %c0_84] : memref<64x128xf32, #tpu.memory_space<vmem>>, vector<1x128xf32>
    %c1_85 = arith.constant 1 : index
    %c0_86 = arith.constant 0 : index
    %101 = vector.load %arg14[%c1_85, %c0_86] : memref<8x640xf32, #tpu.memory_space<vmem>>, vector<1x128xf32>
    tpu.vector_store %arg14[%c1_85, %c0_86], %100 {strides = array<i32>} : memref<8x640xf32, #tpu.memory_space<vmem>>, vector<1x128xf32>,
    %c36 = arith.constant 36 : index
    %c0_87 = arith.constant 0 : index
    %102 = vector.load %arg13[%c36, %c0_87] : memref<64x128xf32, #tpu.memory_space<vmem>>, vector<1x128xf32>
    %c1_88 = arith.constant 1 : index
    %c128_89 = arith.constant 128 : index
    %103 = vector.load %arg14[%c1_88, %c128_89] : memref<8x640xf32, #tpu.memory_space<vmem>>, vector<1x128xf32>
    tpu.vector_store %arg14[%c1_88, %c128_89], %102 {strides = array<i32>} : memref<8x640xf32, #tpu.memory_space<vmem>>, vector<1x128xf32>,
    %c40 = arith.constant 40 : index
    %c0_90 = arith.constant 0 : index
    %104 = vector.load %arg13[%c40, %c0_90] : memref<64x128xf32, #tpu.memory_space<vmem>>, vector<1x128xf32>
    %c1_91 = arith.constant 1 : index
    %c256_92 = arith.constant 256 : index
    %105 = vector.load %arg14[%c1_91, %c256_92] : memref<8x640xf32, #tpu.memory_space<vmem>>, vector<1x128xf32>
    tpu.vector_store %arg14[%c1_91, %c256_92], %104 {strides = array<i32>} : memref<8x640xf32, #tpu.memory_space<vmem>>, vector<1x128xf32>,
    %c44 = arith.constant 44 : index
    %c0_93 = arith.constant 0 : index
    %106 = vector.load %arg13[%c44, %c0_93] : memref<64x128xf32, #tpu.memory_space<vmem>>, vector<1x128xf32>
    %c1_94 = arith.constant 1 : index
    %c384_95 = arith.constant 384 : index
    %107 = vector.load %arg14[%c1_94, %c384_95] : memref<8x640xf32, #tpu.memory_space<vmem>>, vector<1x128xf32>
    tpu.vector_store %arg14[%c1_94, %c384_95], %106 {strides = array<i32>} : memref<8x640xf32, #tpu.memory_space<vmem>>, vector<1x128xf32>,
    %c48 = arith.constant 48 : index
    %c0_96 = arith.constant 0 : index
    %108 = vector.load %arg13[%c48, %c0_96] : memref<64x128xf32, #tpu.memory_space<vmem>>, vector<1x128xf32>
    %c1_97 = arith.constant 1 : index
    %c512_98 = arith.constant 512 : index
    %109 = vector.load %arg14[%c1_97, %c512_98] : memref<8x640xf32, #tpu.memory_space<vmem>>, vector<1x128xf32>
    tpu.vector_store %arg14[%c1_97, %c512_98], %108 {strides = array<i32>} : memref<8x640xf32, #tpu.memory_space<vmem>>, vector<1x128xf32>,
    %c1_i32_99 = arith.constant 1 : i32
    %110 = tpu.memref_slice %arg19[%c1_i32_99] : memref<4x!tpu.dma_semaphore, #tpu.memory_space<semaphore_mem>> -> memref<1x!tpu.dma_semaphore, #tpu.memory_space<semaphore_mem>>
    %111 = tpu.memref_squeeze %110 : memref<1x!tpu.dma_semaphore, #tpu.memory_space<semaphore_mem>> -> memref<!tpu.dma_semaphore, #tpu.memory_space<semaphore_mem>>
    tpu.wait_dma2 semaphore(%111 : memref<!tpu.dma_semaphore, #tpu.memory_space<semaphore_mem>>) src(%arg5 : memref<640x128xf32, #tpu.memory_space<any>>) dst(%arg16 : memref<640x128xf32, #tpu.memory_space<vmem>>)
    %c2_i32_100 = arith.constant 2 : i32
    %112 = tpu.memref_slice %arg19[%c2_i32_100] : memref<4x!tpu.dma_semaphore, #tpu.memory_space<semaphore_mem>> -> memref<1x!tpu.dma_semaphore, #tpu.memory_space<semaphore_mem>>
    %113 = tpu.memref_squeeze %112 : memref<1x!tpu.dma_semaphore, #tpu.memory_space<semaphore_mem>> -> memref<!tpu.dma_semaphore, #tpu.memory_space<semaphore_mem>>
    tpu.wait_dma2 semaphore(%113 : memref<!tpu.dma_semaphore, #tpu.memory_space<semaphore_mem>>) src(%arg7 : memref<128x128xf32, #tpu.memory_space<any>>) dst(%arg17 : memref<128x128xf32, #tpu.memory_space<vmem>>)
    %c3_i32_101 = arith.constant 3 : i32
    %114 = tpu.memref_slice %arg19[%c3_i32_101] : memref<4x!tpu.dma_semaphore, #tpu.memory_space<semaphore_mem>> -> memref<1x!tpu.dma_semaphore, #tpu.memory_space<semaphore_mem>>
    %115 = tpu.memref_squeeze %114 : memref<1x!tpu.dma_semaphore, #tpu.memory_space<semaphore_mem>> -> memref<!tpu.dma_semaphore, #tpu.memory_space<semaphore_mem>>
    tpu.wait_dma2 semaphore(%115 : memref<!tpu.dma_semaphore, #tpu.memory_space<semaphore_mem>>) src(%arg9 : memref<128x128xf32, #tpu.memory_space<any>>) dst(%arg18 : memref<128x128xf32, #tpu.memory_space<vmem>>)
    %c0_102 = arith.constant 0 : index
    %c0_103 = arith.constant 0 : index
    %116 = vector.load %arg14[%c0_102, %c0_103] : memref<8x640xf32, #tpu.memory_space<vmem>>, vector<8x640xf32>
    %c0_104 = arith.constant 0 : index
    %c0_105 = arith.constant 0 : index
    %117 = vector.load %arg16[%c0_104, %c0_105] : memref<640x128xf32, #tpu.memory_space<vmem>>, vector<640x128xf32>
    %cst_106 = arith.constant dense<0.000000e+00> : vector<8x128xf32>
    %118 = tpu.matmul %116, %117, %cst_106 {dimension_numbers = #tpu.dot_dimension_numbers<[1], [0], [0], [1], [0, 0, 1, 1], [], []>} : vector<8x640xf32>, vector<640x128xf32>, vector<8x128xf32> -> vector<8x128xf32>
    %c0_107 = arith.constant 0 : index
    %c0_108 = arith.constant 0 : index
    %119 = vector.load %arg6[%c0_107, %c0_108] : memref<1x128xf32, #tpu.memory_space<vmem>>, vector<1x128xf32>
    %120 = vector.broadcast %119 : vector<1x128xf32> to vector<8x128xf32>
    %121 = arith.addf %118, %120 : vector<8x128xf32>
    %cst_109 = arith.constant 0.000000e+00 : f32
    %122 = vector.broadcast %cst_109 : f32 to vector<8x128xf32>
    %123 = arith.maximumf %121, %122 : vector<8x128xf32>
    %c0_110 = arith.constant 0 : index
    %c0_111 = arith.constant 0 : index
    %124 = vector.load %arg17[%c0_110, %c0_111] : memref<128x128xf32, #tpu.memory_space<vmem>>, vector<128x128xf32>
    %cst_112 = arith.constant dense<0.000000e+00> : vector<8x128xf32>
    %125 = tpu.matmul %123, %124, %cst_112 {dimension_numbers = #tpu.dot_dimension_numbers<[1], [0], [0], [1], [0, 0, 1, 1], [], []>} : vector<8x128xf32>, vector<128x128xf32>, vector<8x128xf32> -> vector<8x128xf32>
    %c0_113 = arith.constant 0 : index
    %c0_114 = arith.constant 0 : index
    %126 = vector.load %arg8[%c0_113, %c0_114] : memref<1x128xf32, #tpu.memory_space<vmem>>, vector<1x128xf32>
    %127 = vector.broadcast %126 : vector<1x128xf32> to vector<8x128xf32>
    %128 = arith.addf %125, %127 : vector<8x128xf32>
    %cst_115 = arith.constant 0.000000e+00 : f32
    %129 = vector.broadcast %cst_115 : f32 to vector<8x128xf32>
    %130 = arith.maximumf %128, %129 : vector<8x128xf32>
    %c0_116 = arith.constant 0 : index
    %c0_117 = arith.constant 0 : index
    %131 = vector.load %arg18[%c0_116, %c0_117] : memref<128x128xf32, #tpu.memory_space<vmem>>, vector<128x128xf32>
    %cst_118 = arith.constant dense<0.000000e+00> : vector<8x128xf32>
    %132 = tpu.matmul %130, %131, %cst_118 {dimension_numbers = #tpu.dot_dimension_numbers<[1], [0], [0], [1], [0, 0, 1, 1], [], []>} : vector<8x128xf32>, vector<128x128xf32>, vector<8x128xf32> -> vector<8x128xf32>
    %c0_119 = arith.constant 0 : index
    %c0_120 = arith.constant 0 : index
    %133 = vector.load %arg10[%c0_119, %c0_120] : memref<1x128xf32, #tpu.memory_space<vmem>>, vector<1x128xf32>
    %134 = vector.broadcast %133 : vector<1x128xf32> to vector<8x128xf32>
    %135 = arith.addf %132, %134 : vector<8x128xf32>
    %c0_121 = arith.constant 0 : index
    %c0_122 = arith.constant 0 : index
    %136 = vector.load %arg11[%c0_121, %c0_122] : memref<8x128xf32, #tpu.memory_space<vmem>>, vector<8x128xf32>
    tpu.vector_store %arg11[%c0_121, %c0_122], %135 {strides = array<i32>} : memref<8x128xf32, #tpu.memory_space<vmem>>, vector<8x128xf32>,
    return
  }
}

</mosaic_0001>

<bundles_post_ra>
// kernel: forward.1
= control target key start
LH: loop header
LB: loop body
LE: loop exit
PB: predicated region body
PF: predicated region fallthrough
CT: control target
= control target key end

     0   :  { %16 = vsyncpa [#allocation11], 0  ;;  %s3213_s17 = smov [#allocation10]   ;;  %s4619_s0 = inlined_call_operand.vmem [shape: f32[80,128], index: 0, kind: input, shape index: {}]   ;;  %s4620_s1 = inlined_call_operand.hbm [shape: f32[5,128,256], index: 1, kind: input, shape index: {}]   ;;  %s4621_s2 = inlined_call_operand.vmem [shape: f32[1,256], index: 2, kind: input, shape index: {}]   ;;  %s4622_s3 = inlined_call_operand.hbm [shape: f32[5,128,256], index: 3, kind: input, shape index: {}]   ;;  %s4623_s4 = inlined_call_operand.vmem [shape: f32[1,256], index: 4, kind: input, shape index: {}]   ;;  %s4624_s5 = inlined_call_operand.vmem [shape: f32[640,128], index: 5, kind: input, shape index: {}]   ;;  %s4625_s6 = inlined_call_operand.vmem [shape: f32[1,128], index: 6, kind: input, shape index: {}]   ;;  %s4626_s7 = inlined_call_operand.vmem [shape: f32[128,128], index: 7, kind: input, shape index: {}]   ;;  %s4627_s8 = inlined_call_operand.vmem [shape: f32[1,128], index: 8, kind: input, shape index: {}]   ;;  %s4628_s9 = inlined_call_operand.vmem [shape: f32[128,128], index: 9, kind: input, shape index: {}]   ;;  %s4629_s10 = inlined_call_operand.vmem [shape: f32[1,128], index: 10, kind: input, shape index: {}]   ;;  %s4630_s11 = inlined_call_operand.vmem [shape: f32[8,128], index: 11, kind: output, shape index: {}]  }
   0x1   :  { %s24_s18 = sshll.u32 %s3213_s17, 4  ;;  %s25_s18 = int_to_ptr.vmem [resolvable:$true] %s24_s18 }
   0x2   :  { %s3171_s19 = scalar_lea.vmem %s25_s18, 20480  ;;  %p3176_p1 = scmp.lt.s32.totalorder %s25_s18, %s25_s18 }
   0x3   :  { %p3172_p0 = scmp.ne.s32.totalorder %s25_s18, %s3171_s19  ;;  %p3177_p2 = scmp.lt.s32.totalorder %s3171_s19, %s3171_s19 }
   0x5   :  { %p3178_p3 = por %p3177_p2, %p3176_p1 }
   0x7   :  { %p3179_p4 = pnand %p3178_p3, %p3172_p0 }
   0x9   :  { %3182 = shalt.err (!%p3179_p4)
}
   0xa   :  { %s3214_s20 = smov 256   ;;  %s3215_s21 = smov 16  }
   0xb   :  { %30 = dma.hbm_to_vmem [thread:$0]  %s4620_s1, 20480, %s25_s18, [#allocation11], %s3214_s20, %s3214_s20, %s3215_s21  }
   0xc   :  { %3203 = dma.done.wait [#allocation11], 20480  }
   0xd   :  { %3204 = vsyncadd [#allocation11], 4294946816  ;;  %s3216_s24 = smov [#allocation5]  }
   0xe   :  { %s51_s25 = sshll.u32 %s3216_s24, 4  ;;  %s52_s25 = int_to_ptr.vmem [resolvable:$true] %s51_s25 }
   0xf   :  { %s3191_s26 = scalar_lea.vmem %s52_s25, 20480  ;;  %p3196_p6 = scmp.lt.s32.totalorder %s52_s25, %s52_s25 }
  0x10   :  { %p3192_p5 = scmp.ne.s32.totalorder %s52_s25, %s3191_s26  ;;  %p3197_p7 = scmp.lt.s32.totalorder %s3191_s26, %s3191_s26 }
  0x12   :  { %p3198_p8 = por %p3197_p7, %p3196_p6 }
  0x14   :  { %p3199_p9 = pnand %p3198_p8, %p3192_p5 }
  0x16   :  { %3202 = shalt.err (!%p3199_p9)  }
  0x17   :  { %54 = dma.hbm_to_vmem [thread:$0]  %s4622_s3, 20480, %s52_s25, [#allocation9]  ;;  %v3288_v0 = vld [vmem:[%s4624_s5] sm:$0xff]  ;;  %v3293_v1 = vld [vmem:[%s4624_s5 + $0x8] sm:$0xff]  ;;  %v3298_v2 = vld [vmem:[%s4624_s5 + $0x10] sm:$0xff] }
  0x18   :  { %4637 = vst [vmem:[#allocation24_spill] sm:$0xff] %v3288_v0  ;;  %4638 = vst [vmem:[#allocation25_spill] sm:$0xff] %v3293_v1  ;;  %v3303_v3 = vld [vmem:[%s4624_s5 + $0x18] sm:$0xff]  ;;  %v3308_v4 = vld [vmem:[%s4624_s5 + $0x20] sm:$0xff] }
  0x19   :  { %4639 = vst [vmem:[#allocation26_spill] sm:$0xff] %v3298_v2  ;;  %4640 = vst [vmem:[#allocation27_spill] sm:$0xff] %v3303_v3  ;;  %v3313_v5 = vld [vmem:[%s4624_s5 + $0x28] sm:$0xff]  ;;  %v3318_v6 = vld [vmem:[%s4624_s5 + $0x30] sm:$0xff] }
  0x1a   :  { %4641 = vst [vmem:[#allocation28_spill] sm:$0xff] %v3308_v4  ;;  %4642 = vst [vmem:[#allocation29_spill] sm:$0xff] %v3313_v5  ;;  %v3323_v7 = vld [vmem:[%s4624_s5 + $0x38] sm:$0xff]  ;;  %v3328_v8 = vld [vmem:[%s4624_s5 + $0x40] sm:$0xff] }
  0x1b   :  { %4643 = vst [vmem:[#allocation30_spill] sm:$0xff] %v3318_v6  ;;  %4644 = vst [vmem:[#allocation31_spill] sm:$0xff] %v3323_v7  ;;  %v3333_v9 = vld [vmem:[%s4624_s5 + $0x48] sm:$0xff]  ;;  %v3338_v10 = vld [vmem:[%s4624_s5 + $0x50] sm:$0xff] }
  0x1c   :  { %4645 = vst [vmem:[#allocation32_spill] sm:$0xff] %v3328_v8  ;;  %4646 = vst [vmem:[#allocation33_spill] sm:$0xff] %v3333_v9  ;;  %v3343_v11 = vld [vmem:[%s4624_s5 + $0x58] sm:$0xff]  ;;  %v3348_v12 = vld [vmem:[%s4624_s5 + $0x60] sm:$0xff] }
  0x1d   :  { %4647 = vst [vmem:[#allocation34_spill] sm:$0xff] %v3338_v10  ;;  %4648 = vst [vmem:[#allocation35_spill] sm:$0xff] %v3343_v11  ;;  %v3353_v13 = vld [vmem:[%s4624_s5 + $0x68] sm:$0xff]  ;;  %v3358_v14 = vld [vmem:[%s4624_s5 + $0x70] sm:$0xff] }
  0x1e   :  { %4649 = vst [vmem:[#allocation36_spill] sm:$0xff] %v3348_v12  ;;  %4650 = vst [vmem:[#allocation37_spill] sm:$0xff] %v3353_v13  ;;  %v3363_v15 = vld [vmem:[%s4624_s5 + $0x78] sm:$0xff]  ;;  %v3368_v16 = vld [vmem:[%s4624_s5 + $0x80] sm:$0xff] }
  0x1f   :  { %4651 = vst [vmem:[#allocation38_spill] sm:$0xff] %v3358_v14  ;;  %4652 = vst [vmem:[#allocation39_spill] sm:$0xff] %v3363_v15  ;;  %v3373_v17 = vld [vmem:[%s4624_s5 + $0x88] sm:$0xff]  ;;  %v3378_v18 = vld [vmem:[%s4624_s5 + $0x90] sm:$0xff] }
  0x20   :  { %4653 = vst [vmem:[#allocation40_spill] sm:$0xff] %v3368_v16  ;;  %4654 = vst [vmem:[#allocation41_spill] sm:$0xff] %v3373_v17  ;;  %v3383_v19 = vld [vmem:[%s4624_s5 + $0x98] sm:$0xff]  ;;  %v3388_v20 = vld [vmem:[%s4624_s5 + $0xa0] sm:$0xff] }
  0x21   :  { %4655 = vst [vmem:[#allocation42_spill] sm:$0xff] %v3378_v18  ;;  %4656 = vst [vmem:[#allocation43_spill] sm:$0xff] %v3383_v19  ;;  %v3393_v21 = vld [vmem:[%s4624_s5 + $0xa8] sm:$0xff]  ;;  %v3398_v22 = vld [vmem:[%s4624_s5 + $0xb0] sm:$0xff] }
  0x22   :  { %4657 = vst [vmem:[#allocation44_spill] sm:$0xff] %v3388_v20  ;;  %4658 = vst [vmem:[#allocation45_spill] sm:$0xff] %v3393_v21  ;;  %v3403_v23 = vld [vmem:[%s4624_s5 + $0xb8] sm:$0xff]  ;;  %v3408_v24 = vld [vmem:[%s4624_s5 + $0xc0] sm:$0xff] }
  0x23   :  { %4659 = vst [vmem:[#allocation46_spill] sm:$0xff] %v3398_v22  ;;  %4660 = vst [vmem:[#allocation47_spill] sm:$0xff] %v3403_v23  ;;  %v3413_v25 = vld [vmem:[%s4624_s5 + $0xc8] sm:$0xff]  ;;  %v3418_v26 = vld [vmem:[%s4624_s5 + $0xd0] sm:$0xff] }
  0x24   :  { %4661 = vst [vmem:[#allocation48_spill] sm:$0xff] %v3408_v24  ;;  %4662 = vst [vmem:[#allocation49_spill] sm:$0xff] %v3413_v25  ;;  %v3423_v27 = vld [vmem:[%s4624_s5 + $0xd8] sm:$0xff]  ;;  %v3428_v28 = vld [vmem:[%s4624_s5 + $0xe0] sm:$0xff] }
  0x25   :  { %4663 = vst [vmem:[#allocation50_spill] sm:$0xff] %v3418_v26  ;;  %4664 = vst [vmem:[#allocation51_spill] sm:$0xff] %v3423_v27  ;;  %v3433_v29 = vld [vmem:[%s4624_s5 + $0xe8] sm:$0xff]  ;;  %v3438_v30 = vld [vmem:[%s4624_s5 + $0xf0] sm:$0xff] }
  0x26   :  { %4665 = vst [vmem:[#allocation52_spill] sm:$0xff] %v3428_v28  ;;  %4666 = vst [vmem:[#allocation53_spill] sm:$0xff] %v3433_v29  ;;  %v3443_v31 = vld [vmem:[%s4624_s5 + $0xf8] sm:$0xff]  ;;  %v3448_v32 = vld [vmem:[%s4624_s5 + $0x100] sm:$0xff] }
  0x27   :  { %4667 = vst [vmem:[#allocation54_spill] sm:$0xff] %v3438_v30  ;;  %4668 = vst [vmem:[#allocation55_spill] sm:$0xff] %v3443_v31  ;;  %v3453_v33 = vld [vmem:[%s4624_s5 + $0x108] sm:$0xff]  ;;  %v3458_v34 = vld [vmem:[%s4624_s5 + $0x110] sm:$0xff] }
  0x28   :  { %4669 = vst [vmem:[#allocation56_spill] sm:$0xff] %v3448_v32  ;;  %4670 = vst [vmem:[#allocation57_spill] sm:$0xff] %v3453_v33  ;;  %v3463_v35 = vld [vmem:[%s4624_s5 + $0x118] sm:$0xff]  ;;  %v3468_v36 = vld [vmem:[%s4624_s5 + $0x120] sm:$0xff] }
  0x29   :  { %4671 = vst [vmem:[#allocation58_spill] sm:$0xff] %v3458_v34  ;;  %4672 = vst [vmem:[#allocation59_spill] sm:$0xff] %v3463_v35  ;;  %v3473_v37 = vld [vmem:[%s4624_s5 + $0x128] sm:$0xff]  ;;  %v3478_v38 = vld [vmem:[%s4624_s5 + $0x130] sm:$0xff] }
  0x2a   :  { %4673 = vst [vmem:[#allocation60_spill] sm:$0xff] %v3468_v36  ;;  %4674 = vst [vmem:[#allocation61_spill] sm:$0xff] %v3473_v37  ;;  %v3483_v39 = vld [vmem:[%s4624_s5 + $0x138] sm:$0xff]  ;;  %v3488_v40 = vld [vmem:[%s4624_s5 + $0x140] sm:$0xff] }
  0x2b   :  { %4675 = vst [vmem:[#allocation62_spill] sm:$0xff] %v3478_v38  ;;  %4676 = vst [vmem:[#allocation63_spill] sm:$0xff] %v3483_v39  ;;  %v3493_v41 = vld [vmem:[%s4624_s5 + $0x148] sm:$0xff]  ;;  %v3498_v42 = vld [vmem:[%s4624_s5 + $0x150] sm:$0xff] }
  0x2c   :  { %4677 = vst [vmem:[#allocation64_spill] sm:$0xff] %v3488_v40  ;;  %4678 = vst [vmem:[#allocation65_spill] sm:$0xff] %v3493_v41  ;;  %v3503_v43 = vld [vmem:[%s4624_s5 + $0x158] sm:$0xff]  ;;  %v3508_v44 = vld [vmem:[%s4624_s5 + $0x160] sm:$0xff] }
  0x2d   :  { %4679 = vst [vmem:[#allocation66_spill] sm:$0xff] %v3498_v42  ;;  %4680 = vst [vmem:[#allocation67_spill] sm:$0xff] %v3503_v43  ;;  %v3513_v45 = vld [vmem:[%s4624_s5 + $0x168] sm:$0xff]  ;;  %v3518_v46 = vld [vmem:[%s4624_s5 + $0x170] sm:$0xff] }
  0x2e   :  { %4681 = vst [vmem:[#allocation68_spill] sm:$0xff] %v3508_v44  ;;  %4682 = vst [vmem:[#allocation69_spill] sm:$0xff] %v3513_v45  ;;  %v3523_v47 = vld [vmem:[%s4624_s5 + $0x178] sm:$0xff]  ;;  %v3528_v48 = vld [vmem:[%s4624_s5 + $0x180] sm:$0xff] }
  0x2f   :  { %4683 = vst [vmem:[#allocation70_spill] sm:$0xff] %v3518_v46  ;;  %4684 = vst [vmem:[#allocation71_spill] sm:$0xff] %v3523_v47  ;;  %v3533_v49 = vld [vmem:[%s4624_s5 + $0x188] sm:$0xff]  ;;  %v3538_v50 = vld [vmem:[%s4624_s5 + $0x190] sm:$0xff] }
  0x30   :  { %4685 = vst [vmem:[#allocation72_spill] sm:$0xff] %v3528_v48  ;;  %4686 = vst [vmem:[#allocation73_spill] sm:$0xff] %v3533_v49  ;;  %v3543_v51 = vld [vmem:[%s4624_s5 + $0x198] sm:$0xff]  ;;  %v3548_v52 = vld [vmem:[%s4624_s5 + $0x1a0] sm:$0xff] }
  0x31   :  { %4687 = vst [vmem:[#allocation74_spill] sm:$0xff] %v3538_v50  ;;  %4688 = vst [vmem:[#allocation75_spill] sm:$0xff] %v3543_v51  ;;  %v3553_v53 = vld [vmem:[%s4624_s5 + $0x1a8] sm:$0xff]  ;;  %v3558_v54 = vld [vmem:[%s4624_s5 + $0x1b0] sm:$0xff] }
  0x32   :  { %4689 = vst [vmem:[#allocation76_spill] sm:$0xff] %v3548_v52  ;;  %4690 = vst [vmem:[#allocation77_spill] sm:$0xff] %v3553_v53  ;;  %v3563_v55 = vld [vmem:[%s4624_s5 + $0x1b8] sm:$0xff]  ;;  %v3568_v56 = vld [vmem:[%s4624_s5 + $0x1c0] sm:$0xff] }
  0x33   :  { %4691 = vst [vmem:[#allocation78_spill] sm:$0xff] %v3558_v54  ;;  %4692 = vst [vmem:[#allocation79_spill] sm:$0xff] %v3563_v55  ;;  %v3573_v57 = vld [vmem:[%s4624_s5 + $0x1c8] sm:$0xff]  ;;  %v3578_v58 = vld [vmem:[%s4624_s5 + $0x1d0] sm:$0xff] }
  0x34   :  { %4693 = vst [vmem:[#allocation80_spill] sm:$0xff] %v3568_v56  ;;  %4694 = vst [vmem:[#allocation81_spill] sm:$0xff] %v3573_v57  ;;  %v3583_v59 = vld [vmem:[%s4624_s5 + $0x1d8] sm:$0xff]  ;;  %v3588_v60 = vld [vmem:[%s4624_s5 + $0x1e0] sm:$0xff] }
  0x35   :  { %4695 = vst [vmem:[#allocation82_spill] sm:$0xff] %v3578_v58  ;;  %4696 = vst [vmem:[#allocation83_spill] sm:$0xff] %v3583_v59  ;;  %v3593_v61 = vld [vmem:[%s4624_s5 + $0x1e8] sm:$0xff]  ;;  %v3598_v62 = vld [vmem:[%s4624_s5 + $0x1f0] sm:$0xff] }
  0x36   :  { %4697 = vst [vmem:[#allocation84_spill] sm:$0xff] %v3588_v60  ;;  %4698 = vst [vmem:[#allocation85_spill] sm:$0xff] %v3593_v61  ;;  %v3603_v63 = vld [vmem:[%s4624_s5 + $0x1f8] sm:$0xff]  ;;  %v3608_v32 = vld [vmem:[%s4624_s5 + $0x200] sm:$0xff] }
  0x37   :  { %4699 = vst [vmem:[#allocation86_spill] sm:$0xff] %v3598_v62  ;;  %4700 = vst [vmem:[#allocation87_spill] sm:$0xff] %v3603_v63  ;;  %v3613_v48 = vld [vmem:[%s4624_s5 + $0x208] sm:$0xff]  ;;  %v3618_v0 = vld [vmem:[%s4624_s5 + $0x210] sm:$0xff] }
  0x38   :  { %4701 = vst [vmem:[#allocation88_spill] sm:$0xff] %v3608_v32  ;;  %4702 = vst [vmem:[#allocation89_spill] sm:$0xff] %v3613_v48  ;;  %v3623_v33 = vld [vmem:[%s4624_s5 + $0x218] sm:$0xff]  ;;  %v3628_v16 = vld [vmem:[%s4624_s5 + $0x220] sm:$0xff] }
  0x39   :  { %4703 = vst [vmem:[#allocation90_spill] sm:$0xff] %v3618_v0  ;;  %4704 = vst [vmem:[#allocation91_spill] sm:$0xff] %v3623_v33  ;;  %v3633_v32 = vld [vmem:[%s4624_s5 + $0x228] sm:$0xff]  ;;  %v3638_v48 = vld [vmem:[%s4624_s5 + $0x230] sm:$0xff] }
  0x3a   :  { %4705 = vst [vmem:[#allocation92_spill] sm:$0xff] %v3628_v16  ;;  %4706 = vst [vmem:[#allocation93_spill] sm:$0xff] %v3633_v32  ;;  %v3643_v0 = vld [vmem:[%s4624_s5 + $0x238] sm:$0xff]  ;;  %v3648_v33 = vld [vmem:[%s4624_s5 + $0x240] sm:$0xff] }
  0x3b   :  { %4707 = vst [vmem:[#allocation94_spill] sm:$0xff] %v3638_v48  ;;  %4708 = vst [vmem:[#allocation95_spill] sm:$0xff] %v3643_v0  ;;  %v3653_v16 = vld [vmem:[%s4624_s5 + $0x248] sm:$0xff]  ;;  %v3658_v32 = vld [vmem:[%s4624_s5 + $0x250] sm:$0xff] }
  0x3c   :  { %4709 = vst [vmem:[#allocation96_spill] sm:$0xff] %v3648_v33  ;;  %4710 = vst [vmem:[#allocation97_spill] sm:$0xff] %v3653_v16  ;;  %v3663_v48 = vld [vmem:[%s4624_s5 + $0x258] sm:$0xff]  ;;  %v3668_v0 = vld [vmem:[%s4624_s5 + $0x260] sm:$0xff] }
  0x3d   :  { %4711 = vst [vmem:[#allocation98_spill] sm:$0xff] %v3658_v32  ;;  %4712 = vst [vmem:[#allocation99_spill] sm:$0xff] %v3663_v48  ;;  %v3673_v33 = vld [vmem:[%s4624_s5 + $0x268] sm:$0xff]  ;;  %v3678_v16 = vld [vmem:[%s4624_s5 + $0x270] sm:$0xff] }
  0x3e   :  { %4713 = vst [vmem:[#allocation100_spill] sm:$0xff] %v3668_v0  ;;  %4714 = vst [vmem:[#allocation101_spill] sm:$0xff] %v3673_v33  ;;  %v3683_v32 = vld [vmem:[%s4624_s5 + $0x278] sm:$0xff] }
  0x3f   :  { %4715 = vst [vmem:[#allocation102_spill] sm:$0xff] %v3678_v16  ;;  %4716 = vst [vmem:[#allocation103_spill] sm:$0xff] %v3683_v32 }
  0x40   :  { %256 = vsyncadd [#allocation9 + $0x1], 10240  ;;  %v3688_v48 = vld [vmem:[%s4626_s7] sm:$0xff]  ;;  %v3693_v0 = vld [vmem:[%s4626_s7 + $0x8] sm:$0xff] }
  0x41   :  { %4717 = vst [vmem:[#allocation104_spill] sm:$0xff] %v3688_v48  ;;  %4718 = vst [vmem:[#allocation105_spill] sm:$0xff] %v3693_v0  ;;  %v3698_v33 = vld [vmem:[%s4626_s7 + $0x10] sm:$0xff]  ;;  %v3703_v16 = vld [vmem:[%s4626_s7 + $0x18] sm:$0xff] }
  0x42   :  { %4719 = vst [vmem:[#allocation106_spill] sm:$0xff] %v3698_v33  ;;  %4720 = vst [vmem:[#allocation107_spill] sm:$0xff] %v3703_v16  ;;  %v3708_v32 = vld [vmem:[%s4626_s7 + $0x20] sm:$0xff]  ;;  %v3713_v48 = vld [vmem:[%s4626_s7 + $0x28] sm:$0xff] }
  0x43   :  { %4721 = vst [vmem:[#allocation108_spill] sm:$0xff] %v3708_v32  ;;  %4722 = vst [vmem:[#allocation109_spill] sm:$0xff] %v3713_v48  ;;  %v3718_v0 = vld [vmem:[%s4626_s7 + $0x30] sm:$0xff]  ;;  %v3723_v33 = vld [vmem:[%s4626_s7 + $0x38] sm:$0xff] }
  0x44   :  { %4723 = vst [vmem:[#allocation110_spill] sm:$0xff] %v3718_v0  ;;  %4724 = vst [vmem:[#allocation111_spill] sm:$0xff] %v3723_v33  ;;  %v3728_v16 = vld [vmem:[%s4626_s7 + $0x40] sm:$0xff]  ;;  %v3733_v32 = vld [vmem:[%s4626_s7 + $0x48] sm:$0xff] }
  0x45   :  { %4725 = vst [vmem:[#allocation112_spill] sm:$0xff] %v3728_v16  ;;  %4726 = vst [vmem:[#allocation113_spill] sm:$0xff] %v3733_v32  ;;  %v3738_v48 = vld [vmem:[%s4626_s7 + $0x50] sm:$0xff]  ;;  %v3743_v0 = vld [vmem:[%s4626_s7 + $0x58] sm:$0xff] }
  0x46   :  { %4727 = vst [vmem:[#allocation114_spill] sm:$0xff] %v3738_v48  ;;  %4728 = vst [vmem:[#allocation115_spill] sm:$0xff] %v3743_v0  ;;  %v3748_v33 = vld [vmem:[%s4626_s7 + $0x60] sm:$0xff]  ;;  %v3753_v16 = vld [vmem:[%s4626_s7 + $0x68] sm:$0xff] }
  0x47   :  { %4729 = vst [vmem:[#allocation116_spill] sm:$0xff] %v3748_v33  ;;  %4730 = vst [vmem:[#allocation117_spill] sm:$0xff] %v3753_v16  ;;  %v3758_v32 = vld [vmem:[%s4626_s7 + $0x70] sm:$0xff]  ;;  %v3763_v48 = vld [vmem:[%s4626_s7 + $0x78] sm:$0xff] }
  0x48   :  { %4731 = vst [vmem:[#allocation118_spill] sm:$0xff] %v3758_v32  ;;  %4732 = vst [vmem:[#allocation119_spill] sm:$0xff] %v3763_v48 }
  0x49   :  { %330 = vsyncadd [#allocation9 + $0x2], 2048  ;;  %v3768_v0 = vld [vmem:[%s4628_s9] sm:$0xff]  ;;  %v3773_v33 = vld [vmem:[%s4628_s9 + $0x8] sm:$0xff] }
  0x4a   :  { %4733 = vst [vmem:[#allocation120_spill] sm:$0xff] %v3768_v0  ;;  %4734 = vst [vmem:[#allocation121_spill] sm:$0xff] %v3773_v33  ;;  %v3778_v16 = vld [vmem:[%s4628_s9 + $0x10] sm:$0xff]  ;;  %v3783_v32 = vld [vmem:[%s4628_s9 + $0x18] sm:$0xff] }
  0x4b   :  { %4735 = vst [vmem:[#allocation122_spill] sm:$0xff] %v3778_v16  ;;  %4736 = vst [vmem:[#allocation123_spill] sm:$0xff] %v3783_v32  ;;  %v3788_v48 = vld [vmem:[%s4628_s9 + $0x20] sm:$0xff]  ;;  %v3793_v0 = vld [vmem:[%s4628_s9 + $0x28] sm:$0xff] }
  0x4c   :  { %4737 = vst [vmem:[#allocation124_spill] sm:$0xff] %v3788_v48  ;;  %4738 = vst [vmem:[#allocation125_spill] sm:$0xff] %v3793_v0  ;;  %v3798_v33 = vld [vmem:[%s4628_s9 + $0x30] sm:$0xff]  ;;  %v3803_v16 = vld [vmem:[%s4628_s9 + $0x38] sm:$0xff] }
  0x4d   :  { %4739 = vst [vmem:[#allocation126_spill] sm:$0xff] %v3798_v33  ;;  %4740 = vst [vmem:[#allocation127_spill] sm:$0xff] %v3803_v16  ;;  %v3808_v32 = vld [vmem:[%s4628_s9 + $0x40] sm:$0xff]  ;;  %v3813_v48 = vld [vmem:[%s4628_s9 + $0x48] sm:$0xff] }
  0x4e   :  { %4741 = vst [vmem:[#allocation128_spill] sm:$0xff] %v3808_v32  ;;  %4742 = vst [vmem:[#allocation129_spill] sm:$0xff] %v3813_v48  ;;  %v3818_v0 = vld [vmem:[%s4628_s9 + $0x50] sm:$0xff]  ;;  %v3823_v33 = vld [vmem:[%s4628_s9 + $0x58] sm:$0xff] }
  0x4f   :  { %4743 = vst [vmem:[#allocation130_spill] sm:$0xff] %v3818_v0  ;;  %4744 = vst [vmem:[#allocation131_spill] sm:$0xff] %v3823_v33  ;;  %v3828_v16 = vld [vmem:[%s4628_s9 + $0x60] sm:$0xff]  ;;  %v3833_v32 = vld [vmem:[%s4628_s9 + $0x68] sm:$0xff] }
  0x50   :  { %4745 = vst [vmem:[#allocation132_spill] sm:$0xff] %v3828_v16  ;;  %4746 = vst [vmem:[#allocation133_spill] sm:$0xff] %v3833_v32  ;;  %v3838_v48 = vld [vmem:[%s4628_s9 + $0x70] sm:$0xff]  ;;  %v3843_v0 = vld [vmem:[%s4628_s9 + $0x78] sm:$0xff] }
  0x51   :  { %4747 = vst [vmem:[#allocation134_spill] sm:$0xff] %v3838_v48  ;;  %4748 = vst [vmem:[#allocation135_spill] sm:$0xff] %v3843_v0 }
  0x52   :  { %404 = vsyncadd [#allocation9 + $0x3], 2048  ;;  %v494_v33 = vld [vmem:[#allocation10 + $0x1f8] sm:$0xff]  ;;  %v493_v16 = vld [vmem:[#allocation10 + $0x1f0] sm:$0xff]  ;;  %v4631_v34 = vmov 0.0   ;;  %v1272_v46 = vlaneseq  ;;  %vm1336_vm0 = vcmask 1046528  }
  0x53   :  { %v452_v1 = vld [vmem:[#allocation10 + $0xf8] sm:$0xff]  ;;  %495 = vmatprep.subr.mxu0 %v494_v33  ;;  %v451_v49 = vld [vmem:[#allocation10 + $0xf0] sm:$0xff]  ;;  %v492_v17 = vld [vmem:[#allocation10 + $0x1e8] sm:$0xff]  ;;  %405 = vst [vmem:[#allocation2 + $0x40] sm:$0xff] %v4631_v34 }
  0x54   :  { %614 = vmatprep.subr.mxu1 %v452_v1  ;;  %406 = vst [vmem:[#allocation2 + $0x48] sm:$0xff] %v4631_v34  ;;  %407 = vst [vmem:[#allocation4] sm:$0xff] %v4631_v34  ;;  %496 = vmatpush1.msra.mxu0 %v493_v16  ;;  %v450_v1 = vld [vmem:[#allocation10 + $0xe8] sm:$0xff]  ;;  %v491_v33 = vld [vmem:[#allocation10 + $0x1e0] sm:$0xff]  ;;  %v4110_v47 = vshrl.u32 %v1272_v46, 7 }
  0x55   :  { %408 = vst [vmem:[#allocation4 + $0x8] sm:$0xff] %v4631_v34  ;;  %409 = vst [vmem:[#allocation4 + $0x10] sm:$0xff] %v4631_v34  ;;  %615 = vmatpush1.msra.mxu1 %v451_v49  ;;  %v449_v32 = vld [vmem:[#allocation10 + $0xe0] sm:$0xff]  ;;  %497 = vmatprep.subr.mxu0 %v492_v17  ;;  %v490_v48 = vld [vmem:[#allocation10 + $0x1d8] sm:$0xff] }
  0x56   :  { %410 = vst [vmem:[#allocation4 + $0x18] sm:$0xff] %v4631_v34  ;;  %411 = vst [vmem:[#allocation4 + $0x20] sm:$0xff] %v4631_v34  ;;  %616 = vmatprep.subr.mxu1 %v450_v1  ;;  %v448_v0 = vld [vmem:[#allocation10 + $0xd8] sm:$0xff]  ;;  %v489_v2 = vld [vmem:[#allocation10 + $0x1d0] sm:$0xff]  ;;  %498 = vmatpush1.msra.mxu0 %v491_v33 }
  0x57   :  { %617 = vmatpush1.msra.mxu1 %v449_v32  ;;  %v447_v50 = vld [vmem:[#allocation10 + $0xd0] sm:$0xff]  ;;  %v488_v18 = vld [vmem:[#allocation10 + $0x1c8] sm:$0xff]  ;;  %499 = vmatprep.subr.mxu0 %v490_v48  ;;  %v487_v3 = vld [vmem:[#allocation10 + $0x1c0] sm:$0xff] }
  0x58   :  { %v446_v35 = vld [vmem:[#allocation10 + $0xc8] sm:$0xff]  ;;  %618 = vmatprep.subr.mxu1 %v448_v0  ;;  %v445_v51 = vld [vmem:[#allocation10 + $0xc0] sm:$0xff]  ;;  %500 = vmatpush1.msra.mxu0 %v489_v2  ;;  %v486_v16 = vld [vmem:[#allocation10 + $0x1b8] sm:$0xff] }
  0x59   :  { %619 = vmatpush1.msra.mxu1 %v447_v50  ;;  %v444_v49 = vld [vmem:[#allocation10 + $0xb8] sm:$0xff]  ;;  %501 = vmatprep.subr.mxu0 %v488_v18  ;;  %v485_v17 = vld [vmem:[#allocation10 + $0x1b0] sm:$0xff]  ;;  %v484_v34 = vld [vmem:[#allocation10 + $0x1a8] sm:$0xff] }
  0x5a   :  { %620 = vmatprep.subr.mxu1 %v446_v35  ;;  %v443_v1 = vld [vmem:[#allocation10 + $0xb0] sm:$0xff]  ;;  %502 = vmatpush1.msra.mxu0 %v487_v3  ;;  %v442_v33 = vld [vmem:[#allocation10 + $0xa8] sm:$0xff]  ;;  %v483_v32 = vld [vmem:[#allocation10 + $0x1a0] sm:$0xff] }
  0x5b   :  { %621 = vmatpush1.msra.mxu1 %v445_v51  ;;  %503 = vmatprep.subr.mxu0 %v486_v16  ;;  %v441_v19 = vld [vmem:[#allocation10 + $0xa0] sm:$0xff]  ;;  %v482_v0 = vld [vmem:[#allocation10 + $0x198] sm:$0xff]  ;;  %v481_v2 = vld [vmem:[#allocation10 + $0x190] sm:$0xff] }
  0x5c   :  { %622 = vmatprep.subr.mxu1 %v444_v49  ;;  %504 = vmatpush1.msra.mxu0 %v485_v17  ;;  %v440_v48 = vld [vmem:[#allocation10 + $0x98] sm:$0xff]  ;;  %v439_v50 = vld [vmem:[#allocation10 + $0x90] sm:$0xff]  ;;  %v480_v18 = vld [vmem:[#allocation10 + $0x188] sm:$0xff] }
  0x5d   :  { %623 = vmatpush1.msra.mxu1 %v443_v1  ;;  %505 = vmatprep.subr.mxu0 %v484_v34  ;;  %v438_v35 = vld [vmem:[#allocation10 + $0x88] sm:$0xff]  ;;  %v479_v3 = vld [vmem:[#allocation10 + $0x180] sm:$0xff]  ;;  %v478_v16 = vld [vmem:[#allocation10 + $0x178] sm:$0xff] }
  0x5e   :  { %624 = vmatprep.subr.mxu1 %v442_v33  ;;  %506 = vmatpush1.msra.mxu0 %v483_v32  ;;  %v437_v51 = vld [vmem:[#allocation10 + $0x80] sm:$0xff]  ;;  %v436_v49 = vld [vmem:[#allocation10 + $0x78] sm:$0xff]  ;;  %v477_v17 = vld [vmem:[#allocation10 + $0x170] sm:$0xff] }
  0x5f   :  { %625 = vmatpush1.msra.mxu1 %v441_v19  ;;  %507 = vmatprep.subr.mxu0 %v482_v0  ;;  %v435_v1 = vld [vmem:[#allocation10 + $0x70] sm:$0xff]  ;;  %v476_v34 = vld [vmem:[#allocation10 + $0x168] sm:$0xff]  ;;  %v475_v19 = vld [vmem:[#allocation10 + $0x160] sm:$0xff] }
  0x60   :  { %626 = vmatprep.subr.mxu1 %v440_v48  ;;  %508 = vmatpush1.msra.mxu0 %v481_v2  ;;  %v434_v33 = vld [vmem:[#allocation10 + $0x68] sm:$0xff]  ;;  %v433_v32 = vld [vmem:[#allocation10 + $0x60] sm:$0xff]  ;;  %v474_v0 = vld [vmem:[#allocation10 + $0x158] sm:$0xff] }
  0x61   :  { %627 = vmatpush1.msra.mxu1 %v439_v50  ;;  %509 = vmatprep.subr.mxu0 %v480_v18  ;;  %v432_v48 = vld [vmem:[#allocation10 + $0x58] sm:$0xff]  ;;  %v473_v2 = vld [vmem:[#allocation10 + $0x150] sm:$0xff]  ;;  %v472_v18 = vld [vmem:[#allocation10 + $0x148] sm:$0xff] }
  0x62   :  { %628 = vmatprep.subr.mxu1 %v438_v35  ;;  %510 = vmatpush1.msra.mxu0 %v479_v3  ;;  %v431_v50 = vld [vmem:[#allocation10 + $0x50] sm:$0xff]  ;;  %v430_v35 = vld [vmem:[#allocation10 + $0x48] sm:$0xff]  ;;  %v471_v3 = vld [vmem:[#allocation10 + $0x140] sm:$0xff] }
  0x63   :  { %629 = vmatpush1.msra.mxu1 %v437_v51  ;;  %511 = vmatprep.subr.mxu0 %v478_v16  ;;  %v429_v51 = vld [vmem:[#allocation10 + $0x40] sm:$0xff]  ;;  %v470_v16 = vld [vmem:[#allocation10 + $0x138] sm:$0xff] }
  0x64   :  { %630 = vmatprep.subr.mxu1 %v436_v49  ;;  %512 = vmatpush1.msra.mxu0 %v477_v17  ;;  %v428_v49 = vld [vmem:[#allocation10 + $0x38] sm:$0xff]  ;;  %v469_v17 = vld [vmem:[#allocation10 + $0x130] sm:$0xff] }
  0x65   :  { %631 = vmatpush1.msra.mxu1 %v435_v1  ;;  %513 = vmatprep.subr.mxu0 %v476_v34  ;;  %v427_v1 = vld [vmem:[#allocation10 + $0x30] sm:$0xff]  ;;  %v468_v34 = vld [vmem:[#allocation10 + $0x128] sm:$0xff] }
  0x66   :  { %632 = vmatprep.subr.mxu1 %v434_v33  ;;  %514 = vmatpush1.msra.mxu0 %v475_v19  ;;  %v426_v33 = vld [vmem:[#allocation10 + $0x28] sm:$0xff]  ;;  %v467_v19 = vld [vmem:[#allocation10 + $0x120] sm:$0xff] }
  0x67   :  { %633 = vmatpush1.msra.mxu1 %v433_v32  ;;  %515 = vmatprep.subr.mxu0 %v474_v0  ;;  %v425_v32 = vld [vmem:[#allocation10 + $0x20] sm:$0xff]  ;;  %v466_v0 = vld [vmem:[#allocation10 + $0x118] sm:$0xff] }
  0x68   :  { %634 = vmatprep.subr.mxu1 %v432_v48  ;;  %516 = vmatpush1.msra.mxu0 %v473_v2  ;;  %v424_v48 = vld [vmem:[#allocation10 + $0x18] sm:$0xff]  ;;  %v465_v2 = vld [vmem:[#allocation10 + $0x110] sm:$0xff] }
  0x69   :  { %635 = vmatpush1.msra.mxu1 %v431_v50  ;;  %517 = vmatprep.subr.mxu0 %v472_v18  ;;  %v423_v50 = vld [vmem:[#allocation10 + $0x10] sm:$0xff]  ;;  %v464_v18 = vld [vmem:[#allocation10 + $0x108] sm:$0xff] }
  0x6a   :  { %636 = vmatprep.subr.mxu1 %v430_v35  ;;  %518 = vmatpush1.msra.mxu0 %v471_v3  ;;  %v422_v35 = vld [vmem:[#allocation10 + $0x8] sm:$0xff]  ;;  %v463_v3 = vld [vmem:[#allocation10 + $0x100] sm:$0xff] }
  0x6b   :  { %637 = vmatpush1.msra.mxu1 %v429_v51  ;;  %519 = vmatprep.subr.mxu0 %v470_v16  ;;  %v421_v51 = vld [vmem:[#allocation10] sm:$0xff]  ;;  %v453_v16 = vld [vmem:[%s4619_s0 + $0x1] sm:$0xff] }
  0x6c   :  { %638 = vmatprep.subr.mxu1 %v428_v49  ;;  %520 = vmatpush1.msra.mxu0 %v469_v17  ;;  %v412_v49 = vld [vmem:[%s4619_s0] sm:$0xff]  ;;  %v4749_v17 = vmov 0.0  }
  0x6d   :  { %639 = vmatpush1.msra.mxu1 %v427_v1  ;;  %521 = vmatprep.subr.mxu0 %v468_v34  ;;  %v774_v1 = vld [vmem:[#allocation10 + $0x2f8] sm:$0xff]  ;;  %v773_v34 = vld [vmem:[#allocation10 + $0x2f0] sm:$0xff] }
  0x6e   :  { %640 = vmatprep.subr.mxu1 %v426_v33  ;;  %522 = vmatpush1.msra.mxu0 %v467_v19  ;;  %v772_v33 = vld [vmem:[#allocation10 + $0x2e8] sm:$0xff]  ;;  %v953_v19 = vld [vmem:[#allocation10 + $0x3f8] sm:$0xff] }
  0x6f   :  { %641 = vmatpush1.msra.mxu1 %v425_v32  ;;  %523 = vmatprep.subr.mxu0 %v466_v0  ;;  %v454_v32 = vld [vmem:[%s4619_s0 + $0x9] sm:$0xff] }
  0x70   :  { %642 = vmatprep.subr.mxu1 %v424_v48  ;;  %524 = vmatpush1.msra.mxu0 %v465_v2  ;;  %v413_v0 = vld [vmem:[%s4619_s0 + $0x8] sm:$0xff]  ;;  %v771_v48 = vld [vmem:[#allocation10 + $0x2e0] sm:$0xff]  ;;  %v770_v2 = vld [vmem:[#allocation10 + $0x2d8] sm:$0xff] }
  0x71   :  { %643 = vmatpush1.msra.mxu1 %v423_v50  ;;  %525 = vmatprep.subr.mxu0 %v464_v18  ;;  %v769_v50 = vld [vmem:[#allocation10 + $0x2d0] sm:$0xff] }
  0x72   :  { %644 = vmatprep.subr.mxu1 %v422_v35  ;;  %526 = vmatpush1.msra.mxu0 %v463_v3  ;;  %v952_v18 = vld [vmem:[#allocation10 + $0x3f0] sm:$0xff]  ;;  %v768_v35 = vld [vmem:[#allocation10 + $0x2c8] sm:$0xff]  ;;  %v455_v3 = vld [vmem:[%s4619_s0 + $0x11] sm:$0xff] }
  0x73   :  { %559 = vmatprep.mubr.f32.mxu0 %v4749_v17  ;;  %645 = vmatpush1.msra.mxu1 %v421_v51  ;;  %v414_v51 = vld [vmem:[%s4619_s0 + $0x10] sm:$0xff] }
  0x74   :  { %678 = vmatprep.mubr.f32.mxu1 %v4749_v17  ;;  %560 = vmatmul.mubr.f32.vlgmr.msra.gmra.mxu0 %v453_v16  ;;  %v767_v16 = vld [vmem:[#allocation10 + $0x2c0] sm:$0xff] }
  0x75   :  { %679 = vmatmul.mubr.f32.vlgmr.msra.gmra.mxu1 %v412_v49  ;;  %775 = vmatprep.subr.mxu0 %v774_v1  ;;  %v951_v49 = vld [vmem:[#allocation10 + $0x3e8] sm:$0xff]  ;;  %v766_v1 = vld [vmem:[#allocation10 + $0x2b8] sm:$0xff] }
  0x76   :  { %565 = vmatprep.mubr.f32.mxu0 %v4749_v17  ;;  %776 = vmatpush1.msra.mxu0 %v773_v34  ;;  %v950_v34 = vld [vmem:[#allocation10 + $0x3e0] sm:$0xff] }
  0x77   :  { %684 = vmatprep.mubr.f32.mxu1 %v4749_v17  ;;  %777 = vmatprep.subr.mxu0 %v772_v33  ;;  %v765_v33 = vld [vmem:[#allocation10 + $0x2b0] sm:$0xff] }
  0x78   :  { %954 = vmatprep.subr.mxu1 %v953_v19  ;;  %566 = vmatmul.mubr.f32.gmra.mxu0 %v454_v32  ;;  %v949_v19 = vld [vmem:[#allocation10 + $0x3d8] sm:$0xff]  ;;  %v948_v32 = vld [vmem:[#allocation10 + $0x3d0] sm:$0xff] }
  0x79   :  { %685 = vmatmul.mubr.f32.gmra.mxu1 %v413_v0  ;;  %778 = vmatpush1.msra.mxu0 %v771_v48  ;;  %v456_v0 = vld [vmem:[%s4619_s0 + $0x19] sm:$0xff] }
  0x7a   :  { %571 = vmatprep.mubr.f32.mxu0 %v4749_v17  ;;  %779 = vmatprep.subr.mxu0 %v770_v2  ;;  %v415_v48 = vld [vmem:[%s4619_s0 + $0x18] sm:$0xff]  ;;  %v764_v2 = vld [vmem:[#allocation10 + $0x2a8] sm:$0xff] }
  0x7b   :  { %690 = vmatprep.mubr.f32.mxu1 %v4749_v17  ;;  %780 = vmatpush1.msra.mxu0 %v769_v50  ;;  %v947_v50 = vld [vmem:[#allocation10 + $0x3c8] sm:$0xff] }
  0x7c   :  { %955 = vmatpush1.msra.mxu1 %v952_v18  ;;  %781 = vmatprep.subr.mxu0 %v768_v35  ;;  %v763_v18 = vld [vmem:[#allocation10 + $0x2a0] sm:$0xff] }
  0x7d   :  { %572 = vmatmul.mubr.f32.gmra.mxu0 %v455_v3  ;;  %691 = vmatmul.mubr.f32.gmra.mxu1 %v414_v51  ;;  %v946_v35 = vld [vmem:[#allocation10 + $0x3c0] sm:$0xff]  ;;  %v762_v3 = vld [vmem:[#allocation10 + $0x298] sm:$0xff] }
  0x7e   :  { %782 = vmatpush1.msra.mxu0 %v767_v16  ;;  %956 = vmatprep.subr.mxu1 %v951_v49  ;;  %v945_v51 = vld [vmem:[#allocation10 + $0x3b8] sm:$0xff]  ;;  %v761_v16 = vld [vmem:[#allocation10 + $0x290] sm:$0xff] }
  0x7f   :  { %783 = vmatprep.subr.mxu0 %v766_v1  ;;  %957 = vmatpush1.msra.mxu1 %v950_v34  ;;  %v944_v49 = vld [vmem:[#allocation10 + $0x3b0] sm:$0xff]  ;;  %v416_v34 = vld [vmem:[%s4619_s0 + $0x20] sm:$0xff] }
  0x80   :  { %784 = vmatpush1.msra.mxu0 %v765_v33  ;;  %958 = vmatprep.subr.mxu1 %v949_v19  ;;  %v457_v1 = vld [vmem:[%s4619_s0 + $0x21] sm:$0xff] }
  0x81   :  { %577 = vmatprep.mubr.f32.mxu0 %v4749_v17  ;;  %696 = vmatprep.mubr.f32.mxu1 %v4749_v17  ;;  %v760_v33 = vld [vmem:[#allocation10 + $0x288] sm:$0xff] }
  0x82   :  { %959 = vmatpush1.msra.mxu1 %v948_v32  ;;  %578 = vmatmul.mubr.f32.gmra.mxu0 %v456_v0  ;;  %v943_v19 = vld [vmem:[#allocation10 + $0x3a8] sm:$0xff]  ;;  %v759_v32 = vld [vmem:[#allocation10 + $0x280] sm:$0xff] }
  0x83   :  { %697 = vmatmul.mubr.f32.gmra.mxu1 %v415_v48  ;;  %785 = vmatprep.subr.mxu0 %v764_v2  ;;  %v942_v0 = vld [vmem:[#allocation10 + $0x3a0] sm:$0xff]  ;;  %v758_v48 = vld [vmem:[#allocation10 + $0x278] sm:$0xff] }
  0x84   :  { %960 = vmatprep.subr.mxu1 %v947_v50  ;;  %786 = vmatpush1.msra.mxu0 %v763_v18  ;;  %v941_v2 = vld [vmem:[#allocation10 + $0x398] sm:$0xff]  ;;  %v757_v50 = vld [vmem:[#allocation10 + $0x270] sm:$0xff] }
  0x85   :  { %961 = vmatpush1.msra.mxu1 %v946_v35  ;;  %787 = vmatprep.subr.mxu0 %v762_v3  ;;  %v940_v18 = vld [vmem:[#allocation10 + $0x390] sm:$0xff] }
  0x86   :  { %962 = vmatprep.subr.mxu1 %v945_v51  ;;  %583 = vmatprep.mubr.f32.mxu0 %v4749_v17  ;;  %v458_v35 = vld [vmem:[%s4619_s0 + $0x29] sm:$0xff]  ;;  %v939_v51 = vld [vmem:[#allocation10 + $0x388] sm:$0xff] }
  0x87   :  { %702 = vmatprep.mubr.f32.mxu1 %v4749_v17  ;;  %788 = vmatpush1.msra.mxu0 %v761_v16  ;;  %v417_v3 = vld [vmem:[%s4619_s0 + $0x28] sm:$0xff]  ;;  %v756_v16 = vld [vmem:[#allocation10 + $0x268] sm:$0xff] }
  0x88   :  { %963 = vmatpush1.msra.mxu1 %v944_v49  ;;  %584 = vmatmul.mubr.f32.gmra.mxu0 %v457_v1  ;;  %v938_v49 = vld [vmem:[#allocation10 + $0x380] sm:$0xff] }
  0x89   :  { %703 = vmatmul.mubr.f32.gmra.mxu1 %v416_v34  ;;  %789 = vmatprep.subr.mxu0 %v760_v33  ;;  %v755_v1 = vld [vmem:[#allocation10 + $0x260] sm:$0xff]  ;;  %v937_v34 = vld [vmem:[#allocation10 + $0x378] sm:$0xff] }
  0x8a   :  { %964 = vmatprep.subr.mxu1 %v943_v19  ;;  %790 = vmatpush1.msra.mxu0 %v759_v32  ;;  %v754_v33 = vld [vmem:[#allocation10 + $0x258] sm:$0xff]  ;;  %v936_v19 = vld [vmem:[#allocation10 + $0x370] sm:$0xff] }
  0x8b   :  { %965 = vmatpush1.msra.mxu1 %v942_v0  ;;  %791 = vmatprep.subr.mxu0 %v758_v48  ;;  %v459_v32 = vld [vmem:[%s4619_s0 + $0x31] sm:$0xff]  ;;  %v753_v48 = vld [vmem:[#allocation10 + $0x250] sm:$0xff] }
  0x8c   :  { %966 = vmatprep.subr.mxu1 %v941_v2  ;;  %589 = vmatprep.mubr.f32.mxu0 %v4749_v17  ;;  %v418_v0 = vld [vmem:[%s4619_s0 + $0x30] sm:$0xff]  ;;  %v935_v2 = vld [vmem:[#allocation10 + $0x368] sm:$0xff] }
  0x8d   :  { %708 = vmatprep.mubr.f32.mxu1 %v4749_v17  ;;  %792 = vmatpush1.msra.mxu0 %v757_v50  ;;  %v752_v50 = vld [vmem:[#allocation10 + $0x248] sm:$0xff] }
  0x8e   :  { %967 = vmatpush1.msra.mxu1 %v940_v18  ;;  %590 = vmatmul.mubr.f32.gmra.mxu0 %v458_v35  ;;  %v934_v18 = vld [vmem:[#allocation10 + $0x360] sm:$0xff] }
  0x8f   :  { %709 = vmatmul.mubr.f32.gmra.mxu1 %v417_v3  ;;  %968 = vmatprep.subr.mxu1 %v939_v51  ;;  %v751_v35 = vld [vmem:[#allocation10 + $0x240] sm:$0xff]  ;;  %v933_v3 = vld [vmem:[#allocation10 + $0x358] sm:$0xff] }
  0x90   :  { %793 = vmatprep.subr.mxu0 %v756_v16  ;;  %969 = vmatpush1.msra.mxu1 %v938_v49  ;;  %v750_v51 = vld [vmem:[#allocation10 + $0x238] sm:$0xff]  ;;  %v932_v16 = vld [vmem:[#allocation10 + $0x350] sm:$0xff]  ;;  %v460_v49 = vld [vmem:[%s4619_s0 + $0x39] sm:$0xff] }
  0x91   :  { %794 = vmatpush1.msra.mxu0 %v755_v1  ;;  %970 = vmatprep.subr.mxu1 %v937_v34  ;;  %v419_v1 = vld [vmem:[%s4619_s0 + $0x38] sm:$0xff]  ;;  %v749_v34 = vld [vmem:[#allocation10 + $0x230] sm:$0xff] }
  0x92   :  { %595 = vmatprep.mubr.f32.mxu0 %v4749_v17  ;;  %714 = vmatprep.mubr.f32.mxu1 %v4749_v17 }
  0x93   :  { %795 = vmatprep.subr.mxu0 %v754_v33  ;;  %971 = vmatpush1.msra.mxu1 %v936_v19  ;;  %v931_v33 = vld [vmem:[#allocation10 + $0x348] sm:$0xff] }
  0x94   :  { %596 = vmatmul.mubr.f32.gmra.mxu0 %v459_v32  ;;  %715 = vmatmul.mubr.f32.gmra.mxu1 %v418_v0  ;;  %v748_v19 = vld [vmem:[#allocation10 + $0x228] sm:$0xff]  ;;  %v930_v32 = vld [vmem:[#allocation10 + $0x340] sm:$0xff]  ;;  %v929_v0 = vld [vmem:[#allocation10 + $0x338] sm:$0xff] }
  0x95   :  { %796 = vmatpush1.msra.mxu0 %v753_v48  ;;  %972 = vmatprep.subr.mxu1 %v935_v2  ;;  %v747_v48 = vld [vmem:[#allocation10 + $0x220] sm:$0xff]  ;;  %v928_v2 = vld [vmem:[#allocation10 + $0x330] sm:$0xff] }
  0x96   :  { %797 = vmatprep.subr.mxu0 %v752_v50  ;;  %973 = vmatpush1.msra.mxu1 %v934_v18  ;;  %v461_v50 = vld [vmem:[%s4619_s0 + $0x41] sm:$0xff] }
  0x97   :  { %798 = vmatpush1.msra.mxu0 %v751_v35  ;;  %974 = vmatprep.subr.mxu1 %v933_v3  ;;  %v420_v18 = vld [vmem:[%s4619_s0 + $0x40] sm:$0xff]  ;;  %v746_v35 = vld [vmem:[#allocation10 + $0x218] sm:$0xff] }
  0x98   :  { %601 = vmatprep.mubr.f32.mxu0 %v4749_v17  ;;  %720 = vmatprep.mubr.f32.mxu1 %v4749_v17  ;;  %v927_v3 = vld [vmem:[#allocation10 + $0x328] sm:$0xff] }
  0x99   :  { %799 = vmatprep.subr.mxu0 %v750_v51  ;;  %975 = vmatpush1.msra.mxu1 %v932_v16  ;;  %v745_v51 = vld [vmem:[#allocation10 + $0x210] sm:$0xff]  ;;  %v926_v16 = vld [vmem:[#allocation10 + $0x320] sm:$0xff] }
  0x9a   :  { %602 = vmatmul.mubr.f32.gmra.mxu0 %v460_v49  ;;  %721 = vmatmul.mubr.f32.gmra.mxu1 %v419_v1  ;;  %v744_v49 = vld [vmem:[#allocation10 + $0x208] sm:$0xff]  ;;  %v925_v1 = vld [vmem:[#allocation10 + $0x318] sm:$0xff] }
  0x9b   :  { %800 = vmatpush1.msra.mxu0 %v749_v34  ;;  %976 = vmatprep.subr.mxu1 %v931_v33  ;;  %v743_v34 = vld [vmem:[#allocation10 + $0x200] sm:$0xff]  ;;  %v924_v33 = vld [vmem:[#allocation10 + $0x310] sm:$0xff] }
  0x9c   :  { %801 = vmatprep.subr.mxu0 %v748_v19  ;;  %977 = vmatpush1.msra.mxu1 %v930_v32  ;;  %v733_v19 = vld [vmem:[%s4619_s0 + $0x2] sm:$0xff] }
  0x9d   :  { %607 = vmatprep.mubr.f32.mxu0 %v4749_v17  ;;  %978 = vmatprep.subr.mxu1 %v929_v0  ;;  %v923_v32 = vld [vmem:[#allocation10 + $0x308] sm:$0xff]  ;;  %v1132_v0 = vld [vmem:[#allocation10 + $0x4f8] sm:$0xff] }
  0x9e   :  { %726 = vmatprep.mubr.f32.mxu1 %v4749_v17  ;;  %802 = vmatpush1.msra.mxu0 %v747_v48  ;;  %v922_v48 = vld [vmem:[#allocation10 + $0x300] sm:$0xff] }
  0x9f   :  { %979 = vmatpush1.msra.mxu1 %v928_v2  ;;  %608 = vmatmul.mubr.f32.gmra.mxu0 %v461_v50  ;;  %v1131_v2 = vld [vmem:[#allocation10 + $0x4f0] sm:$0xff] }
  0xa0   :  { %727 = vmatmul.mubr.f32.gmra.mxu1 %v420_v18  ;;  %803 = vmatprep.subr.mxu0 %v746_v35  ;;  %v912_v50 = vld [vmem:[%s4619_s0 + $0x3] sm:$0xff] }
  0xa1   :  { %980 = vmatprep.subr.mxu1 %v927_v3  ;;  %804 = vmatpush1.msra.mxu0 %v745_v51  ;;  %v1130_v18 = vld [vmem:[#allocation10 + $0x4e8] sm:$0xff]  ;;  %v734_v35 = vld [vmem:[%s4619_s0 + $0xa] sm:$0xff]  ;;  %v1129_v3 = vld [vmem:[#allocation10 + $0x4e0] sm:$0xff] }
  0xa2   :  { %981 = vmatpush1.msra.mxu1 %v926_v16  ;;  %805 = vmatprep.subr.mxu0 %v744_v49  ;;  %v1128_v51 = vld [vmem:[#allocation10 + $0x4d8] sm:$0xff]  ;;  %v1127_v49 = vld [vmem:[#allocation10 + $0x4d0] sm:$0xff] }
  0xa3   :  { %982 = vmatprep.subr.mxu1 %v925_v1  ;;  %806 = vmatpush1.msra.mxu0 %v743_v34  ;;  %v913_v16 = vld [vmem:[%s4619_s0 + $0xb] sm:$0xff]  ;;  %v1126_v1 = vld [vmem:[#allocation10 + $0x4c8] sm:$0xff] }
  0xa4   :  { %839 = vmatprep.mubr.f32.mxu0 %v4749_v17  ;;  %983 = vmatpush1.msra.mxu1 %v924_v33  ;;  %v735_v34 = vld [vmem:[%s4619_s0 + $0x12] sm:$0xff] }
  0xa5   :  { %840 = vmatmul.mubr.f32.vlgmr.msra.gmra.mxu0 %v733_v19  ;;  %984 = vmatprep.subr.mxu1 %v923_v32  ;;  %v1125_v33 = vld [vmem:[#allocation10 + $0x4c0] sm:$0xff]  ;;  %v1124_v19 = vld [vmem:[#allocation10 + $0x4b8] sm:$0xff] }
  0xa6   :  { %1133 = vmatprep.subr.mxu0 %v1132_v0  ;;  %985 = vmatpush1.msra.mxu1 %v922_v48  ;;  %v914_v32 = vld [vmem:[%s4619_s0 + $0x13] sm:$0xff]  ;;  %v1123_v0 = vld [vmem:[#allocation10 + $0x4b0] sm:$0xff] }
  0xa7   :  { %1018 = vmatprep.mubr.f32.mxu1 %v4749_v17  ;;  %1134 = vmatpush1.msra.mxu0 %v1131_v2  ;;  %v736_v48 = vld [vmem:[%s4619_s0 + $0x1a] sm:$0xff] }
  0xa8   :  { %1019 = vmatmul.mubr.f32.vlgmr.msra.gmra.mxu1 %v912_v50  ;;  %845 = vmatprep.mubr.f32.mxu0 %v4749_v17  ;;  %v1122_v2 = vld [vmem:[#allocation10 + $0x4a8] sm:$0xff]  ;;  %v1121_v50 = vld [vmem:[#allocation10 + $0x4a0] sm:$0xff] }
  0xa9   :  { %1135 = vmatprep.subr.mxu0 %v1130_v18  ;;  %846 = vmatmul.mubr.f32.gmra.mxu0 %v734_v35  ;;  %v915_v18 = vld [vmem:[%s4619_s0 + $0x1b] sm:$0xff]  ;;  %v1120_v35 = vld [vmem:[#allocation10 + $0x498] sm:$0xff] }
  0xaa   :  { %1024 = vmatprep.mubr.f32.mxu1 %v4749_v17  ;;  %1136 = vmatpush1.msra.mxu0 %v1129_v3  ;;  %v1119_v3 = vld [vmem:[#allocation10 + $0x490] sm:$0xff] }
  0xab   :  { %851 = vmatprep.mubr.f32.mxu0 %v4749_v17  ;;  %1137 = vmatprep.subr.mxu0 %v1128_v51  ;;  %v737_v51 = vld [vmem:[%s4619_s0 + $0x22] sm:$0xff] }
  0xac   :  { %1025 = vmatmul.mubr.f32.gmra.mxu1 %v913_v16  ;;  %1138 = vmatpush1.msra.mxu0 %v1127_v49  ;;  %v1118_v16 = vld [vmem:[#allocation10 + $0x488] sm:$0xff]  ;;  %v1117_v49 = vld [vmem:[#allocation10 + $0x480] sm:$0xff] }
  0xad   :  { %1030 = vmatprep.mubr.f32.mxu1 %v4749_v17  ;;  %1139 = vmatprep.subr.mxu0 %v1126_v1  ;;  %v916_v1 = vld [vmem:[%s4619_s0 + $0x23] sm:$0xff] }
  0xae   :  { %852 = vmatmul.mubr.f32.gmra.mxu0 %v735_v34  ;;  %v1116_v34 = vld [vmem:[#allocation10 + $0x478] sm:$0xff] }
  0xaf   :  { %1140 = vmatpush1.msra.mxu0 %v1125_v33  ;;  %857 = vmatprep.mubr.f32.mxu0 %v4749_v17  ;;  %v1115_v33 = vld [vmem:[#allocation10 + $0x470] sm:$0xff] }
  0xb0   :  { %1141 = vmatprep.subr.mxu0 %v1124_v19  ;;  %1031 = vmatmul.mubr.f32.gmra.mxu1 %v914_v32  ;;  %v738_v19 = vld [vmem:[%s4619_s0 + $0x2a] sm:$0xff]  ;;  %v1114_v32 = vld [vmem:[#allocation10 + $0x468] sm:$0xff] }
  0xb1   :  { %1142 = vmatpush1.msra.mxu0 %v1123_v0  ;;  %1036 = vmatprep.mubr.f32.mxu1 %v4749_v17  ;;  %v1113_v0 = vld [vmem:[#allocation10 + $0x460] sm:$0xff] }
  0xb2   :  { %858 = vmatmul.mubr.f32.gmra.mxu0 %v736_v48  ;;  %1143 = vmatprep.subr.mxu0 %v1122_v2  ;;  %v917_v48 = vld [vmem:[%s4619_s0 + $0x2b] sm:$0xff] }
  0xb3   :  { %1144 = vmatpush1.msra.mxu0 %v1121_v50  ;;  %863 = vmatprep.mubr.f32.mxu0 %v4749_v17  ;;  %v1112_v2 = vld [vmem:[#allocation10 + $0x458] sm:$0xff]  ;;  %v1111_v50 = vld [vmem:[#allocation10 + $0x450] sm:$0xff] }
  0xb4   :  { %1037 = vmatmul.mubr.f32.gmra.mxu1 %v915_v18  ;;  %1145 = vmatprep.subr.mxu0 %v1120_v35  ;;  %v739_v18 = vld [vmem:[%s4619_s0 + $0x32] sm:$0xff]  ;;  %v1110_v35 = vld [vmem:[#allocation10 + $0x448] sm:$0xff] }
  0xb5   :  { %1146 = vmatpush1.msra.mxu0 %v1119_v3  ;;  %1042 = vmatprep.mubr.f32.mxu1 %v4749_v17  ;;  %v1109_v3 = vld [vmem:[#allocation10 + $0x440] sm:$0xff] }
  0xb6   :  { %864 = vmatmul.mubr.f32.gmra.mxu0 %v737_v51  ;;  %1147 = vmatprep.subr.mxu0 %v1118_v16  ;;  %v918_v51 = vld [vmem:[%s4619_s0 + $0x33] sm:$0xff] }
  0xb7   :  { %1148 = vmatpush1.msra.mxu0 %v1117_v49  ;;  %869 = vmatprep.mubr.f32.mxu0 %v4749_v17  ;;  %v1108_v16 = vld [vmem:[#allocation10 + $0x438] sm:$0xff]  ;;  %v1107_v49 = vld [vmem:[#allocation10 + $0x430] sm:$0xff] }
  0xb8   :  { %1043 = vmatmul.mubr.f32.gmra.mxu1 %v916_v1  ;;  %1149 = vmatprep.subr.mxu0 %v1116_v34  ;;  %v740_v1 = vld [vmem:[%s4619_s0 + $0x3a] sm:$0xff] }
  0xb9   :  { %1150 = vmatpush1.msra.mxu0 %v1115_v33  ;;  %1048 = vmatprep.mubr.f32.mxu1 %v4749_v17  ;;  %v1106_v34 = vld [vmem:[#allocation10 + $0x428] sm:$0xff]  ;;  %v1105_v33 = vld [vmem:[#allocation10 + $0x420] sm:$0xff] }
  0xba   :  { %870 = vmatmul.mubr.f32.gmra.mxu0 %v738_v19  ;;  %1151 = vmatprep.subr.mxu0 %v1114_v32  ;;  %v919_v19 = vld [vmem:[%s4619_s0 + $0x3b] sm:$0xff]  ;;  %v1104_v32 = vld [vmem:[#allocation10 + $0x418] sm:$0xff] }
  0xbb   :  { %1152 = vmatpush1.msra.mxu0 %v1113_v0  ;;  %875 = vmatprep.mubr.f32.mxu0 %v4749_v17  ;;  %v1103_v0 = vld [vmem:[#allocation10 + $0x410] sm:$0xff] }
  0xbc   :  { %1049 = vmatmul.mubr.f32.gmra.mxu1 %v917_v48  ;;  %1153 = vmatprep.subr.mxu0 %v1112_v2  ;;  %v741_v48 = vld [vmem:[%s4619_s0 + $0x42] sm:$0xff] }
  0xbd   :  { %1154 = vmatpush1.msra.mxu0 %v1111_v50  ;;  %1054 = vmatprep.mubr.f32.mxu1 %v4749_v17  ;;  %v1102_v2 = vld [vmem:[#allocation10 + $0x408] sm:$0xff]  ;;  %v1101_v50 = vld [vmem:[#allocation10 + $0x400] sm:$0xff] }
  0xbe   :  { %876 = vmatmul.mubr.f32.gmra.mxu0 %v739_v18  ;;  %1155 = vmatprep.subr.mxu0 %v1110_v35  ;;  %v920_v18 = vld [vmem:[%s4619_s0 + $0x43] sm:$0xff] }
  0xbf   :  { %1156 = vmatpush1.msra.mxu0 %v1109_v3  ;;  %881 = vmatprep.mubr.f32.mxu0 %v4749_v17  ;;  %v1091_v35 = vld [vmem:[%s4619_s0 + $0x4] sm:$0xff]  ;;  %v1092_v3 = vld [vmem:[%s4619_s0 + $0xc] sm:$0xff] }
  0xc0   :  { %1055 = vmatmul.mubr.f32.gmra.mxu1 %v918_v51  ;;  %1157 = vmatprep.subr.mxu0 %v1108_v16  ;;  %v1093_v51 = vld [vmem:[%s4619_s0 + $0x14] sm:$0xff]  ;;  %v1094_v16 = vld [vmem:[%s4619_s0 + $0x1c] sm:$0xff] }
  0xc1   :  { %1158 = vmatpush1.msra.mxu0 %v1107_v49  ;;  %1060 = vmatprep.mubr.f32.mxu1 %v4749_v17  ;;  %v1095_v49 = vld [vmem:[%s4619_s0 + $0x24] sm:$0xff] }
  0xc2   :  { %882 = vmatmul.mubr.f32.gmra.mxu0 %v740_v1  ;;  %1159 = vmatprep.subr.mxu0 %v1106_v34  ;;  %v1096_v1 = vld [vmem:[%s4619_s0 + $0x2c] sm:$0xff]  ;;  %v1097_v34 = vld [vmem:[%s4619_s0 + $0x34] sm:$0xff] }
  0xc3   :  { %887 = vmatprep.mubr.f32.mxu0 %v4749_v17  ;;  %1160 = vmatpush1.msra.mxu0 %v1105_v33  ;;  %v1098_v33 = vld [vmem:[%s4619_s0 + $0x3c] sm:$0xff] }
  0xc4   :  { %1061 = vmatmul.mubr.f32.gmra.mxu1 %v919_v19  ;;  %1161 = vmatprep.subr.mxu0 %v1104_v32  ;;  %v1099_v19 = vld [vmem:[%s4619_s0 + $0x44] sm:$0xff] }
  0xc5   :  { %1066 = vmatprep.mubr.f32.mxu1 %v4749_v17  ;;  %1162 = vmatpush1.msra.mxu0 %v1103_v0 }
  0xc6   :  { %888 = vmatmul.mubr.f32.gmra.mxu0 %v741_v48  ;;  %1163 = vmatprep.subr.mxu0 %v1102_v2 }
  0xc7   :  { %1164 = vmatpush1.msra.mxu0 %v1101_v50  ;;  %1197 = vmatprep.mubr.f32.mxu0 %v4749_v17 }
  0xc8   :  { %1067 = vmatmul.mubr.f32.gmra.mxu1 %v920_v18 }
  0xca   :  { %1198 = vmatmul.mubr.f32.vlgmr.msra.gmra.mxu0 %v1091_v35 }
  0xcb   :  { %1203 = vmatprep.mubr.f32.mxu0 %v4749_v17 }
  0xce   :  { %1204 = vmatmul.mubr.f32.gmra.mxu0 %v1092_v3 }
  0xcf   :  { %1209 = vmatprep.mubr.f32.mxu0 %v4749_v17 }
  0xd2   :  { %1210 = vmatmul.mubr.f32.gmra.mxu0 %v1093_v51 }
  0xd3   :  { %1215 = vmatprep.mubr.f32.mxu0 %v4749_v17 }
  0xd6   :  { %1216 = vmatmul.mubr.f32.gmra.mxu0 %v1094_v16 }
  0xd7   :  { %1221 = vmatprep.mubr.f32.mxu0 %v4749_v17 }
  0xda   :  { %1222 = vmatmul.mubr.f32.gmra.mxu0 %v1095_v49 }
  0xdb   :  { %1227 = vmatprep.mubr.f32.mxu0 %v4749_v17 }
  0xde   :  { %1228 = vmatmul.mubr.f32.gmra.mxu0 %v1096_v1 }
  0xdf   :  { %1233 = vmatprep.mubr.f32.mxu0 %v4749_v17 }
  0xe2   :  { %1234 = vmatmul.mubr.f32.gmra.mxu0 %v1097_v34 }
  0xe3   :  { %1239 = vmatprep.mubr.f32.mxu0 %v4749_v17 }
  0xe6   :  { %1240 = vmatmul.mubr.f32.gmra.mxu0 %v1098_v33 }
  0xe7   :  { %1245 = vmatprep.mubr.f32.mxu0 %v4749_v17 }
  0xea   :  { %1246 = vmatmul.mubr.f32.gmra.mxu0 %v1099_v19 }
 0x134   :  { %v561_v32 = vpop.f32.mrf.mxu0 }
 0x135   :  { %v680_v0 = vpop.f32.mrf.mxu1 }
 0x136   :  { %v563_v48 = vpop.f32.mrf.mxu0  ;;  %v681_v63 = vadd.f32 %v680_v0, %v561_v32  ;;  %v4634_v32 = vsub.s32 1, %v4110_v47 }
 0x137   :  { %v682_v2 = vpop.f32.mrf.mxu1 }
 0x138   :  { %v4032_v50 = vpop.f32.mrf.mxu0 }
 0x139   :  { %v4034_v18 = vpop.f32.mrf.mxu1 }
 0x13a   :  { %v4036_v35 = vpop.f32.mrf.mxu0  ;;  %v687_v46 = vadd.f32 %v4034_v18, %v4032_v50 }
 0x13b   :  { %v4038_v3 = vpop.f32.mrf.mxu1 }
 0x13d   :  { %v4040_v51 = vpop.f32.mrf.mxu0  ;;  %v4042_v16 = vpop.f32.mrf.mxu1 }
 0x13f   :  { %v4044_v49 = vpop.f32.mrf.mxu0  ;;  %v4046_v1 = vpop.f32.mrf.mxu1 }
 0x142   :  { %v4048_v34 = vpop.f32.mrf.mxu0 }
 0x143   :  { %v4050_v33 = vpop.f32.mrf.mxu1 }
 0x144   :  { %v4052_v19 = vpop.f32.mrf.mxu0 }
 0x145   :  { %v4054_v36 = vpop.f32.mrf.mxu1 }
 0x148   :  { %v4056_v4 = vpop.f32.mrf.mxu0 }
 0x149   :  { %v4058_v52 = vpop.f32.mrf.mxu1 }
 0x14a   :  { %v4060_v20 = vpop.f32.mrf.mxu0 }
 0x14b   :  { %v4062_v37 = vpop.f32.mrf.mxu1 }
 0x14e   :  { %v4064_v5 = vpop.f32.mrf.mxu0 }
 0x14f   :  { %v4066_v53 = vpop.f32.mrf.mxu1 }
 0x150   :  { %v4068_v21 = vpop.f32.mrf.mxu0 }
 0x151   :  { %v4070_v38 = vpop.f32.mrf.mxu1 }
 0x154   :  { %v4072_v6 = vpop.f32.mrf.mxu0  ;;  %v4074_v54 = vpop.f32.mrf.mxu1 }
 0x156   :  { %v4076_v22 = vpop.f32.mrf.mxu0  ;;  %v4078_v39 = vpop.f32.mrf.mxu1 }
 0x15a   :  { %v4080_v7 = vpop.f32.mrf.mxu0  ;;  %v4082_v55 = vpop.f32.mrf.mxu1 }
 0x15c   :  { %v4084_v23 = vpop.f32.mrf.mxu0  ;;  %v4086_v40 = vpop.f32.mrf.mxu1 }
 0x15d   :  { %4750 = vst [vmem:[#allocation136_spill] sm:$0xff] %v4084_v23  ;;  %4751 = vst [vmem:[#allocation137_spill] sm:$0xff] %v4086_v40  ;;  %v1270_v40 = vld [vmem:[%s4621_s2] sm:$0x3] }
 0x15f   :  { %v4088_v8 = vpop.f32.mrf.mxu0 }
 0x160   :  { %4752 = vst [vmem:[#allocation138_spill] sm:$0xff] %v4088_v8  ;;  %v4090_v56 = vpop.f32.mrf.mxu1 }
 0x161   :  { %4753 = vst [vmem:[#allocation139_spill] sm:$0xff] %v4090_v56  ;;  %v4092_v24 = vpop.f32.mrf.mxu0  ;;  %v4635_v56 = vsub.s32 0, %v4110_v47 }
 0x162   :  { %4754 = vst [vmem:[#allocation140_spill] sm:$0xff] %v4092_v24  ;;  %v4094_v9 = vpop.f32.mrf.mxu1 }
 0x163   :  { %4755 = vst [vmem:[#allocation141_spill] sm:$0xff] %v4094_v9  ;;  %v683_v9 = vadd.f32 %v682_v2, %v563_v48  ;;  %v4135_v2 = vrot.slane %v1270_v40, %v4635_v56 }
 0x165   :  { %v841_v41 = vpop.f32.mrf.mxu0 }
 0x166   :  { %v894_v24 = vadd.f32 %v841_v41, %v681_v63  ;;  %v689_v41 = vadd.f32 %v4038_v3, %v4036_v35 }
 0x167   :  { %v843_v57 = vpop.f32.mrf.mxu0 }
 0x168   :  { %v1020_v25 = vpop.f32.mrf.mxu1  ;;  %v895_v23 = vadd.f32 %v843_v57, %v683_v9 }
 0x169   :  { %v847_v42 = vpop.f32.mrf.mxu0  ;;  %v1073_v63 = vadd.f32 %v1020_v25, %v894_v24  ;;  %v695_v25 = vadd.f32 %v4046_v1, %v4044_v49 }
 0x16a   :  { %v1022_v10 = vpop.f32.mrf.mxu1  ;;  %v896_v48 = vadd.f32 %v847_v42, %v687_v46 }
 0x16b   :  { %v849_v58 = vpop.f32.mrf.mxu0  ;;  %v1074_v9 = vadd.f32 %v1022_v10, %v895_v23  ;;  %v699_v10 = vadd.f32 %v4050_v33, %v4048_v34 }
 0x16c   :  { %v1026_v26 = vpop.f32.mrf.mxu1  ;;  %v897_v57 = vadd.f32 %v849_v58, %v689_v41 }
 0x16d   :  { %v1075_v42 = vadd.f32 %v1026_v26, %v896_v48 }
 0x16e   :  { %v853_v43 = vpop.f32.mrf.mxu0  ;;  %v1028_v11 = vpop.f32.mrf.mxu1 }
 0x16f   :  { %v1076_v58 = vadd.f32 %v1028_v11, %v897_v57  ;;  %v705_v57 = vadd.f32 %v4058_v52, %v4056_v4 }
 0x170   :  { %v855_v59 = vpop.f32.mrf.mxu0  ;;  %v1032_v44 = vpop.f32.mrf.mxu1 }
 0x172   :  { %v859_v27 = vpop.f32.mrf.mxu0  ;;  %v1034_v28 = vpop.f32.mrf.mxu1 }
 0x173   :  { %v900_v46 = vadd.f32 %v859_v27, %v699_v10 }
 0x174   :  { %v861_v12 = vpop.f32.mrf.mxu0  ;;  %v1038_v61 = vpop.f32.mrf.mxu1 }
 0x175   :  { %v1079_v27 = vadd.f32 %v1038_v61, %v900_v46 }
 0x176   :  { %v4096_v60 = vpop.f32.mrf.mxu0  ;;  %v4106_v62 = vpop.f32.mrf.mxu1 }
 0x178   :  { %v4098_v45 = vpop.f32.mrf.mxu0  ;;  %v4114_v31 = vpop.f32.mrf.mxu1 }
 0x17a   :  { %v4100_v13 = vpop.f32.mrf.mxu0  ;;  %v4127_v0 = vpop.f32.mrf.mxu1 }
 0x17c   :  { %v4102_v29 = vpop.f32.mrf.mxu0 }
 0x17e   :  { %v4104_v14 = vpop.f32.mrf.mxu0 }
 0x180   :  { %v4108_v30 = vpop.f32.mrf.mxu0 }
 0x181   :  { %4756 = vst [vmem:[#allocation142_spill] sm:$0xff] %v4108_v30  ;;  %v4143_v30 = vpop.f32.mrf.mxu1 }
 0x182   :  { %v4112_v15 = vpop.f32.mrf.mxu0 }
 0x183   :  { %4757 = vst [vmem:[#allocation143_spill] sm:$0xff] %v4112_v15  ;;  %v1052_v41 = vpop.f32.mrf.mxu1 }
 0x184   :  { %v4116_v17 = vpop.f32.mrf.mxu0 }
 0x185   :  { %4758 = vst [vmem:[#allocation144_spill] sm:$0xff] %v4116_v17  ;;  %v4141_v17 = vrot.slane %v1270_v40, %v4634_v32 }
 0x186   :  { %v4119_v8 = vpop.f32.mrf.mxu0 }
 0x187   :  { %4759 = vst [vmem:[#allocation145_spill] sm:$0xff] %v4119_v8  ;;  %v693_v8 = vadd.f32 %v4042_v16, %v4040_v51  ;;  %v899_v51 = vadd.f32 %v855_v59, %v695_v25  ;;  %v902_v25 = vadd.f32 %v4096_v60, %v705_v57  ;;  %v4763_v57 = vld [vmem:[#allocation137_spill] sm:$0xff] }
 0x188   :  { %v4129_v15 = vpop.f32.mrf.mxu0 }
 0x189   :  { %4760 = vst [vmem:[#allocation146_spill] sm:$0xff] %v4129_v15  ;;  %v898_v15 = vadd.f32 %v853_v43, %v693_v8  ;;  %v701_v8 = vadd.f32 %v4054_v36, %v4052_v19  ;;  %v1078_v33 = vadd.f32 %v1034_v28, %v899_v51  ;;  %v4159_v36 = vpop.f32.mrf.mxu1  ;;  %v711_v28 = vadd.f32 %v4066_v53, %v4064_v5 }
 0x18a   :  { %v1199_v50 = vpop.f32.mrf.mxu0 }
 0x18b   :  { %v1252_v18 = vadd.f32 %v1199_v50, %v1073_v63  ;;  %v1077_v43 = vadd.f32 %v1032_v44, %v898_v15  ;;  %v901_v50 = vadd.f32 %v861_v12, %v701_v8  ;;  %v707_v15 = vadd.f32 %v4062_v37, %v4060_v20  ;;  %v1058_v10 = vpop.f32.mrf.mxu1 }
 0x18c   :  { %v1201_v24 = vpop.f32.mrf.mxu0 }
 0x18d   :  { %v1282_v35 = vadd.f32 %v4135_v2, %v1252_v18  ;;  %v1253_v3 = vadd.f32 %v1201_v24, %v1074_v9  ;;  %v903_v20 = vadd.f32 %v4098_v45, %v707_v15  ;;  %v717_v45 = vadd.f32 %v4074_v54, %v4072_v6  ;;  %v1062_v54 = vpop.f32.mrf.mxu1 }
 0x18e   :  { %v1205_v23 = vpop.f32.mrf.mxu0 }
 0x18f   :  { %v1283_v40 = vadd.f32 %v4141_v17, %v1253_v3  ;;  %v1254_v16 = vadd.f32 %v1205_v23, %v1075_v42  ;;  %v1300_v26 = vmax.f32 %v1282_v35, 0.0  ;;  %v1080_v42 = vadd.f32 %v4106_v62, %v901_v50  ;;  %v4761_v50 = vld [vmem:[#allocation142_spill] sm:$0xff] }
 0x190   :  { %v1207_v49 = vpop.f32.mrf.mxu0  ;;  %v713_v35 = vadd.f32 %v4070_v38, %v4068_v21  ;;  %v904_v3 = vadd.f32 %v4100_v13, %v711_v28  ;;  %v1082_v38 = vadd.f32 %v4127_v0, %v903_v20  ;;  %v906_v0 = vadd.f32 %v4104_v14, %v717_v45 }
 0x191   :  { %v1301_v1 = vmax.f32 %v1283_v40, 0.0  ;;  %v1284_v63 = vadd.f32 %v4135_v2, %v1254_v16  ;;  %v1255_v48 = vadd.f32 %v1207_v49, %v1076_v58  ;;  %v719_v40 = vadd.f32 %v4078_v39, %v4076_v22 }
 0x192   :  { %v1211_v34 = vpop.f32.mrf.mxu0  ;;  %v1081_v16 = vadd.f32 %v4114_v31, %v902_v25  ;;  %v905_v21 = vadd.f32 %v4102_v29, %v713_v35  ;;  %v723_v49 = vadd.f32 %v4082_v55, %v4080_v7  ;;  %v1083_v6 = vadd.f32 %v4143_v30, %v904_v3 }
 0x193   :  { %v1318_v11 = vmax.f32 %v1300_v26, %v1301_v1  ;;  %v1285_v59 = vadd.f32 %v4141_v17, %v1255_v48  ;;  %v1256_v9 = vadd.f32 %v1211_v34, %v1077_v43  ;;  %v1302_v19 = vmax.f32 %v1284_v63, 0.0 }
 0x194   :  { %v1213_v44 = vpop.f32.mrf.mxu0  ;;  %v1084_v48 = vadd.f32 %v1052_v41, %v905_v21  ;;  %v907_v34 = vadd.f32 %v4761_v50, %v719_v40 }
 0x195   :  { %v1303_v18 = vmax.f32 %v1285_v59, 0.0  ;;  %v1286_v12 = vadd.f32 %v4135_v2, %v1256_v9  ;;  %v1257_v24 = vadd.f32 %v1213_v44, %v1078_v33  ;;  %v1337_v23 = vrot.slane %v1318_v11, 1  ;;  %v4762_v9 = vld [vmem:[#allocation136_spill] sm:$0xff] }
 0x196   :  { %v1217_v4 = vpop.f32.mrf.mxu0  ;;  %v725_v15 = vadd.f32 %v4763_v57, %v4762_v9 }
 0x197   :  { %v1319_v37 = vmax.f32 %v1302_v19, %v1303_v18  ;;  %v1287_v52 = vadd.f32 %v4141_v17, %v1257_v24  ;;  %v1258_v61 = vadd.f32 %v1217_v4, %v1079_v27  ;;  %v1304_v5 = vmax.f32 %v1286_v12, 0.0  ;;  %v4764_v27 = vld [vmem:[#allocation143_spill] sm:$0xff]  ;;  %v1064_v19 = vpop.f32.mrf.mxu1 }
 0x198   :  { %v1219_v53 = vpop.f32.mrf.mxu0  ;;  %v908_v44 = vadd.f32 %v4764_v27, %v723_v49  ;;  %v4766_v4 = vld [vmem:[#allocation139_spill] sm:$0xff] }
 0x199   :  { %v1338_v60 = vrot.slane %v1319_v37, 1  ;;  %v1305_v58 = vmax.f32 %v1287_v52, 0.0  ;;  %v1288_v62 = vadd.f32 %v4135_v2, %v1258_v61  ;;  %v1259_v51 = vadd.f32 %v1219_v53, %v1080_v42  ;;  %v4765_v42 = vld [vmem:[#allocation138_spill] sm:$0xff]  ;;  %v4767_v61 = vld [vmem:[#allocation144_spill] sm:$0xff]  ;;  %v1068_v45 = vpop.f32.mrf.mxu1 }
 0x19a   :  { %v1223_v13 = vpop.f32.mrf.mxu0  ;;  %v729_v20 = vadd.f32 %v4766_v4, %v4765_v42  ;;  %v1085_v52 = vadd.f32 %v4159_v36, %v906_v0  ;;  %v909_v35 = vadd.f32 %v4767_v61, %v725_v15 }
 0x19b   :  { %v1339_v8 = vsel %vm1336_vm0, %v1337_v23, %v1338_v60  ;;  %v1320_v43 = vmax.f32 %v1304_v5, %v1305_v58  ;;  %v1289_v46 = vadd.f32 %v4141_v17, %v1259_v51  ;;  %v1260_v22 = vadd.f32 %v1223_v13, %v1081_v16  ;;  %v4769_v58 = vld [vmem:[#allocation141_spill] sm:$0xff] }
 0x19c   :  { %v1362_v26 = vmax.f32 %v1318_v11, %v1339_v8  ;;  %v1225_v39 = vpop.f32.mrf.mxu0  ;;  %v1306_v1 = vmax.f32 %v1288_v62, 0.0  ;;  %v1086_v23 = vadd.f32 %v1058_v10, %v907_v34  ;;  %v1087_v51 = vadd.f32 %v1062_v54, %v908_v44 }
 0x19d   :  { %v1340_v31 = vrot.slane %v1320_v43, 1  ;;  %v1307_v29 = vmax.f32 %v1289_v46, 0.0  ;;  %v1261_v63 = vadd.f32 %v1225_v39, %v1082_v38  ;;  %v1290_v33 = vadd.f32 %v4135_v2, %v1260_v22  ;;  %v4770_v46 = vld [vmem:[#allocation145_spill] sm:$0xff] }
 0x19e   :  { %1370 = vst [vmem:[#allocation2] sm:$0xff] %v1362_v26  ;;  %v1229_v59 = vpop.f32.mrf.mxu0  ;;  %v910_v49 = vadd.f32 %v4770_v46, %v729_v20  ;;  %v1088_v10 = vadd.f32 %v1064_v19, %v909_v35 }
 0x19f   :  { %v1341_v7 = vsel %vm1336_vm0, %v1338_v60, %v1340_v31  ;;  %v1321_v30 = vmax.f32 %v1306_v1, %v1307_v29  ;;  %v1291_v55 = vadd.f32 %v4141_v17, %v1261_v63  ;;  %v1262_v11 = vadd.f32 %v1229_v59, %v1083_v6  ;;  %v4768_v60 = vld [vmem:[#allocation140_spill] sm:$0xff]  ;;  %v4771_v6 = vld [vmem:[#allocation146_spill] sm:$0xff]  ;;  %v1070_v29 = vpop.f32.mrf.mxu1 }
 0x1a0   :  { %v1363_v14 = vmax.f32 %v1319_v37, %v1341_v7  ;;  %v1308_v41 = vmax.f32 %v1290_v33, 0.0  ;;  %v1231_v18 = vpop.f32.mrf.mxu0  ;;  %v731_v62 = vadd.f32 %v4769_v58, %v4768_v60  ;;  %v1089_v7 = vadd.f32 %v1068_v45, %v910_v49 }
 0x1a1   :  { %v1342_v12 = vrot.slane %v1321_v30, 1  ;;  %v1309_v24 = vmax.f32 %v1291_v55, 0.0  ;;  %v1292_v28 = vadd.f32 %v4135_v2, %v1262_v11  ;;  %v1263_v25 = vadd.f32 %v1231_v18, %v1084_v48 }
 0x1a2   :  { %1371 = vst [vmem:[#allocation2 + $0x8] sm:$0xff] %v1363_v14  ;;  %v1235_v3 = vpop.f32.mrf.mxu0  ;;  %v911_v26 = vadd.f32 %v4771_v6, %v731_v62 }
 0x1a3   :  { %v1343_v5 = vsel %vm1336_vm0, %v1340_v31, %v1342_v12  ;;  %v1322_v37 = vmax.f32 %v1308_v41, %v1309_v24  ;;  %v1293_v53 = vadd.f32 %v4141_v17, %v1263_v25  ;;  %v1264_v16 = vadd.f32 %v1235_v3, %v1085_v52 }
 0x1a4   :  { %v1364_v40 = vmax.f32 %v1320_v43, %v1343_v5  ;;  %v1237_v21 = vpop.f32.mrf.mxu0  ;;  %v1310_v36 = vmax.f32 %v1292_v28, 0.0  ;;  %v1090_v11 = vadd.f32 %v1070_v29, %v911_v26 }
 0x1a5   :  { %v1344_v13 = vrot.slane %v1322_v37, 1  ;;  %v1311_v38 = vmax.f32 %v1293_v53, 0.0  ;;  %v1265_v8 = vadd.f32 %v1237_v21, %v1086_v23  ;;  %v1294_v22 = vadd.f32 %v4135_v2, %v1264_v16 }
 0x1a6   :  { %1372 = vst [vmem:[#allocation2 + $0x10] sm:$0xff] %v1364_v40  ;;  %v1241_v39 = vpop.f32.mrf.mxu0 }
 0x1a7   :  { %v1345_v31 = vsel %vm1336_vm0, %v1342_v12, %v1344_v13  ;;  %v1323_v54 = vmax.f32 %v1310_v36, %v1311_v38  ;;  %v1295_v43 = vadd.f32 %v4141_v17, %v1265_v8  ;;  %v1266_v1 = vadd.f32 %v1241_v39, %v1087_v51 }
 0x1a8   :  { %v1365_v63 = vmax.f32 %v1321_v30, %v1345_v31  ;;  %v1312_v0 = vmax.f32 %v1294_v22, 0.0  ;;  %v1243_v48 = vpop.f32.mrf.mxu0 }
 0x1a9   :  { %v1346_v50 = vrot.slane %v1323_v54, 1  ;;  %v1313_v34 = vmax.f32 %v1295_v43, 0.0  ;;  %v1296_v33 = vadd.f32 %v4135_v2, %v1266_v1  ;;  %v1267_v59 = vadd.f32 %v1243_v48, %v1088_v10 }
 0x1aa   :  { %1373 = vst [vmem:[#allocation2 + $0x18] sm:$0xff] %v1365_v63  ;;  %v1247_v55 = vpop.f32.mrf.mxu0 }
 0x1ab   :  { %v1347_v9 = vsel %vm1336_vm0, %v1344_v13, %v1346_v50  ;;  %v1324_v57 = vmax.f32 %v1312_v0, %v1313_v34  ;;  %v1297_v15 = vadd.f32 %v4141_v17, %v1267_v59  ;;  %v1268_v44 = vadd.f32 %v1247_v55, %v1089_v7 }
 0x1ac   :  { %v1366_v27 = vmax.f32 %v1322_v37, %v1347_v9  ;;  %v1249_v19 = vpop.f32.mrf.mxu0  ;;  %v1314_v14 = vmax.f32 %v1296_v33, 0.0 }
 0x1ad   :  { %v1348_v30 = vrot.slane %v1324_v57, 1  ;;  %v1315_v41 = vmax.f32 %v1297_v15, 0.0  ;;  %v1269_v18 = vadd.f32 %v1249_v19, %v1090_v11  ;;  %v1298_v12 = vadd.f32 %v4135_v2, %v1268_v44 }
 0x1ae   :  { %1374 = vst [vmem:[#allocation2 + $0x20] sm:$0xff] %v1366_v27 }
 0x1af   :  { %v1349_v24 = vsel %vm1336_vm0, %v1346_v50, %v1348_v30  ;;  %v1325_v28 = vmax.f32 %v1314_v14, %v1315_v41  ;;  %v1299_v25 = vadd.f32 %v4141_v17, %v1269_v18  ;;  %v1316_v20 = vmax.f32 %v1298_v12, 0.0 }
 0x1b0   :  { %v1367_v42 = vmax.f32 %v1323_v54, %v1349_v24 }
 0x1b1   :  { %v1350_v4 = vrot.slane %v1325_v28, 1  ;;  %v1317_v52 = vmax.f32 %v1299_v25, 0.0 }
 0x1b2   :  { %1375 = vst [vmem:[#allocation2 + $0x28] sm:$0xff] %v1367_v42 }
 0x1b3   :  { %v1351_v61 = vsel %vm1336_vm0, %v1348_v30, %v1350_v4  ;;  %v1326_v35 = vmax.f32 %v1316_v20, %v1317_v52 }
 0x1b4   :  { %v1368_v3 = vmax.f32 %v1324_v57, %v1351_v61 }
 0x1b5   :  { %v1352_v23 = vrot.slane %v1326_v35, 1 }
 0x1b6   :  { %1376 = vst [vmem:[#allocation2 + $0x30] sm:$0xff] %v1368_v3 }
 0x1b7   :  { %v1353_v5 = vsel %vm1336_vm0, %v1350_v4, %v1352_v23 }
 0x1b8   :  { %v1369_v37 = vmax.f32 %v1325_v28, %v1353_v5 }
 0x1ba   :  { %1377 = vst [vmem:[#allocation2 + $0x38] sm:$0xff] %v1369_v37 }
 0x1bb   :  { %3205 = dma.done.wait [#allocation9], 20480 }
 0x1bc   :  { %3206 = vsyncadd [#allocation9], 4294946816  ;;  %v4772_v2 = vmov 0.0   ;;  %v1465_v17 = vld [vmem:[#allocation5 + $0x1f8] sm:$0xff]  ;;  %v1464_v60 = vld [vmem:[#allocation5 + $0x1f0] sm:$0xff]  ;;  %vm2307_vm1 = vcmask 1045504  }
 0x1bd   :  { %1530 = vmatprep.mubr.f32.mxu1 %v4772_v2  ;;  %1649 = vmatprep.mubr.f32.mxu0 %v4772_v2  ;;  %v1423_v53 = vld [vmem:[#allocation5 + $0xf8] sm:$0xff]  ;;  %v1422_v58 = vld [vmem:[#allocation5 + $0xf0] sm:$0xff]  ;;  %v1463_v62 = vld [vmem:[#allocation5 + $0x1e8] sm:$0xff] }
 0x1be   :  { %1466 = vmatprep.subr.mxu1 %v1465_v17  ;;  %1585 = vmatprep.subr.mxu0 %v1423_v53  ;;  %v1421_v51 = vld [vmem:[#allocation5 + $0xe8] sm:$0xff]  ;;  %v1462_v45 = vld [vmem:[#allocation5 + $0x1e0] sm:$0xff]  ;;  %v1461_v16 = vld [vmem:[#allocation5 + $0x1d8] sm:$0xff] }
 0x1bf   :  { %1467 = vmatpush1.msra.mxu1 %v1464_v60  ;;  %1586 = vmatpush1.msra.mxu0 %v1422_v58  ;;  %v1420_v40 = vld [vmem:[#allocation5 + $0xe0] sm:$0xff]  ;;  %v1419_v21 = vld [vmem:[#allocation5 + $0xd8] sm:$0xff]  ;;  %v1460_v13 = vld [vmem:[#allocation5 + $0x1d0] sm:$0xff] }
 0x1c0   :  { %1468 = vmatprep.subr.mxu1 %v1463_v62  ;;  %1587 = vmatprep.subr.mxu0 %v1421_v51  ;;  %v1418_v36 = vld [vmem:[#allocation5 + $0xd0] sm:$0xff]  ;;  %v1459_v38 = vld [vmem:[#allocation5 + $0x1c8] sm:$0xff]  ;;  %v1458_v46 = vld [vmem:[#allocation5 + $0x1c0] sm:$0xff] }
 0x1c1   :  { %1469 = vmatpush1.msra.mxu1 %v1462_v45  ;;  %1588 = vmatpush1.msra.mxu0 %v1420_v40  ;;  %v1417_v8 = vld [vmem:[#allocation5 + $0xc8] sm:$0xff]  ;;  %v1416_v49 = vld [vmem:[#allocation5 + $0xc0] sm:$0xff]  ;;  %v1457_v10 = vld [vmem:[#allocation5 + $0x1b8] sm:$0xff] }
 0x1c2   :  { %1470 = vmatprep.subr.mxu1 %v1461_v16  ;;  %1589 = vmatprep.subr.mxu0 %v1419_v21  ;;  %v1415_v6 = vld [vmem:[#allocation5 + $0xb8] sm:$0xff]  ;;  %v1456_v26 = vld [vmem:[#allocation5 + $0x1b0] sm:$0xff]  ;;  %v1455_v39 = vld [vmem:[#allocation5 + $0x1a8] sm:$0xff] }
 0x1c3   :  { %1471 = vmatpush1.msra.mxu1 %v1460_v13  ;;  %1590 = vmatpush1.msra.mxu0 %v1418_v36  ;;  %v1414_v22 = vld [vmem:[#allocation5 + $0xb0] sm:$0xff]  ;;  %v1413_v31 = vld [vmem:[#allocation5 + $0xa8] sm:$0xff]  ;;  %v1454_v54 = vld [vmem:[#allocation5 + $0x1a0] sm:$0xff] }
 0x1c4   :  { %1472 = vmatprep.subr.mxu1 %v1459_v38  ;;  %1591 = vmatprep.subr.mxu0 %v1417_v8  ;;  %v1412_v43 = vld [vmem:[#allocation5 + $0xa0] sm:$0xff]  ;;  %v1453_v1 = vld [vmem:[#allocation5 + $0x198] sm:$0xff]  ;;  %v1452_v63 = vld [vmem:[#allocation5 + $0x190] sm:$0xff] }
 0x1c5   :  { %1473 = vmatpush1.msra.mxu1 %v1458_v46  ;;  %1592 = vmatpush1.msra.mxu0 %v1416_v49  ;;  %v1411_v29 = vld [vmem:[#allocation5 + $0x98] sm:$0xff]  ;;  %v1410_v0 = vld [vmem:[#allocation5 + $0x90] sm:$0xff]  ;;  %v1451_v48 = vld [vmem:[#allocation5 + $0x188] sm:$0xff] }
 0x1c6   :  { %1474 = vmatprep.subr.mxu1 %v1457_v10  ;;  %1593 = vmatprep.subr.mxu0 %v1415_v6  ;;  %v1409_v50 = vld [vmem:[#allocation5 + $0x88] sm:$0xff]  ;;  %v1450_v34 = vld [vmem:[#allocation5 + $0x180] sm:$0xff]  ;;  %v1449_v59 = vld [vmem:[#allocation5 + $0x178] sm:$0xff] }
 0x1c7   :  { %1475 = vmatpush1.msra.mxu1 %v1456_v26  ;;  %1594 = vmatpush1.msra.mxu0 %v1414_v22  ;;  %v1408_v33 = vld [vmem:[#allocation5 + $0x80] sm:$0xff]  ;;  %v1407_v7 = vld [vmem:[#allocation5 + $0x78] sm:$0xff]  ;;  %v1448_v55 = vld [vmem:[#allocation5 + $0x170] sm:$0xff] }
 0x1c8   :  { %1476 = vmatprep.subr.mxu1 %v1455_v39  ;;  %1595 = vmatprep.subr.mxu0 %v1413_v31  ;;  %v1406_v11 = vld [vmem:[#allocation5 + $0x70] sm:$0xff]  ;;  %v1447_v9 = vld [vmem:[#allocation5 + $0x168] sm:$0xff]  ;;  %v1446_v15 = vld [vmem:[#allocation5 + $0x160] sm:$0xff] }
 0x1c9   :  { %1477 = vmatpush1.msra.mxu1 %v1454_v54  ;;  %1596 = vmatpush1.msra.mxu0 %v1412_v43  ;;  %v1405_v57 = vld [vmem:[#allocation5 + $0x68] sm:$0xff]  ;;  %v1404_v27 = vld [vmem:[#allocation5 + $0x60] sm:$0xff]  ;;  %v1445_v44 = vld [vmem:[#allocation5 + $0x158] sm:$0xff] }
 0x1ca   :  { %1478 = vmatprep.subr.mxu1 %v1453_v1  ;;  %1597 = vmatprep.subr.mxu0 %v1411_v29  ;;  %v1403_v19 = vld [vmem:[#allocation5 + $0x58] sm:$0xff]  ;;  %v1444_v30 = vld [vmem:[#allocation5 + $0x150] sm:$0xff]  ;;  %v1443_v41 = vld [vmem:[#allocation5 + $0x148] sm:$0xff] }
 0x1cb   :  { %1479 = vmatpush1.msra.mxu1 %v1452_v63  ;;  %1598 = vmatpush1.msra.mxu0 %v1410_v0  ;;  %v1402_v14 = vld [vmem:[#allocation5 + $0x50] sm:$0xff]  ;;  %v1401_v18 = vld [vmem:[#allocation5 + $0x48] sm:$0xff]  ;;  %v1442_v12 = vld [vmem:[#allocation5 + $0x140] sm:$0xff] }
 0x1cc   :  { %1480 = vmatprep.subr.mxu1 %v1451_v48  ;;  %1599 = vmatprep.subr.mxu0 %v1409_v50  ;;  %v1400_v24 = vld [vmem:[#allocation5 + $0x40] sm:$0xff]  ;;  %v1441_v28 = vld [vmem:[#allocation5 + $0x138] sm:$0xff]  ;;  %v1440_v42 = vld [vmem:[#allocation5 + $0x130] sm:$0xff] }
 0x1cd   :  { %1481 = vmatpush1.msra.mxu1 %v1450_v34  ;;  %1600 = vmatpush1.msra.mxu0 %v1408_v33  ;;  %v1399_v25 = vld [vmem:[#allocation5 + $0x38] sm:$0xff]  ;;  %v1398_v4 = vld [vmem:[#allocation5 + $0x30] sm:$0xff]  ;;  %v1439_v20 = vld [vmem:[#allocation5 + $0x128] sm:$0xff] }
 0x1ce   :  { %1482 = vmatprep.subr.mxu1 %v1449_v59  ;;  %1601 = vmatprep.subr.mxu0 %v1407_v7  ;;  %v1397_v52 = vld [vmem:[#allocation5 + $0x28] sm:$0xff]  ;;  %v1438_v61 = vld [vmem:[#allocation5 + $0x120] sm:$0xff]  ;;  %v1437_v3 = vld [vmem:[#allocation5 + $0x118] sm:$0xff] }
 0x1cf   :  { %1483 = vmatpush1.msra.mxu1 %v1448_v55  ;;  %1602 = vmatpush1.msra.mxu0 %v1406_v11  ;;  %v1396_v35 = vld [vmem:[#allocation5 + $0x20] sm:$0xff]  ;;  %v1395_v23 = vld [vmem:[#allocation5 + $0x18] sm:$0xff]  ;;  %v1436_v5 = vld [vmem:[#allocation5 + $0x110] sm:$0xff] }
 0x1d0   :  { %1484 = vmatprep.subr.mxu1 %v1447_v9  ;;  %1603 = vmatprep.subr.mxu0 %v1405_v57  ;;  %v1394_v37 = vld [vmem:[#allocation5 + $0x10] sm:$0xff]  ;;  %v1435_v17 = vld [vmem:[#allocation5 + $0x108] sm:$0xff]  ;;  %v1434_v60 = vld [vmem:[#allocation5 + $0x100] sm:$0xff] }
 0x1d1   :  { %1485 = vmatpush1.msra.mxu1 %v1446_v15  ;;  %1604 = vmatpush1.msra.mxu0 %v1404_v27  ;;  %v1393_v53 = vld [vmem:[#allocation5 + $0x8] sm:$0xff]  ;;  %v1392_v58 = vld [vmem:[#allocation5] sm:$0xff]  ;;  %v1745_v45 = vld [vmem:[#allocation5 + $0x2f8] sm:$0xff] }
 0x1d2   :  { %1486 = vmatprep.subr.mxu1 %v1445_v44  ;;  %1605 = vmatprep.subr.mxu0 %v1403_v19  ;;  %v1424_v62 = vld [vmem:[#allocation2 + $0x2] sm:$0xff]  ;;  %v1924_v21 = vld [vmem:[#allocation5 + $0x3f8] sm:$0xff]  ;;  %v1742_v38 = vld [vmem:[#allocation5 + $0x2e0] sm:$0xff] }
 0x1d3   :  { %1487 = vmatpush1.msra.mxu1 %v1444_v30  ;;  %1606 = vmatpush1.msra.mxu0 %v1402_v14  ;;  %v1383_v51 = vld [vmem:[#allocation2] sm:$0xff]  ;;  %v1744_v40 = vld [vmem:[#allocation5 + $0x2f0] sm:$0xff]  ;;  %v1741_v8 = vld [vmem:[#allocation5 + $0x2d8] sm:$0xff] }
 0x1d4   :  { %1488 = vmatprep.subr.mxu1 %v1443_v41  ;;  %1607 = vmatprep.subr.mxu0 %v1401_v18  ;;  %v1743_v16 = vld [vmem:[#allocation5 + $0x2e8] sm:$0xff]  ;;  %v1425_v13 = vld [vmem:[#allocation2 + $0xa] sm:$0xff]  ;;  %v1426_v6 = vld [vmem:[#allocation2 + $0x12] sm:$0xff] }
 0x1d5   :  { %1489 = vmatpush1.msra.mxu1 %v1442_v12  ;;  %1608 = vmatpush1.msra.mxu0 %v1400_v24  ;;  %v4217_v36 = vld [vmem:[#allocation2 + $0x8] sm:$0xff]  ;;  %v1739_v10 = vld [vmem:[#allocation5 + $0x2c8] sm:$0xff]  ;;  %v4223_v26 = vld [vmem:[#allocation2 + $0x10] sm:$0xff] }
 0x1d6   :  { %1490 = vmatprep.subr.mxu1 %v1441_v28  ;;  %1609 = vmatprep.subr.mxu0 %v1399_v25  ;;  %v1740_v46 = vld [vmem:[#allocation5 + $0x2d0] sm:$0xff]  ;;  %v1738_v22 = vld [vmem:[#allocation5 + $0x2c0] sm:$0xff]  ;;  %v1922_v39 = vld [vmem:[#allocation5 + $0x3e8] sm:$0xff] }
 0x1d7   :  { %1491 = vmatpush1.msra.mxu1 %v1440_v42  ;;  %1610 = vmatpush1.msra.mxu0 %v1398_v4  ;;  %v1923_v49 = vld [vmem:[#allocation5 + $0x3f0] sm:$0xff]  ;;  %v1737_v31 = vld [vmem:[#allocation5 + $0x2b8] sm:$0xff]  ;;  %v1921_v54 = vld [vmem:[#allocation5 + $0x3e0] sm:$0xff] }
 0x1d8   :  { %1492 = vmatprep.subr.mxu1 %v1439_v20  ;;  %1611 = vmatprep.subr.mxu0 %v1397_v52  ;;  %v1736_v43 = vld [vmem:[#allocation5 + $0x2b0] sm:$0xff]  ;;  %v1920_v1 = vld [vmem:[#allocation5 + $0x3d8] sm:$0xff]  ;;  %v1427_v63 = vld [vmem:[#allocation2 + $0x1a] sm:$0xff] }
 0x1d9   :  { %1493 = vmatpush1.msra.mxu1 %v1438_v61  ;;  %1612 = vmatpush1.msra.mxu0 %v1396_v35  ;;  %v1919_v29 = vld [vmem:[#allocation5 + $0x3d0] sm:$0xff]  ;;  %v4226_v0 = vld [vmem:[#allocation2 + $0x18] sm:$0xff]  ;;  %v1735_v48 = vld [vmem:[#allocation5 + $0x2a8] sm:$0xff] }
 0x1da   :  { %1494 = vmatprep.subr.mxu1 %v1437_v3  ;;  %1613 = vmatprep.subr.mxu0 %v1395_v23  ;;  %v1918_v50 = vld [vmem:[#allocation5 + $0x3c8] sm:$0xff]  ;;  %v1734_v34 = vld [vmem:[#allocation5 + $0x2a0] sm:$0xff]  ;;  %v1733_v59 = vld [vmem:[#allocation5 + $0x298] sm:$0xff] }
 0x1db   :  { %1495 = vmatpush1.msra.mxu1 %v1436_v5  ;;  %1614 = vmatpush1.msra.mxu0 %v1394_v37  ;;  %v1917_v33 = vld [vmem:[#allocation5 + $0x3c0] sm:$0xff]  ;;  %v1916_v7 = vld [vmem:[#allocation5 + $0x3b8] sm:$0xff]  ;;  %v1732_v55 = vld [vmem:[#allocation5 + $0x290] sm:$0xff] }
 0x1dc   :  { %1496 = vmatprep.subr.mxu1 %v1435_v17  ;;  %1615 = vmatprep.subr.mxu0 %v1393_v53  ;;  %v1915_v11 = vld [vmem:[#allocation5 + $0x3b0] sm:$0xff]  ;;  %v4231_v57 = vld [vmem:[#allocation2 + $0x20] sm:$0xff]  ;;  %v1730_v44 = vld [vmem:[#allocation5 + $0x280] sm:$0xff] }
 0x1dd   :  { %1497 = vmatpush1.msra.mxu1 %v1434_v60  ;;  %1616 = vmatpush1.msra.mxu0 %v1392_v58  ;;  %v1428_v9 = vld [vmem:[#allocation2 + $0x22] sm:$0xff]  ;;  %v1913_v19 = vld [vmem:[#allocation5 + $0x3a0] sm:$0xff]  ;;  %v1729_v30 = vld [vmem:[#allocation5 + $0x278] sm:$0xff] }
 0x1de   :  { %1531 = vmatmul.mubr.f32.vlgmr.msra.gmra.mxu1 %v1424_v62  ;;  %1650 = vmatmul.mubr.f32.vlgmr.msra.gmra.mxu0 %v1383_v51  ;;  %v1731_v15 = vld [vmem:[#allocation5 + $0x288] sm:$0xff]  ;;  %v1912_v14 = vld [vmem:[#allocation5 + $0x398] sm:$0xff]  ;;  %v1728_v41 = vld [vmem:[#allocation5 + $0x270] sm:$0xff] }
 0x1df   :  { %1746 = vmatprep.subr.mxu1 %v1745_v45  ;;  %1536 = vmatprep.mubr.f32.mxu1 %v4772_v2  ;;  %v1914_v27 = vld [vmem:[#allocation5 + $0x3a8] sm:$0xff]  ;;  %v1911_v18 = vld [vmem:[#allocation5 + $0x390] sm:$0xff]  ;;  %v1909_v42 = vld [vmem:[#allocation5 + $0x380] sm:$0xff] }
 0x1e0   :  { %1747 = vmatpush1.msra.mxu1 %v1744_v40  ;;  %1655 = vmatprep.mubr.f32.mxu0 %v4772_v2  ;;  %v1429_v12 = vld [vmem:[#allocation2 + $0x2a] sm:$0xff]  ;;  %v1910_v28 = vld [vmem:[#allocation5 + $0x388] sm:$0xff]  ;;  %v1726_v4 = vld [vmem:[#allocation5 + $0x260] sm:$0xff] }
 0x1e1   :  { %1748 = vmatprep.subr.mxu1 %v1743_v16  ;;  %1925 = vmatprep.subr.mxu0 %v1924_v21  ;;  %v4236_v24 = vld [vmem:[#allocation2 + $0x28] sm:$0xff]  ;;  %v1727_v25 = vld [vmem:[#allocation5 + $0x268] sm:$0xff]  ;;  %v1908_v20 = vld [vmem:[#allocation5 + $0x378] sm:$0xff] }
 0x1e2   :  { %1537 = vmatmul.mubr.f32.gmra.mxu1 %v1425_v13  ;;  %1656 = vmatmul.mubr.f32.gmra.mxu0 %v4217_v36  ;;  %v1725_v52 = vld [vmem:[#allocation5 + $0x258] sm:$0xff]  ;;  %v1907_v61 = vld [vmem:[#allocation5 + $0x370] sm:$0xff]  ;;  %v1906_v5 = vld [vmem:[#allocation5 + $0x368] sm:$0xff] }
 0x1e3   :  { %1749 = vmatpush1.msra.mxu1 %v1742_v38  ;;  %1542 = vmatprep.mubr.f32.mxu1 %v4772_v2  ;;  %v1430_v35 = vld [vmem:[#allocation2 + $0x32] sm:$0xff]  ;;  %v1724_v23 = vld [vmem:[#allocation5 + $0x250] sm:$0xff]  ;;  %v1723_v37 = vld [vmem:[#allocation5 + $0x248] sm:$0xff] }
 0x1e4   :  { %1750 = vmatprep.subr.mxu1 %v1741_v8  ;;  %1661 = vmatprep.mubr.f32.mxu0 %v4772_v2  ;;  %v4242_v3 = vld [vmem:[#allocation2 + $0x30] sm:$0xff]  ;;  %v1905_v17 = vld [vmem:[#allocation5 + $0x360] sm:$0xff]  ;;  %v1903_v62 = vld [vmem:[#allocation5 + $0x350] sm:$0xff] }
 0x1e5   :  { %1751 = vmatpush1.msra.mxu1 %v1740_v46  ;;  %1926 = vmatpush1.msra.mxu0 %v1923_v49  ;;  %v1722_v53 = vld [vmem:[#allocation5 + $0x240] sm:$0xff]  ;;  %v1904_v60 = vld [vmem:[#allocation5 + $0x358] sm:$0xff]  ;;  %v1720_v40 = vld [vmem:[#allocation5 + $0x230] sm:$0xff] }
 0x1e6   :  { %1752 = vmatprep.subr.mxu1 %v1739_v10  ;;  %1543 = vmatmul.mubr.f32.gmra.mxu1 %v1426_v6  ;;  %v1721_v58 = vld [vmem:[#allocation5 + $0x238] sm:$0xff]  ;;  %v1431_v51 = vld [vmem:[#allocation2 + $0x3a] sm:$0xff]  ;;  %v1899_v46 = vld [vmem:[#allocation5 + $0x330] sm:$0xff] }
 0x1e7   :  { %1662 = vmatmul.mubr.f32.gmra.mxu0 %v4223_v26  ;;  %1753 = vmatpush1.msra.mxu1 %v1738_v22  ;;  %v4247_v45 = vld [vmem:[#allocation2 + $0x38] sm:$0xff]  ;;  %v1902_v16 = vld [vmem:[#allocation5 + $0x348] sm:$0xff]  ;;  %v1900_v38 = vld [vmem:[#allocation5 + $0x338] sm:$0xff] }
 0x1e8   :  { %1927 = vmatprep.subr.mxu0 %v1922_v39  ;;  %1754 = vmatprep.subr.mxu1 %v1737_v31  ;;  %v1719_v21 = vld [vmem:[#allocation5 + $0x228] sm:$0xff]  ;;  %v1901_v13 = vld [vmem:[#allocation5 + $0x340] sm:$0xff]  ;;  %v1717_v6 = vld [vmem:[#allocation5 + $0x218] sm:$0xff] }
 0x1e9   :  { %1928 = vmatpush1.msra.mxu0 %v1921_v54  ;;  %1755 = vmatpush1.msra.mxu1 %v1736_v43  ;;  %v1718_v8 = vld [vmem:[#allocation5 + $0x220] sm:$0xff]  ;;  %v1432_v49 = vld [vmem:[#allocation2 + $0x42] sm:$0xff]  ;;  %v1896_v43 = vld [vmem:[#allocation5 + $0x318] sm:$0xff] }
 0x1ea   :  { %1929 = vmatprep.subr.mxu0 %v1920_v1  ;;  %1548 = vmatprep.mubr.f32.mxu1 %v4772_v2  ;;  %v4252_v10 = vld [vmem:[#allocation2 + $0x40] sm:$0xff]  ;;  %v1716_v39 = vld [vmem:[#allocation5 + $0x210] sm:$0xff]  ;;  %v1897_v31 = vld [vmem:[#allocation5 + $0x320] sm:$0xff] }
 0x1eb   :  { %1667 = vmatprep.mubr.f32.mxu0 %v4772_v2  ;;  %1930 = vmatpush1.msra.mxu0 %v1919_v29  ;;  %v1898_v22 = vld [vmem:[#allocation5 + $0x328] sm:$0xff]  ;;  %v1714_v1 = vld [vmem:[#allocation5 + $0x200] sm:$0xff]  ;;  %v1895_v29 = vld [vmem:[#allocation5 + $0x310] sm:$0xff] }
 0x1ec   :  { %1549 = vmatmul.mubr.f32.gmra.mxu1 %v1427_v63  ;;  %1668 = vmatmul.mubr.f32.gmra.mxu0 %v4226_v0  ;;  %v1715_v54 = vld [vmem:[#allocation5 + $0x208] sm:$0xff] }
 0x1ed   :  { %1756 = vmatprep.subr.mxu1 %v1735_v48  ;;  %1931 = vmatprep.subr.mxu0 %v1918_v50  ;;  %v1704_v63 = vld [vmem:[#allocation2 + $0x4] sm:$0xff]  ;;  %v2103_v50 = vld [vmem:[#allocation5 + $0x4f8] sm:$0xff]  ;;  %v2241_v56 = vld [vmem:[%s4623_s4] sm:$0x3] }
 0x1ee   :  { %1757 = vmatpush1.msra.mxu1 %v1734_v34  ;;  %1932 = vmatpush1.msra.mxu0 %v1917_v33  ;;  %v1894_v48 = vld [vmem:[#allocation5 + $0x308] sm:$0xff]  ;;  %v1893_v34 = vld [vmem:[#allocation5 + $0x300] sm:$0xff]  ;;  %v2102_v33 = vld [vmem:[#allocation5 + $0x4f0] sm:$0xff] }
 0x1ef   :  { %1758 = vmatprep.subr.mxu1 %v1733_v59  ;;  %1933 = vmatprep.subr.mxu0 %v1916_v7  ;;  %v1883_v59 = vld [vmem:[#allocation2 + $0x6] sm:$0xff] }
 0x1f0   :  { %1554 = vmatprep.mubr.f32.mxu1 %v4772_v2  ;;  %1673 = vmatprep.mubr.f32.mxu0 %v4772_v2  ;;  %v2101_v7 = vld [vmem:[#allocation5 + $0x4e8] sm:$0xff] }
 0x1f1   :  { %1759 = vmatpush1.msra.mxu1 %v1732_v55  ;;  %1934 = vmatpush1.msra.mxu0 %v1915_v11  ;;  %v1705_v55 = vld [vmem:[#allocation2 + $0xc] sm:$0xff]  ;;  %v2100_v11 = vld [vmem:[#allocation5 + $0x4e0] sm:$0xff] }
 0x1f2   :  { %1555 = vmatmul.mubr.f32.gmra.mxu1 %v1428_v9  ;;  %1674 = vmatmul.mubr.f32.gmra.mxu0 %v4231_v57  ;;  %v2099_v9 = vld [vmem:[#allocation5 + $0x4d8] sm:$0xff] }
 0x1f3   :  { %1760 = vmatprep.subr.mxu1 %v1731_v15  ;;  %1935 = vmatprep.subr.mxu0 %v1914_v27  ;;  %v1884_v15 = vld [vmem:[#allocation2 + $0xe] sm:$0xff] }
 0x1f4   :  { %1761 = vmatpush1.msra.mxu1 %v1730_v44  ;;  %1936 = vmatpush1.msra.mxu0 %v1913_v19  ;;  %v2098_v27 = vld [vmem:[#allocation5 + $0x4d0] sm:$0xff]  ;;  %v2097_v44 = vld [vmem:[#allocation5 + $0x4c8] sm:$0xff]  ;;  %v1706_v19 = vld [vmem:[#allocation2 + $0x14] sm:$0xff] }
 0x1f5   :  { %1762 = vmatprep.subr.mxu1 %v1729_v30  ;;  %1937 = vmatprep.subr.mxu0 %v1912_v14  ;;  %v2096_v30 = vld [vmem:[#allocation5 + $0x4c0] sm:$0xff]  ;;  %v2095_v14 = vld [vmem:[#allocation5 + $0x4b8] sm:$0xff] }
 0x1f6   :  { %1560 = vmatprep.mubr.f32.mxu1 %v4772_v2  ;;  %1679 = vmatprep.mubr.f32.mxu0 %v4772_v2 }
 0x1f7   :  { %1763 = vmatpush1.msra.mxu1 %v1728_v41  ;;  %1938 = vmatpush1.msra.mxu0 %v1911_v18  ;;  %v1885_v41 = vld [vmem:[#allocation2 + $0x16] sm:$0xff]  ;;  %v2094_v18 = vld [vmem:[#allocation5 + $0x4b0] sm:$0xff] }
 0x1f8   :  { %1561 = vmatmul.mubr.f32.gmra.mxu1 %v1429_v12  ;;  %1680 = vmatmul.mubr.f32.gmra.mxu0 %v4236_v24  ;;  %v1707_v12 = vld [vmem:[#allocation2 + $0x1c] sm:$0xff] }
 0x1f9   :  { %1939 = vmatprep.subr.mxu0 %v1910_v28  ;;  %1764 = vmatprep.subr.mxu1 %v1727_v25  ;;  %v2093_v28 = vld [vmem:[#allocation5 + $0x4a8] sm:$0xff]  ;;  %v2092_v25 = vld [vmem:[#allocation5 + $0x4a0] sm:$0xff] }
 0x1fa   :  { %1940 = vmatpush1.msra.mxu0 %v1909_v42  ;;  %1765 = vmatpush1.msra.mxu1 %v1726_v4  ;;  %v1886_v42 = vld [vmem:[#allocation2 + $0x1e] sm:$0xff]  ;;  %v2091_v4 = vld [vmem:[#allocation5 + $0x498] sm:$0xff] }
 0x1fb   :  { %1941 = vmatprep.subr.mxu0 %v1908_v20  ;;  %1566 = vmatprep.mubr.f32.mxu1 %v4772_v2  ;;  %v2090_v20 = vld [vmem:[#allocation5 + $0x490] sm:$0xff] }
 0x1fc   :  { %1685 = vmatprep.mubr.f32.mxu0 %v4772_v2  ;;  %1766 = vmatprep.subr.mxu1 %v1725_v52  ;;  %v1708_v52 = vld [vmem:[#allocation2 + $0x24] sm:$0xff] }
 0x1fd   :  { %1942 = vmatpush1.msra.mxu0 %v1907_v61  ;;  %1567 = vmatmul.mubr.f32.gmra.mxu1 %v1430_v35  ;;  %v2089_v61 = vld [vmem:[#allocation5 + $0x488] sm:$0xff]  ;;  %v2088_v35 = vld [vmem:[#allocation5 + $0x480] sm:$0xff] }
 0x1fe   :  { %1686 = vmatmul.mubr.f32.gmra.mxu0 %v4242_v3  ;;  %1767 = vmatpush1.msra.mxu1 %v1724_v23  ;;  %v1887_v23 = vld [vmem:[#allocation2 + $0x26] sm:$0xff] }
 0x1ff   :  { %1943 = vmatprep.subr.mxu0 %v1906_v5  ;;  %1768 = vmatprep.subr.mxu1 %v1723_v37  ;;  %v2087_v5 = vld [vmem:[#allocation5 + $0x478] sm:$0xff]  ;;  %v2086_v37 = vld [vmem:[#allocation5 + $0x470] sm:$0xff] }
 0x200   :  { %1944 = vmatpush1.msra.mxu0 %v1905_v17  ;;  %1769 = vmatpush1.msra.mxu1 %v1722_v53  ;;  %v1709_v17 = vld [vmem:[#allocation2 + $0x2c] sm:$0xff]  ;;  %v2085_v53 = vld [vmem:[#allocation5 + $0x468] sm:$0xff] }
 0x201   :  { %1945 = vmatprep.subr.mxu0 %v1904_v60  ;;  %1572 = vmatprep.mubr.f32.mxu1 %v4772_v2  ;;  %v2084_v60 = vld [vmem:[#allocation5 + $0x460] sm:$0xff] }
 0x202   :  { %1691 = vmatprep.mubr.f32.mxu0 %v4772_v2  ;;  %1770 = vmatprep.subr.mxu1 %v1721_v58  ;;  %v1888_v58 = vld [vmem:[#allocation2 + $0x2e] sm:$0xff] }
 0x203   :  { %1946 = vmatpush1.msra.mxu0 %v1903_v62  ;;  %1573 = vmatmul.mubr.f32.gmra.mxu1 %v1431_v51  ;;  %v2083_v62 = vld [vmem:[#allocation5 + $0x458] sm:$0xff]  ;;  %v2082_v51 = vld [vmem:[#allocation5 + $0x450] sm:$0xff] }
 0x204   :  { %1692 = vmatmul.mubr.f32.gmra.mxu0 %v4247_v45  ;;  %1771 = vmatpush1.msra.mxu1 %v1720_v40  ;;  %v1710_v40 = vld [vmem:[#allocation2 + $0x34] sm:$0xff] }
 0x205   :  { %1947 = vmatprep.subr.mxu0 %v1902_v16  ;;  %1772 = vmatprep.subr.mxu1 %v1719_v21  ;;  %v2081_v16 = vld [vmem:[#allocation5 + $0x448] sm:$0xff]  ;;  %v2080_v21 = vld [vmem:[#allocation5 + $0x440] sm:$0xff] }
 0x206   :  { %1948 = vmatpush1.msra.mxu0 %v1901_v13  ;;  %1578 = vmatprep.mubr.f32.mxu1 %v4772_v2  ;;  %v1889_v13 = vld [vmem:[#allocation2 + $0x36] sm:$0xff] }
 0x207   :  { %1949 = vmatprep.subr.mxu0 %v1900_v38  ;;  %1697 = vmatprep.mubr.f32.mxu0 %v4772_v2  ;;  %v2079_v38 = vld [vmem:[#allocation5 + $0x438] sm:$0xff] }
 0x208   :  { %1773 = vmatpush1.msra.mxu1 %v1718_v8  ;;  %1950 = vmatpush1.msra.mxu0 %v1899_v46  ;;  %v2078_v8 = vld [vmem:[#allocation5 + $0x430] sm:$0xff]  ;;  %v1711_v46 = vld [vmem:[#allocation2 + $0x3c] sm:$0xff] }
 0x209   :  { %1579 = vmatmul.mubr.f32.gmra.mxu1 %v1432_v49  ;;  %1698 = vmatmul.mubr.f32.gmra.mxu0 %v4252_v10  ;;  %v2077_v49 = vld [vmem:[#allocation5 + $0x428] sm:$0xff] }
 0x20a   :  { %1774 = vmatprep.subr.mxu1 %v1717_v6  ;;  %1951 = vmatprep.subr.mxu0 %v1898_v22  ;;  %v2076_v6 = vld [vmem:[#allocation5 + $0x420] sm:$0xff] }
 0x20b   :  { %1775 = vmatpush1.msra.mxu1 %v1716_v39  ;;  %1952 = vmatpush1.msra.mxu0 %v1897_v31  ;;  %v1890_v22 = vld [vmem:[#allocation2 + $0x3e] sm:$0xff]  ;;  %v2075_v39 = vld [vmem:[#allocation5 + $0x418] sm:$0xff]  ;;  %v2074_v31 = vld [vmem:[#allocation5 + $0x410] sm:$0xff] }
 0x20c   :  { %1776 = vmatprep.subr.mxu1 %v1715_v54  ;;  %1953 = vmatprep.subr.mxu0 %v1896_v43  ;;  %v1712_v54 = vld [vmem:[#allocation2 + $0x44] sm:$0xff] }
 0x20d   :  { %1777 = vmatpush1.msra.mxu1 %v1714_v1  ;;  %1810 = vmatprep.mubr.f32.mxu1 %v4772_v2  ;;  %v2073_v43 = vld [vmem:[#allocation5 + $0x408] sm:$0xff]  ;;  %v2072_v1 = vld [vmem:[#allocation5 + $0x400] sm:$0xff] }
 0x20e   :  { %1954 = vmatpush1.msra.mxu0 %v1895_v29  ;;  %1811 = vmatmul.mubr.f32.vlgmr.msra.gmra.mxu1 %v1704_v63  ;;  %v1891_v29 = vld [vmem:[#allocation2 + $0x46] sm:$0xff] }
 0x20f   :  { %1955 = vmatprep.subr.mxu0 %v1894_v48  ;;  %2104 = vmatprep.subr.mxu1 %v2103_v50 }
 0x210   :  { %1956 = vmatpush1.msra.mxu0 %v1893_v34  ;;  %1989 = vmatprep.mubr.f32.mxu0 %v4772_v2 }
 0x211   :  { %2105 = vmatpush1.msra.mxu1 %v2102_v33  ;;  %1990 = vmatmul.mubr.f32.vlgmr.msra.gmra.mxu0 %v1883_v59 }
 0x212   :  { %1816 = vmatprep.mubr.f32.mxu1 %v4772_v2  ;;  %2106 = vmatprep.subr.mxu1 %v2101_v7 }
 0x213   :  { %1817 = vmatmul.mubr.f32.gmra.mxu1 %v1705_v55  ;;  %1995 = vmatprep.mubr.f32.mxu0 %v4772_v2 }
 0x214   :  { %2107 = vmatpush1.msra.mxu1 %v2100_v11  ;;  %1822 = vmatprep.mubr.f32.mxu1 %v4772_v2 }
 0x215   :  { %2108 = vmatprep.subr.mxu1 %v2099_v9  ;;  %1996 = vmatmul.mubr.f32.gmra.mxu0 %v1884_v15 }
 0x216   :  { %2109 = vmatpush1.msra.mxu1 %v2098_v27  ;;  %2001 = vmatprep.mubr.f32.mxu0 %v4772_v2 }
 0x217   :  { %2110 = vmatprep.subr.mxu1 %v2097_v44  ;;  %1823 = vmatmul.mubr.f32.gmra.mxu1 %v1706_v19 }
 0x218   :  { %2111 = vmatpush1.msra.mxu1 %v2096_v30  ;;  %1828 = vmatprep.mubr.f32.mxu1 %v4772_v2 }
 0x219   :  { %2112 = vmatprep.subr.mxu1 %v2095_v14  ;;  %2002 = vmatmul.mubr.f32.gmra.mxu0 %v1885_v41 }
 0x21a   :  { %2113 = vmatpush1.msra.mxu1 %v2094_v18  ;;  %2007 = vmatprep.mubr.f32.mxu0 %v4772_v2 }
 0x21b   :  { %1829 = vmatmul.mubr.f32.gmra.mxu1 %v1707_v12  ;;  %2114 = vmatprep.subr.mxu1 %v2093_v28 }
 0x21c   :  { %2115 = vmatpush1.msra.mxu1 %v2092_v25  ;;  %1834 = vmatprep.mubr.f32.mxu1 %v4772_v2 }
 0x21d   :  { %2008 = vmatmul.mubr.f32.gmra.mxu0 %v1886_v42  ;;  %2116 = vmatprep.subr.mxu1 %v2091_v4 }
 0x21e   :  { %2117 = vmatpush1.msra.mxu1 %v2090_v20  ;;  %2013 = vmatprep.mubr.f32.mxu0 %v4772_v2 }
 0x21f   :  { %1835 = vmatmul.mubr.f32.gmra.mxu1 %v1708_v52  ;;  %2118 = vmatprep.subr.mxu1 %v2089_v61 }
 0x220   :  { %2119 = vmatpush1.msra.mxu1 %v2088_v35  ;;  %1840 = vmatprep.mubr.f32.mxu1 %v4772_v2 }
 0x221   :  { %2014 = vmatmul.mubr.f32.gmra.mxu0 %v1887_v23  ;;  %2120 = vmatprep.subr.mxu1 %v2087_v5 }
 0x222   :  { %2121 = vmatpush1.msra.mxu1 %v2086_v37  ;;  %2019 = vmatprep.mubr.f32.mxu0 %v4772_v2 }
 0x223   :  { %1841 = vmatmul.mubr.f32.gmra.mxu1 %v1709_v17  ;;  %2122 = vmatprep.subr.mxu1 %v2085_v53 }
 0x224   :  { %2123 = vmatpush1.msra.mxu1 %v2084_v60  ;;  %1846 = vmatprep.mubr.f32.mxu1 %v4772_v2 }
 0x225   :  { %2020 = vmatmul.mubr.f32.gmra.mxu0 %v1888_v58  ;;  %2124 = vmatprep.subr.mxu1 %v2083_v62 }
 0x226   :  { %2125 = vmatpush1.msra.mxu1 %v2082_v51  ;;  %2025 = vmatprep.mubr.f32.mxu0 %v4772_v2 }
 0x227   :  { %1847 = vmatmul.mubr.f32.gmra.mxu1 %v1710_v40  ;;  %2126 = vmatprep.subr.mxu1 %v2081_v16 }
 0x228   :  { %2127 = vmatpush1.msra.mxu1 %v2080_v21  ;;  %1852 = vmatprep.mubr.f32.mxu1 %v4772_v2 }
 0x229   :  { %2026 = vmatmul.mubr.f32.gmra.mxu0 %v1889_v13  ;;  %2128 = vmatprep.subr.mxu1 %v2079_v38 }
 0x22a   :  { %2129 = vmatpush1.msra.mxu1 %v2078_v8  ;;  %2031 = vmatprep.mubr.f32.mxu0 %v4772_v2 }
 0x22b   :  { %1853 = vmatmul.mubr.f32.gmra.mxu1 %v1711_v46  ;;  %2130 = vmatprep.subr.mxu1 %v2077_v49 }
 0x22c   :  { %1858 = vmatprep.mubr.f32.mxu1 %v4772_v2  ;;  %2131 = vmatpush1.msra.mxu1 %v2076_v6 }
 0x22d   :  { %2032 = vmatmul.mubr.f32.gmra.mxu0 %v1890_v22  ;;  %2132 = vmatprep.subr.mxu1 %v2075_v39 }
 0x22e   :  { %2037 = vmatprep.mubr.f32.mxu0 %v4772_v2  ;;  %2133 = vmatpush1.msra.mxu1 %v2074_v31 }
 0x22f   :  { %1859 = vmatmul.mubr.f32.gmra.mxu1 %v1712_v54  ;;  %2134 = vmatprep.subr.mxu1 %v2073_v43 }
 0x230   :  { %2135 = vmatpush1.msra.mxu1 %v2072_v1  ;;  %2168 = vmatprep.mubr.f32.mxu1 %v4772_v2 }
 0x231   :  { %2038 = vmatmul.mubr.f32.gmra.mxu0 %v1891_v29 }
 0x233   :  { %2169 = vmatmul.mubr.f32.vlgmr.msra.gmra.mxu1 %v4217_v36  ;;  %v2070_v36 = vld [vmem:[#allocation2 + $0x48] sm:$0xff] }
 0x234   :  { %2174 = vmatprep.mubr.f32.mxu1 %v4772_v2 }
 0x237   :  { %2175 = vmatmul.mubr.f32.gmra.mxu1 %v4223_v26 }
 0x238   :  { %2180 = vmatprep.mubr.f32.mxu1 %v4772_v2 }
 0x23b   :  { %2181 = vmatmul.mubr.f32.gmra.mxu1 %v4226_v0 }
 0x23c   :  { %2186 = vmatprep.mubr.f32.mxu1 %v4772_v2 }
 0x23f   :  { %2187 = vmatmul.mubr.f32.gmra.mxu1 %v4231_v57 }
 0x240   :  { %2192 = vmatprep.mubr.f32.mxu1 %v4772_v2 }
 0x243   :  { %2193 = vmatmul.mubr.f32.gmra.mxu1 %v4236_v24 }
 0x244   :  { %2198 = vmatprep.mubr.f32.mxu1 %v4772_v2 }
 0x247   :  { %2199 = vmatmul.mubr.f32.gmra.mxu1 %v4242_v3 }
 0x248   :  { %2204 = vmatprep.mubr.f32.mxu1 %v4772_v2 }
 0x24b   :  { %2205 = vmatmul.mubr.f32.gmra.mxu1 %v4247_v45 }
 0x24c   :  { %2210 = vmatprep.mubr.f32.mxu1 %v4772_v2 }
 0x24f   :  { %2211 = vmatmul.mubr.f32.gmra.mxu1 %v4252_v10 }
 0x250   :  { %2216 = vmatprep.mubr.f32.mxu1 %v4772_v2 }
 0x253   :  { %2217 = vmatmul.mubr.f32.gmra.mxu1 %v2070_v36 }
 0x29e   :  { %v1532_v26 = vpop.f32.mrf.mxu1  ;;  %v1651_v0 = vpop.f32.mrf.mxu0 }
 0x29f   :  { %v1652_v36 = vadd.f32 %v1651_v0, %v1532_v26 }
 0x2a0   :  { %v1534_v57 = vpop.f32.mrf.mxu1  ;;  %v1653_v24 = vpop.f32.mrf.mxu0 }
 0x2a2   :  { %v1538_v63 = vpop.f32.mrf.mxu1  ;;  %v1657_v48 = vpop.f32.mrf.mxu0 }
 0x2a3   :  { %v1658_v2 = vadd.f32 %v1657_v48, %v1538_v63  ;;  %v4780_v48 = vsub.s32 1, %v4110_v47 }
 0x2a4   :  { %v4291_v50 = vpop.f32.mrf.mxu1  ;;  %v4293_v3 = vpop.f32.mrf.mxu0 }
 0x2a6   :  { %v4295_v34 = vpop.f32.mrf.mxu1 }
 0x2a7   :  { %v4297_v45 = vpop.f32.mrf.mxu0 }
 0x2a8   :  { %v4299_v33 = vpop.f32.mrf.mxu1 }
 0x2a9   :  { %v4301_v10 = vpop.f32.mrf.mxu0 }
 0x2ac   :  { %v4303_v59 = vpop.f32.mrf.mxu1  ;;  %v4305_v7 = vpop.f32.mrf.mxu0 }
 0x2ae   :  { %v4307_v55 = vpop.f32.mrf.mxu1  ;;  %v4309_v11 = vpop.f32.mrf.mxu0 }
 0x2b2   :  { %v4311_v9 = vpop.f32.mrf.mxu1  ;;  %v4313_v15 = vpop.f32.mrf.mxu0 }
 0x2b4   :  { %v4315_v27 = vpop.f32.mrf.mxu1  ;;  %v4317_v44 = vpop.f32.mrf.mxu0 }
 0x2b8   :  { %v4319_v19 = vpop.f32.mrf.mxu1  ;;  %v4321_v30 = vpop.f32.mrf.mxu0 }
 0x2ba   :  { %v4323_v14 = vpop.f32.mrf.mxu1  ;;  %v4325_v41 = vpop.f32.mrf.mxu0 }
 0x2bd   :  { %v4327_v18 = vpop.f32.mrf.mxu1 }
 0x2be   :  { %v4329_v12 = vpop.f32.mrf.mxu0 }
 0x2bf   :  { %v4331_v28 = vpop.f32.mrf.mxu1 }
 0x2c0   :  { %v4333_v25 = vpop.f32.mrf.mxu0 }
 0x2c3   :  { %v4335_v42 = vpop.f32.mrf.mxu1 }
 0x2c4   :  { %v4337_v4 = vpop.f32.mrf.mxu0 }
 0x2c5   :  { %v4339_v20 = vpop.f32.mrf.mxu1 }
 0x2c6   :  { %4773 = vst [vmem:[#allocation142_spill] sm:$0xff] %v4339_v20  ;;  %v4341_v52 = vpop.f32.mrf.mxu0 }
 0x2c7   :  { %4774 = vst [vmem:[#allocation136_spill] sm:$0xff] %v4341_v52 }
 0x2c9   :  { %v1580_v61 = vpop.f32.mrf.mxu1  ;;  %v1699_v35 = vpop.f32.mrf.mxu0 }
 0x2cb   :  { %v1582_v23 = vpop.f32.mrf.mxu1  ;;  %v1701_v37 = vpop.f32.mrf.mxu0 }
 0x2cc   :  { %v1654_v23 = vadd.f32 %v1653_v24, %v1534_v57 }
 0x2ce   :  { %v1812_v5 = vpop.f32.mrf.mxu1 }
 0x2cf   :  { %v1865_v37 = vadd.f32 %v1812_v5, %v1652_v36 }
 0x2d0   :  { %v1814_v17 = vpop.f32.mrf.mxu1 }
 0x2d1   :  { %v1991_v53 = vpop.f32.mrf.mxu0  ;;  %v1866_v52 = vadd.f32 %v1814_v17, %v1654_v23  ;;  %v4378_v17 = vrot.slane %v2241_v56, %v4780_v48 }
 0x2d2   :  { %v2044_v26 = vadd.f32 %v1991_v53, %v1865_v37 }
 0x2d3   :  { %v1818_v60 = vpop.f32.mrf.mxu1  ;;  %v1993_v58 = vpop.f32.mrf.mxu0 }
 0x2d4   :  { %v1867_v0 = vadd.f32 %v1818_v60, %v1658_v2  ;;  %v2045_v24 = vadd.f32 %v1993_v58, %v1866_v52  ;;  %v1666_v2 = vadd.f32 %v4301_v10, %v4299_v33 }
 0x2d5   :  { %v1820_v62 = vpop.f32.mrf.mxu1  ;;  %v1997_v51 = vpop.f32.mrf.mxu0 }
 0x2d7   :  { %v1824_v40 = vpop.f32.mrf.mxu1  ;;  %v1999_v16 = vpop.f32.mrf.mxu0 }
 0x2d9   :  { %v1826_v21 = vpop.f32.mrf.mxu1  ;;  %v2003_v38 = vpop.f32.mrf.mxu0 }
 0x2da   :  { %v1870_v58 = vadd.f32 %v1826_v21, %v1666_v2 }
 0x2db   :  { %v1830_v13 = vpop.f32.mrf.mxu1  ;;  %v2005_v49 = vpop.f32.mrf.mxu0 }
 0x2dd   :  { %v1832_v8 = vpop.f32.mrf.mxu1  ;;  %v2009_v39 = vpop.f32.mrf.mxu0 }
 0x2df   :  { %v4343_v46 = vpop.f32.mrf.mxu1  ;;  %v4353_v43 = vpop.f32.mrf.mxu0 }
 0x2e1   :  { %v4345_v6 = vpop.f32.mrf.mxu1  ;;  %v4359_v61 = vpop.f32.mrf.mxu0 }
 0x2e3   :  { %v4347_v22 = vpop.f32.mrf.mxu1  ;;  %v4366_v20 = vpop.f32.mrf.mxu0 }
 0x2e5   :  { %v4349_v31 = vpop.f32.mrf.mxu1  ;;  %v4380_v36 = vpop.f32.mrf.mxu0 }
 0x2e7   :  { %v4351_v54 = vpop.f32.mrf.mxu1 }
 0x2e8   :  { %4775 = vst [vmem:[#allocation137_spill] sm:$0xff] %v4351_v54 }
 0x2e9   :  { %v4355_v1 = vpop.f32.mrf.mxu1 }
 0x2ea   :  { %4776 = vst [vmem:[#allocation143_spill] sm:$0xff] %v4355_v1  ;;  %v4779_v1 = vsub.s32 0, %v4110_v47 }
 0x2eb   :  { %v4357_v29 = vpop.f32.mrf.mxu1 }
 0x2ec   :  { %4777 = vst [vmem:[#allocation138_spill] sm:$0xff] %v4357_v29  ;;  %v1660_v29 = vadd.f32 %v4293_v3, %v4291_v50  ;;  %v2046_v3 = vadd.f32 %v1997_v51, %v1867_v0 }
 0x2ed   :  { %v4361_v35 = vpop.f32.mrf.mxu1 }
 0x2ee   :  { %4778 = vst [vmem:[#allocation139_spill] sm:$0xff] %v4361_v35  ;;  %v4372_v35 = vrot.slane %v2241_v56, %v4779_v1  ;;  %v1868_v5 = vadd.f32 %v1820_v62, %v1660_v29  ;;  %v1672_v62 = vadd.f32 %v4309_v11, %v4307_v55  ;;  %v2023_v29 = vpop.f32.mrf.mxu0  ;;  %v1678_v55 = vadd.f32 %v4317_v44, %v4315_v27 }
 0x2ef   :  { %v1860_v32 = vpop.f32.mrf.mxu1 }
 0x2f0   :  { %v1664_v32 = vadd.f32 %v4297_v45, %v4295_v34  ;;  %v1670_v34 = vadd.f32 %v4305_v7, %v4303_v59  ;;  %v2047_v52 = vadd.f32 %v1999_v16, %v1868_v5  ;;  %v2049_v7 = vadd.f32 %v2005_v49, %v1870_v58 }
 0x2f1   :  { %v1862_v54 = vpop.f32.mrf.mxu1  ;;  %v1682_v49 = vadd.f32 %v4321_v30, %v4319_v19 }
 0x2f2   :  { %v1869_v54 = vadd.f32 %v1824_v40, %v1664_v32  ;;  %v1871_v1 = vadd.f32 %v1830_v13, %v1670_v34  ;;  %v1676_v32 = vadd.f32 %v4313_v15, %v4311_v9  ;;  %v4396_v13 = vpop.f32.mrf.mxu0  ;;  %v1874_v15 = vadd.f32 %v4345_v6, %v1678_v55 }
 0x2f3   :  { %v2170_v57 = vpop.f32.mrf.mxu1  ;;  %v1688_v6 = vadd.f32 %v4329_v12, %v4327_v18  ;;  %v1690_v34 = vadd.f32 %v4333_v25, %v4331_v28 }
 0x2f4   :  { %v2223_v63 = vadd.f32 %v2170_v57, %v2044_v26  ;;  %v2048_v40 = vadd.f32 %v2003_v38, %v1869_v54  ;;  %v1872_v26 = vadd.f32 %v1832_v8, %v1672_v62  ;;  %v2050_v11 = vadd.f32 %v2009_v39, %v1871_v1  ;;  %v2029_v2 = vpop.f32.mrf.mxu0 }
 0x2f5   :  { %v2172_v50 = vpop.f32.mrf.mxu1  ;;  %v1684_v54 = vadd.f32 %v4325_v41, %v4323_v14 }
 0x2f6   :  { %v2253_v53 = vadd.f32 %v4372_v35, %v2223_v63  ;;  %v2224_v60 = vadd.f32 %v2172_v50, %v2045_v24  ;;  %v1873_v63 = vadd.f32 %v4343_v46, %v1676_v32  ;;  %v2051_v48 = vadd.f32 %v4353_v43, %v1872_v26  ;;  %v2033_v12 = vpop.f32.mrf.mxu0 }
 0x2f7   :  { %v2176_v45 = vpop.f32.mrf.mxu1  ;;  %v1875_v50 = vadd.f32 %v4347_v22, %v1682_v49  ;;  %v1876_v14 = vadd.f32 %v4349_v31, %v1684_v54  ;;  %v2053_v22 = vadd.f32 %v4366_v20, %v1874_v15 }
 0x2f8   :  { %v2254_v47 = vadd.f32 %v4378_v17, %v2224_v60  ;;  %v2225_v56 = vadd.f32 %v2176_v45, %v2046_v3  ;;  %v2271_v10 = vmax.f32 %v2253_v53, 0.0  ;;  %v2052_v45 = vadd.f32 %v4359_v61, %v1873_v63  ;;  %v2035_v55 = vpop.f32.mrf.mxu0  ;;  %v4786_v63 = vld [vmem:[#allocation139_spill] sm:$0xff] }
 0x2f9   :  { %v2178_v33 = vpop.f32.mrf.mxu1  ;;  %v2054_v18 = vadd.f32 %v4380_v36, %v1875_v50 }
 0x2fa   :  { %v2272_v51 = vmax.f32 %v2254_v47, 0.0  ;;  %v2255_v23 = vadd.f32 %v4372_v35, %v2225_v56  ;;  %v2226_v37 = vadd.f32 %v2178_v33, %v2047_v52  ;;  %v1694_v56 = vadd.f32 %v4337_v4, %v4335_v42  ;;  %v4781_v33 = vld [vmem:[#allocation137_spill] sm:$0xff] }
 0x2fb   :  { %v2182_v59 = vpop.f32.mrf.mxu1  ;;  %v1877_v20 = vadd.f32 %v4781_v33, %v1688_v6 }
 0x2fc   :  { %v2289_v16 = vmax.f32 %v2271_v10, %v2272_v51  ;;  %v2256_v21 = vadd.f32 %v4378_v17, %v2226_v37  ;;  %v2227_v0 = vadd.f32 %v2182_v59, %v2048_v40  ;;  %v2273_v57 = vmax.f32 %v2255_v23, 0.0  ;;  %v4782_v51 = vld [vmem:[#allocation143_spill] sm:$0xff] }
 0x2fd   :  { %v2184_v38 = vpop.f32.mrf.mxu1  ;;  %v2055_v10 = vadd.f32 %v2023_v29, %v1876_v14  ;;  %v1878_v23 = vadd.f32 %v4782_v51, %v1690_v34  ;;  %v2056_v49 = vadd.f32 %v4396_v13, %v1877_v20 }
 0x2fe   :  { %v2274_v24 = vmax.f32 %v2256_v21, 0.0  ;;  %v2257_v8 = vadd.f32 %v4372_v35, %v2227_v0  ;;  %v2228_v5 = vadd.f32 %v2184_v38, %v2049_v7  ;;  %v2308_v3 = vrot.slane %v2289_v16, 2  ;;  %v4783_v7 = vld [vmem:[#allocation142_spill] sm:$0xff] }
 0x2ff   :  { %v2188_v9 = vpop.f32.mrf.mxu1  ;;  %v4785_v0 = vld [vmem:[#allocation138_spill] sm:$0xff]  ;;  %v2057_v15 = vadd.f32 %v2029_v2, %v1878_v23 }
 0x300   :  { %v2290_v27 = vmax.f32 %v2273_v57, %v2274_v24  ;;  %v2258_v44 = vadd.f32 %v4378_v17, %v2228_v5  ;;  %v2229_v39 = vadd.f32 %v2188_v9, %v2050_v11  ;;  %v2275_v19 = vmax.f32 %v2257_v8, 0.0 }
 0x301   :  { %v2190_v30 = vpop.f32.mrf.mxu1  ;;  %v1879_v32 = vadd.f32 %v4785_v0, %v1694_v56 }
 0x302   :  { %v2309_v46 = vrot.slane %v2290_v27, 2  ;;  %v2276_v53 = vmax.f32 %v2258_v44, 0.0  ;;  %v2259_v43 = vadd.f32 %v4372_v35, %v2229_v39  ;;  %v2230_v60 = vadd.f32 %v2190_v30, %v2051_v48 }
 0x303   :  { %v2194_v41 = vpop.f32.mrf.mxu1 }
 0x304   :  { %v2310_v52 = vsel %vm2307_vm1, %v2308_v3, %v2309_v46  ;;  %v2291_v58 = vmax.f32 %v2275_v19, %v2276_v53  ;;  %v2260_v47 = vadd.f32 %v4378_v17, %v2230_v60  ;;  %v2231_v28 = vadd.f32 %v2194_v41, %v2052_v45 }
 0x305   :  { %v2333_v62 = vmax.f32 %v2289_v16, %v2310_v52  ;;  %v2196_v25 = vpop.f32.mrf.mxu1  ;;  %v2277_v40 = vmax.f32 %v2259_v43, 0.0  ;;  %v4784_v16 = vld [vmem:[#allocation136_spill] sm:$0xff] }
 0x306   :  { %v2311_v61 = vrot.slane %v2291_v58, 2  ;;  %v2278_v31 = vmax.f32 %v2260_v47, 0.0  ;;  %v2232_v1 = vadd.f32 %v2196_v25, %v2053_v22  ;;  %v2261_v37 = vadd.f32 %v4372_v35, %v2231_v28 }
 0x307   :  { %2341 = vst [vmem:[#allocation3] sm:$0xff] %v2333_v62  ;;  %v2200_v26 = vpop.f32.mrf.mxu1  ;;  %v1696_v21 = vadd.f32 %v4784_v16, %v4783_v7 }
 0x308   :  { %v2312_v42 = vsel %vm2307_vm1, %v2309_v46, %v2311_v61  ;;  %v2292_v4 = vmax.f32 %v2277_v40, %v2278_v31  ;;  %v2262_v36 = vadd.f32 %v4378_v17, %v2232_v1  ;;  %v2233_v59 = vadd.f32 %v2200_v26, %v2054_v18 }
 0x309   :  { %v2334_v11 = vmax.f32 %v2290_v27, %v2312_v42  ;;  %v2279_v29 = vmax.f32 %v2261_v37, 0.0  ;;  %v2202_v38 = vpop.f32.mrf.mxu1  ;;  %v1880_v48 = vadd.f32 %v4786_v63, %v1696_v21  ;;  %v2039_v27 = vpop.f32.mrf.mxu0  ;;  %v2058_v46 = vadd.f32 %v2033_v12, %v1879_v32 }
 0x30a   :  { %v2313_v57 = vrot.slane %v2292_v4, 2  ;;  %v2280_v24 = vmax.f32 %v2262_v36, 0.0  ;;  %v2263_v8 = vadd.f32 %v4372_v35, %v2233_v59  ;;  %v2234_v5 = vadd.f32 %v2202_v38, %v2055_v10 }
 0x30b   :  { %2342 = vst [vmem:[#allocation3 + $0x8] sm:$0xff] %v2334_v11  ;;  %v2206_v9 = vpop.f32.mrf.mxu1  ;;  %v2059_v34 = vadd.f32 %v2035_v55, %v1880_v48  ;;  %v2041_v52 = vpop.f32.mrf.mxu0 }
 0x30c   :  { %v2314_v44 = vsel %vm2307_vm1, %v2311_v61, %v2313_v57  ;;  %v2293_v39 = vmax.f32 %v2279_v29, %v2280_v24  ;;  %v2264_v54 = vadd.f32 %v4378_v17, %v2234_v5  ;;  %v2281_v3 = vmax.f32 %v2263_v8, 0.0 }
 0x30d   :  { %v2335_v50 = vmax.f32 %v2291_v58, %v2314_v44  ;;  %v2235_v19 = vadd.f32 %v2206_v9, %v2056_v49  ;;  %v2208_v30 = vpop.f32.mrf.mxu1 }
 0x30e   :  { %v2349_v53 = vld [vmem:[#allocation3] sm:$0x1]  ;;  %v2351_v43 = vld [vmem:[#allocation3 + $0x4] sm:$0x1]  ;;  %v2315_v60 = vrot.slane %v2293_v39, 2  ;;  %v2282_v13 = vmax.f32 %v2264_v54, 0.0  ;;  %v2236_v6 = vadd.f32 %v2208_v30, %v2057_v15 }
 0x30f   :  { %2350 = vst [vmem:[#allocation4] sm:$0x1] %v2349_v53  ;;  %2352 = vst [vmem:[#allocation4 + $0x8] sm:$0x1] %v2351_v43  ;;  %v2265_v2 = vadd.f32 %v4372_v35, %v2235_v19  ;;  %v2212_v45 = vpop.f32.mrf.mxu1 }
 0x310   :  { %2343 = vst [vmem:[#allocation3 + $0x10] sm:$0xff] %v2335_v50  ;;  %v2294_v14 = vmax.f32 %v2281_v3, %v2282_v13  ;;  %v2266_v41 = vadd.f32 %v4378_v17, %v2236_v6  ;;  %v2237_v22 = vadd.f32 %v2212_v45, %v2058_v46 }
 0x311   :  { %v2283_v58 = vmax.f32 %v2265_v2, 0.0  ;;  %v2214_v47 = vpop.f32.mrf.mxu1 }
 0x312   :  { %v2353_v56 = vld [vmem:[#allocation3 + $0x8] sm:$0x1]  ;;  %v2355_v18 = vld [vmem:[#allocation3 + $0xc] sm:$0x1]  ;;  %v2317_v12 = vrot.slane %v2294_v14, 2  ;;  %v2284_v62 = vmax.f32 %v2266_v41, 0.0  ;;  %v2267_v28 = vadd.f32 %v4372_v35, %v2237_v22  ;;  %v2238_v25 = vadd.f32 %v2214_v47, %v2059_v34 }
 0x313   :  { %2354 = vst [vmem:[#allocation4 + $0x10] sm:$0x1] %v2353_v56  ;;  %2356 = vst [vmem:[#allocation4 + $0x18] sm:$0x1] %v2355_v18  ;;  %v2218_v61 = vpop.f32.mrf.mxu1 }
 0x314   :  { %v2318_v40 = vsel %vm2307_vm1, %v2315_v60, %v2317_v12  ;;  %v2295_v31 = vmax.f32 %v2283_v58, %v2284_v62  ;;  %v2268_v1 = vadd.f32 %v4378_v17, %v2238_v25  ;;  %v2285_v23 = vmax.f32 %v2267_v28, 0.0 }
 0x315   :  { %v2337_v33 = vmax.f32 %v2293_v39, %v2318_v40  ;;  %v2220_v20 = vpop.f32.mrf.mxu1 }
 0x316   :  { %v2319_v51 = vrot.slane %v2295_v31, 2  ;;  %v2286_v37 = vmax.f32 %v2268_v1, 0.0 }
 0x317   :  { %v2357_v10 = vld [vmem:[#allocation3 + $0x10] sm:$0x1]  ;;  %2345 = vst [vmem:[#allocation3 + $0x20] sm:$0xff] %v2337_v33 }
 0x318   :  { %2358 = vst [vmem:[#allocation4 + $0x20] sm:$0x1] %v2357_v10  ;;  %v2320_v26 = vsel %vm2307_vm1, %v2317_v12, %v2319_v51  ;;  %v2296_v35 = vmax.f32 %v2285_v23, %v2286_v37 }
 0x319   :  { %v2338_v42 = vmax.f32 %v2294_v14, %v2320_v26 }
 0x31a   :  { %v2321_v4 = vrot.slane %v2296_v35, 2 }
 0x31b   :  { %2346 = vst [vmem:[#allocation3 + $0x28] sm:$0xff] %v2338_v42 }
 0x31c   :  { %v2322_v36 = vsel %vm2307_vm1, %v2319_v51, %v2321_v4 }
 0x31d   :  { %v2339_v59 = vmax.f32 %v2295_v31, %v2322_v36 }
 0x31e   :  { %v2359_v7 = vld [vmem:[#allocation3 + $0x20] sm:$0x1]  ;;  %v2361_v16 = vld [vmem:[#allocation3 + $0x24] sm:$0x1] }
 0x31f   :  { %2360 = vst [vmem:[#allocation4 + $0x1] sm:$0x1] %v2359_v7  ;;  %2362 = vst [vmem:[#allocation4 + $0x9] sm:$0x1] %v2361_v16 }
 0x320   :  { %2347 = vst [vmem:[#allocation3 + $0x30] sm:$0xff] %v2339_v59 }
 0x322   :  { %v2363_v17 = vld [vmem:[#allocation3 + $0x28] sm:$0x1]  ;;  %v2365_v21 = vld [vmem:[#allocation3 + $0x2c] sm:$0x1] }
 0x323   :  { %2364 = vst [vmem:[#allocation4 + $0x11] sm:$0x1] %v2363_v17  ;;  %2366 = vst [vmem:[#allocation4 + $0x19] sm:$0x1] %v2365_v21 }
 0x327   :  { %v2367_v0 = vld [vmem:[#allocation3 + $0x30] sm:$0x1] }
 0x328   :  { %2368 = vst [vmem:[#allocation4 + $0x21] sm:$0x1] %v2367_v0 }
 0x329   :  { %3207 = dma.done.wait [#allocation9 + $0x1], 10240 }
 0x32a   :  { %3208 = vsyncadd [#allocation9 + $0x1], 4294957056 }
 0x32b   :  { %3209 = dma.done.wait [#allocation9 + $0x2], 2048 }
 0x32c   :  { %3210 = vsyncadd [#allocation9 + $0x2], 4294965248  ;;  %v4787_v32 = vld [vmem:[#allocation55_spill] sm:$0xff] }
 0x32d   :  { %2931 = vmatprep.subr.mxu0 %v4787_v32  ;;  %v4788_v55 = vld [vmem:[#allocation87_spill] sm:$0xff] }
 0x32e   :  { %2966 = vmatprep.subr.mxu1 %v4788_v55 }
 0x32f   :  { %3211 = dma.done.wait [#allocation9 + $0x3], 2048 }
 0x330   :  { %3212 = vsyncadd [#allocation9 + $0x3], 4294965248  ;;  %v4789_v11 = vld [vmem:[#allocation39_spill] sm:$0xff]  ;;  %v4791_v38 = vld [vmem:[#allocation54_spill] sm:$0xff]  ;;  %vm3218_vm2 = vmmov 0  }
 0x331   :  { %2932 = vmatpush3.msra.mxu0 %v4789_v11  ;;  %v4790_v29 = vld [vmem:[#allocation71_spill] sm:$0xff]  ;;  %v4792_v57 = vld [vmem:[#allocation86_spill] sm:$0xff]  ;;  %v4795_v5 = vld [vmem:[#allocation53_spill] sm:$0xff] }
 0x332   :  { %2967 = vmatpush3.msra.mxu1 %v4790_v29  ;;  %2933 = vmatprep.subr.mxu0 %v4791_v38  ;;  %v4793_v24 = vld [vmem:[#allocation38_spill] sm:$0xff]  ;;  %v4796_v49 = vld [vmem:[#allocation85_spill] sm:$0xff]  ;;  %v4799_v9 = vld [vmem:[#allocation52_spill] sm:$0xff]  ;;  %v4850_v29 = vmov 0.0  }
 0x333   :  { %2968 = vmatprep.subr.mxu1 %v4792_v57  ;;  %2934 = vmatpush3.msra.mxu0 %v4793_v24  ;;  %v4794_v8 = vld [vmem:[#allocation70_spill] sm:$0xff]  ;;  %v4797_v63 = vld [vmem:[#allocation37_spill] sm:$0xff]  ;;  %v4800_v15 = vld [vmem:[#allocation84_spill] sm:$0xff] }
 0x334   :  { %2969 = vmatpush3.msra.mxu1 %v4794_v8  ;;  %2935 = vmatprep.subr.mxu0 %v4795_v5  ;;  %v4798_v48 = vld [vmem:[#allocation69_spill] sm:$0xff]  ;;  %v4801_v44 = vld [vmem:[#allocation36_spill] sm:$0xff]  ;;  %v4803_v54 = vld [vmem:[#allocation51_spill] sm:$0xff] }
 0x335   :  { %2970 = vmatprep.subr.mxu1 %v4796_v49  ;;  %2936 = vmatpush3.msra.mxu0 %v4797_v63  ;;  %v4802_v39 = vld [vmem:[#allocation68_spill] sm:$0xff]  ;;  %v4804_v27 = vld [vmem:[#allocation83_spill] sm:$0xff]  ;;  %v4807_v19 = vld [vmem:[#allocation50_spill] sm:$0xff] }
 0x336   :  { %2971 = vmatpush3.msra.mxu1 %v4798_v48  ;;  %2937 = vmatprep.subr.mxu0 %v4799_v9  ;;  %v4805_v50 = vld [vmem:[#allocation35_spill] sm:$0xff]  ;;  %v4808_v30 = vld [vmem:[#allocation82_spill] sm:$0xff]  ;;  %v4811_v43 = vld [vmem:[#allocation49_spill] sm:$0xff] }
 0x337   :  { %2972 = vmatprep.subr.mxu1 %v4800_v15  ;;  %2938 = vmatpush3.msra.mxu0 %v4801_v44  ;;  %v4806_v3 = vld [vmem:[#allocation67_spill] sm:$0xff]  ;;  %v4809_v46 = vld [vmem:[#allocation34_spill] sm:$0xff]  ;;  %v4812_v60 = vld [vmem:[#allocation81_spill] sm:$0xff] }
 0x338   :  { %2973 = vmatpush3.msra.mxu1 %v4802_v39  ;;  %2939 = vmatprep.subr.mxu0 %v4803_v54  ;;  %v4810_v53 = vld [vmem:[#allocation66_spill] sm:$0xff]  ;;  %v4813_v13 = vld [vmem:[#allocation33_spill] sm:$0xff]  ;;  %v4815_v34 = vld [vmem:[#allocation48_spill] sm:$0xff] }
 0x339   :  { %2974 = vmatprep.subr.mxu1 %v4804_v27  ;;  %2940 = vmatpush3.msra.mxu0 %v4805_v50  ;;  %v4814_v6 = vld [vmem:[#allocation65_spill] sm:$0xff]  ;;  %v4816_v2 = vld [vmem:[#allocation80_spill] sm:$0xff]  ;;  %v4819_v41 = vld [vmem:[#allocation47_spill] sm:$0xff] }
 0x33a   :  { %2975 = vmatpush3.msra.mxu1 %v4806_v3  ;;  %2941 = vmatprep.subr.mxu0 %v4807_v19  ;;  %v4817_v45 = vld [vmem:[#allocation32_spill] sm:$0xff]  ;;  %v4820_v22 = vld [vmem:[#allocation79_spill] sm:$0xff]  ;;  %v4823_v47 = vld [vmem:[#allocation46_spill] sm:$0xff] }
 0x33b   :  { %2976 = vmatprep.subr.mxu1 %v4808_v30  ;;  %2942 = vmatpush3.msra.mxu0 %v4809_v46  ;;  %v4818_v14 = vld [vmem:[#allocation64_spill] sm:$0xff]  ;;  %v4821_v52 = vld [vmem:[#allocation31_spill] sm:$0xff]  ;;  %v4824_v56 = vld [vmem:[#allocation78_spill] sm:$0xff] }
 0x33c   :  { %2977 = vmatpush3.msra.mxu1 %v4810_v53  ;;  %2943 = vmatprep.subr.mxu0 %v4811_v43  ;;  %v4822_v58 = vld [vmem:[#allocation63_spill] sm:$0xff]  ;;  %v4825_v18 = vld [vmem:[#allocation30_spill] sm:$0xff]  ;;  %v4827_v62 = vld [vmem:[#allocation45_spill] sm:$0xff] }
 0x33d   :  { %2978 = vmatprep.subr.mxu1 %v4812_v60  ;;  %2944 = vmatpush3.msra.mxu0 %v4813_v13  ;;  %v4826_v12 = vld [vmem:[#allocation62_spill] sm:$0xff]  ;;  %v4828_v28 = vld [vmem:[#allocation77_spill] sm:$0xff]  ;;  %v4831_v40 = vld [vmem:[#allocation44_spill] sm:$0xff] }
 0x33e   :  { %2979 = vmatpush3.msra.mxu1 %v4814_v6  ;;  %2945 = vmatprep.subr.mxu0 %v4815_v34  ;;  %v4829_v25 = vld [vmem:[#allocation29_spill] sm:$0xff]  ;;  %v4832_v31 = vld [vmem:[#allocation76_spill] sm:$0xff]  ;;  %v4835_v20 = vld [vmem:[#allocation43_spill] sm:$0xff] }
 0x33f   :  { %2980 = vmatprep.subr.mxu1 %v4816_v2  ;;  %2946 = vmatpush3.msra.mxu0 %v4817_v45  ;;  %v4830_v61 = vld [vmem:[#allocation61_spill] sm:$0xff]  ;;  %v4833_v1 = vld [vmem:[#allocation28_spill] sm:$0xff]  ;;  %v4836_v10 = vld [vmem:[#allocation75_spill] sm:$0xff] }
 0x340   :  { %2981 = vmatpush3.msra.mxu1 %v4818_v14  ;;  %2947 = vmatprep.subr.mxu0 %v4819_v41  ;;  %v4834_v33 = vld [vmem:[#allocation60_spill] sm:$0xff]  ;;  %v4837_v51 = vld [vmem:[#allocation27_spill] sm:$0xff]  ;;  %v4839_v37 = vld [vmem:[#allocation42_spill] sm:$0xff] }
 0x341   :  { %2982 = vmatprep.subr.mxu1 %v4820_v22  ;;  %2948 = vmatpush3.msra.mxu0 %v4821_v52  ;;  %v4838_v23 = vld [vmem:[#allocation59_spill] sm:$0xff]  ;;  %v4840_v26 = vld [vmem:[#allocation74_spill] sm:$0xff]  ;;  %v2378_v35 = vld [vmem:[#allocation4 + $0x8] sm:$0xff] }
 0x342   :  { %2983 = vmatpush3.msra.mxu1 %v4822_v58  ;;  %2949 = vmatprep.subr.mxu0 %v4823_v47  ;;  %v4841_v42 = vld [vmem:[#allocation26_spill] sm:$0xff]  ;;  %v4843_v36 = vld [vmem:[#allocation41_spill] sm:$0xff]  ;;  %v2377_v16 = vld [vmem:[#allocation4] sm:$0xff] }
 0x343   :  { %2984 = vmatprep.subr.mxu1 %v4824_v56  ;;  %2950 = vmatpush3.msra.mxu0 %v4825_v18  ;;  %v4842_v4 = vld [vmem:[#allocation58_spill] sm:$0xff]  ;;  %v4844_v59 = vld [vmem:[#allocation73_spill] sm:$0xff]  ;;  %v4846_v17 = vld [vmem:[#allocation40_spill] sm:$0xff] }
 0x344   :  { %2985 = vmatpush3.msra.mxu1 %v4826_v12  ;;  %2951 = vmatprep.subr.mxu0 %v4827_v62  ;;  %v4845_v7 = vld [vmem:[#allocation25_spill] sm:$0xff]  ;;  %v2380_v0 = vld [vmem:[#allocation4 + $0x18] sm:$0xff]  ;;  %v4848_v32 = vld [vmem:[#allocation24_spill] sm:$0xff] }
 0x345   :  { %2986 = vmatprep.subr.mxu1 %v4828_v28  ;;  %2952 = vmatpush3.msra.mxu0 %v4829_v25  ;;  %v4847_v21 = vld [vmem:[#allocation57_spill] sm:$0xff]  ;;  %v4849_v55 = vld [vmem:[#allocation72_spill] sm:$0xff]  ;;  %v4852_v57 = vld [vmem:[#allocation103_spill] sm:$0xff] }
 0x346   :  { %2987 = vmatpush3.msra.mxu1 %v4830_v61  ;;  %2953 = vmatprep.subr.mxu0 %v4831_v40  ;;  %v2379_v11 = vld [vmem:[#allocation4 + $0x10] sm:$0xff]  ;;  %v4851_v38 = vld [vmem:[#allocation56_spill] sm:$0xff]  ;;  %v4853_v24 = vld [vmem:[#allocation102_spill] sm:$0xff] }
 0x347   :  { %2988 = vmatprep.subr.mxu1 %v4832_v31  ;;  %2954 = vmatpush3.msra.mxu0 %v4833_v1  ;;  %v4854_v8 = vld [vmem:[#allocation119_spill] sm:$0xff]  ;;  %v4855_v5 = vld [vmem:[#allocation101_spill] sm:$0xff]  ;;  %v4856_v49 = vld [vmem:[#allocation118_spill] sm:$0xff] }
 0x348   :  { %2989 = vmatpush3.msra.mxu1 %v4834_v33  ;;  %2955 = vmatprep.subr.mxu0 %v4835_v20  ;;  %v4857_v63 = vld [vmem:[#allocation100_spill] sm:$0xff]  ;;  %v4858_v48 = vld [vmem:[#allocation117_spill] sm:$0xff]  ;;  %v4859_v9 = vld [vmem:[#allocation99_spill] sm:$0xff] }
 0x349   :  { %2990 = vmatprep.subr.mxu1 %v4836_v10  ;;  %2956 = vmatpush3.msra.mxu0 %v4837_v51  ;;  %v4860_v15 = vld [vmem:[#allocation116_spill] sm:$0xff]  ;;  %v4861_v44 = vld [vmem:[#allocation98_spill] sm:$0xff]  ;;  %v4862_v39 = vld [vmem:[#allocation115_spill] sm:$0xff] }
 0x34a   :  { %2991 = vmatpush3.msra.mxu1 %v4838_v23  ;;  %2957 = vmatprep.subr.mxu0 %v4839_v37  ;;  %v4863_v54 = vld [vmem:[#allocation97_spill] sm:$0xff]  ;;  %v4864_v27 = vld [vmem:[#allocation114_spill] sm:$0xff]  ;;  %v4865_v50 = vld [vmem:[#allocation96_spill] sm:$0xff] }
 0x34b   :  { %2992 = vmatprep.subr.mxu1 %v4840_v26  ;;  %2958 = vmatpush3.msra.mxu0 %v4841_v42  ;;  %v4866_v3 = vld [vmem:[#allocation113_spill] sm:$0xff]  ;;  %v4867_v19 = vld [vmem:[#allocation95_spill] sm:$0xff]  ;;  %v4868_v30 = vld [vmem:[#allocation112_spill] sm:$0xff] }
 0x34c   :  { %2993 = vmatpush3.msra.mxu1 %v4842_v4  ;;  %2959 = vmatprep.subr.mxu0 %v4843_v36  ;;  %v4869_v46 = vld [vmem:[#allocation94_spill] sm:$0xff]  ;;  %v4870_v53 = vld [vmem:[#allocation111_spill] sm:$0xff]  ;;  %v4871_v43 = vld [vmem:[#allocation93_spill] sm:$0xff] }
 0x34d   :  { %2994 = vmatprep.subr.mxu1 %v4844_v59  ;;  %2960 = vmatpush3.msra.mxu0 %v4845_v7  ;;  %v4872_v60 = vld [vmem:[#allocation110_spill] sm:$0xff]  ;;  %v4873_v13 = vld [vmem:[#allocation92_spill] sm:$0xff]  ;;  %v4874_v6 = vld [vmem:[#allocation109_spill] sm:$0xff] }
 0x34e   :  { %2533 = vmatprep.mubr.f32.mxu0 %v2378_v35  ;;  %2961 = vmatprep.subr.mxu0 %v4846_v17  ;;  %v4875_v34 = vld [vmem:[#allocation91_spill] sm:$0xff]  ;;  %v4876_v2 = vld [vmem:[#allocation108_spill] sm:$0xff]  ;;  %v4877_v45 = vld [vmem:[#allocation90_spill] sm:$0xff] }
 0x34f   :  { %2995 = vmatpush3.msra.mxu1 %v4847_v21  ;;  %2962 = vmatpush3.msra.mxu0 %v4848_v32  ;;  %v4878_v14 = vld [vmem:[#allocation107_spill] sm:$0xff]  ;;  %v4879_v41 = vld [vmem:[#allocation89_spill] sm:$0xff]  ;;  %v4880_v52 = vld [vmem:[#allocation106_spill] sm:$0xff] }
 0x350   :  { %2996 = vmatprep.subr.mxu1 %v4849_v55  ;;  %2534 = vmatmul.mubr.f32.vlgmr.msra.gmra.mxu0 %v2377_v16  ;;  %v2381_v22 = vld [vmem:[#allocation4 + $0x20] sm:$0xff]  ;;  %v4881_v58 = vld [vmem:[#allocation88_spill] sm:$0xff]  ;;  %v4882_v47 = vld [vmem:[#allocation105_spill] sm:$0xff] }
 0x351   :  { %3052 = vmatprep.subr.mxu0 %v4850_v29  ;;  %2997 = vmatpush3.msra.mxu1 %v4851_v38  ;;  %v4883_v56 = vld [vmem:[#allocation104_spill] sm:$0xff]  ;;  %v4884_v18 = vld [vmem:[#allocation135_spill] sm:$0xff]  ;;  %v4885_v12 = vld [vmem:[#allocation134_spill] sm:$0xff] }
 0x352   :  { %2603 = vmatprep.mubr.f32.mxu1 %v2380_v0  ;;  %3053 = vmatpush3.msra.mxu0 %v4852_v57  ;;  %v4886_v62 = vld [vmem:[#allocation133_spill] sm:$0xff]  ;;  %v4887_v28 = vld [vmem:[#allocation132_spill] sm:$0xff]  ;;  %v4888_v25 = vld [vmem:[#allocation131_spill] sm:$0xff] }
 0x353   :  { %2604 = vmatmul.mubr.f32.vlgmr.msra.gmra.mxu1 %v2379_v11  ;;  %3054 = vmatprep.subr.mxu0 %v4850_v29  ;;  %v4889_v61 = vld [vmem:[#allocation130_spill] sm:$0xff]  ;;  %v4890_v40 = vld [vmem:[#allocation129_spill] sm:$0xff]  ;;  %v4891_v31 = vld [vmem:[#allocation128_spill] sm:$0xff] }
 0x354   :  { %3084 = vmatprep.mubr.msk.f32.mxu0 %vm3218_vm2, %v4850_v29  ;;  %3055 = vmatpush3.msra.mxu0 %v4853_v24  ;;  %v4892_v1 = vld [vmem:[#allocation127_spill] sm:$0xff]  ;;  %v4893_v33 = vld [vmem:[#allocation126_spill] sm:$0xff]  ;;  %v4894_v20 = vld [vmem:[#allocation125_spill] sm:$0xff] }
 0x355   :  { %3087 = vmatprep.subr.mxu1 %v4850_v29  ;;  %3056 = vmatprep.subr.mxu0 %v4850_v29  ;;  %v4895_v10 = vld [vmem:[#allocation124_spill] sm:$0xff]  ;;  %v4896_v51 = vld [vmem:[#allocation123_spill] sm:$0xff]  ;;  %v4897_v23 = vld [vmem:[#allocation122_spill] sm:$0xff] }
 0x356   :  { %3088 = vmatpush3.msra.mxu1 %v4854_v8  ;;  %3057 = vmatpush3.msra.mxu0 %v4855_v5  ;;  %v4898_v37 = vld [vmem:[#allocation121_spill] sm:$0xff]  ;;  %v4899_v26 = vld [vmem:[#allocation120_spill] sm:$0xff] }
 0x357   :  { %3089 = vmatprep.subr.mxu1 %v4850_v29  ;;  %3058 = vmatprep.subr.mxu0 %v4850_v29  ;;  %v2924_v59 = vld [vmem:[%s4625_s6] ss:$0 sm:$0xff] }
 0x358   :  { %3090 = vmatpush3.msra.mxu1 %v4856_v49  ;;  %3059 = vmatpush3.msra.mxu0 %v4857_v63  ;;  %v2926_v5 = vld [vmem:[%s4629_s10] ss:$0 sm:$0xff] }
 0x359   :  { %3091 = vmatprep.subr.mxu1 %v4850_v29  ;;  %3060 = vmatprep.subr.mxu0 %v4850_v29 }
 0x35a   :  { %3092 = vmatpush3.msra.mxu1 %v4858_v48  ;;  %3061 = vmatpush3.msra.mxu0 %v4859_v9 }
 0x35b   :  { %3093 = vmatprep.subr.mxu1 %v4850_v29  ;;  %3062 = vmatprep.subr.mxu0 %v4850_v29 }
 0x35c   :  { %3094 = vmatpush3.msra.mxu1 %v4860_v15  ;;  %3063 = vmatpush3.msra.mxu0 %v4861_v44 }
 0x35d   :  { %3095 = vmatprep.subr.mxu1 %v4850_v29  ;;  %3064 = vmatprep.subr.mxu0 %v4850_v29 }
 0x35e   :  { %3096 = vmatpush3.msra.mxu1 %v4862_v39  ;;  %3065 = vmatpush3.msra.mxu0 %v4863_v54 }
 0x35f   :  { %3097 = vmatprep.subr.mxu1 %v4850_v29  ;;  %3066 = vmatprep.subr.mxu0 %v4850_v29 }
 0x360   :  { %3098 = vmatpush3.msra.mxu1 %v4864_v27  ;;  %3067 = vmatpush3.msra.mxu0 %v4865_v50 }
 0x361   :  { %3099 = vmatprep.subr.mxu1 %v4850_v29  ;;  %3068 = vmatprep.subr.mxu0 %v4850_v29 }
 0x362   :  { %3100 = vmatpush3.msra.mxu1 %v4866_v3  ;;  %3069 = vmatpush3.msra.mxu0 %v4867_v19 }
 0x363   :  { %3101 = vmatprep.subr.mxu1 %v4850_v29  ;;  %3070 = vmatprep.subr.mxu0 %v4850_v29 }
 0x364   :  { %3102 = vmatpush3.msra.mxu1 %v4868_v30  ;;  %3071 = vmatpush3.msra.mxu0 %v4869_v46 }
 0x365   :  { %3103 = vmatprep.subr.mxu1 %v4850_v29  ;;  %3072 = vmatprep.subr.mxu0 %v4850_v29 }
 0x366   :  { %3104 = vmatpush3.msra.mxu1 %v4870_v53  ;;  %3073 = vmatpush3.msra.mxu0 %v4871_v43 }
 0x367   :  { %3105 = vmatprep.subr.mxu1 %v4850_v29  ;;  %3074 = vmatprep.subr.mxu0 %v4850_v29 }
 0x368   :  { %3106 = vmatpush3.msra.mxu1 %v4872_v60  ;;  %3075 = vmatpush3.msra.mxu0 %v4873_v13 }
 0x369   :  { %3107 = vmatprep.subr.mxu1 %v4850_v29  ;;  %3076 = vmatprep.subr.mxu0 %v4850_v29 }
 0x36a   :  { %3108 = vmatpush3.msra.mxu1 %v4874_v6  ;;  %3077 = vmatpush3.msra.mxu0 %v4875_v34 }
 0x36b   :  { %3109 = vmatprep.subr.mxu1 %v4850_v29  ;;  %3078 = vmatprep.subr.mxu0 %v4850_v29 }
 0x36c   :  { %3110 = vmatpush3.msra.mxu1 %v4876_v2  ;;  %3079 = vmatpush3.msra.mxu0 %v4877_v45 }
 0x36d   :  { %3111 = vmatprep.subr.mxu1 %v4850_v29  ;;  %3080 = vmatprep.subr.mxu0 %v4850_v29 }
 0x36e   :  { %3112 = vmatpush3.msra.mxu1 %v4878_v14  ;;  %3081 = vmatpush3.msra.mxu0 %v4879_v41 }
 0x36f   :  { %3113 = vmatprep.subr.mxu1 %v4850_v29  ;;  %3082 = vmatprep.subr.mxu0 %v4850_v29 }
 0x370   :  { %3114 = vmatpush3.msra.mxu1 %v4880_v52  ;;  %3083 = vmatpush3.msra.mxu0 %v4881_v58 }
 0x371   :  { %3115 = vmatprep.subr.mxu1 %v4850_v29  ;;  %3085 = vmatmul.mubr.f32.vlgmr.msra.gmra.mxu0 %v2381_v22 }
 0x372   :  { %3116 = vmatpush3.msra.mxu1 %v4882_v47  ;;  %3119 = vmatprep.mubr.msk.f32.mxu1 %vm3218_vm2, %v4850_v29 }
 0x373   :  { %3117 = vmatprep.subr.mxu1 %v4850_v29  ;;  %3122 = vmatprep.subr.mxu0 %v4850_v29 }
 0x374   :  { %3118 = vmatpush3.msra.mxu1 %v4883_v56  ;;  %3123 = vmatpush3.msra.mxu0 %v4884_v18 }
 0x375   :  { %3154 = vmatprep.mubr.msk.f32.mxu0 %vm3218_vm2, %v4850_v29  ;;  %3124 = vmatprep.subr.mxu0 %v4850_v29 }
 0x376   :  { %3125 = vmatpush3.msra.mxu0 %v4885_v12 }
 0x377   :  { %3126 = vmatprep.subr.mxu0 %v4850_v29 }
 0x378   :  { %3127 = vmatpush3.msra.mxu0 %v4886_v62 }
 0x379   :  { %3128 = vmatprep.subr.mxu0 %v4850_v29 }
 0x37a   :  { %3129 = vmatpush3.msra.mxu0 %v4887_v28 }
 0x37b   :  { %3130 = vmatprep.subr.mxu0 %v4850_v29 }
 0x37c   :  { %3131 = vmatpush3.msra.mxu0 %v4888_v25 }
 0x37d   :  { %3132 = vmatprep.subr.mxu0 %v4850_v29 }
 0x37e   :  { %3133 = vmatpush3.msra.mxu0 %v4889_v61 }
 0x37f   :  { %3134 = vmatprep.subr.mxu0 %v4850_v29 }
 0x380   :  { %3135 = vmatpush3.msra.mxu0 %v4890_v40 }
 0x381   :  { %3136 = vmatprep.subr.mxu0 %v4850_v29 }
 0x382   :  { %3137 = vmatpush3.msra.mxu0 %v4891_v31 }
 0x383   :  { %3138 = vmatprep.subr.mxu0 %v4850_v29 }
 0x384   :  { %3139 = vmatpush3.msra.mxu0 %v4892_v1 }
 0x385   :  { %3140 = vmatprep.subr.mxu0 %v4850_v29 }
 0x386   :  { %3141 = vmatpush3.msra.mxu0 %v4893_v33 }
 0x387   :  { %3142 = vmatprep.subr.mxu0 %v4850_v29 }
 0x388   :  { %3143 = vmatpush3.msra.mxu0 %v4894_v20 }
 0x389   :  { %3144 = vmatprep.subr.mxu0 %v4850_v29 }
 0x38a   :  { %3145 = vmatpush3.msra.mxu0 %v4895_v10 }
 0x38b   :  { %3146 = vmatprep.subr.mxu0 %v4850_v29 }
 0x38c   :  { %3147 = vmatpush3.msra.mxu0 %v4896_v51 }
 0x38d   :  { %3148 = vmatprep.subr.mxu0 %v4850_v29 }
 0x38e   :  { %3149 = vmatpush3.msra.mxu0 %v4897_v23 }
 0x38f   :  { %3150 = vmatprep.subr.mxu0 %v4850_v29 }
 0x390   :  { %3151 = vmatpush3.msra.mxu0 %v4898_v37 }
 0x391   :  { %3152 = vmatprep.subr.mxu0 %v4850_v29  ;;  %v2925_v29 = vld [vmem:[%s4627_s8] ss:$0 sm:$0xff] }
 0x392   :  { %3153 = vmatpush3.msra.mxu0 %v4899_v26 }
 0x410   :  { %v2963_v35 = vpop.f32.mrf.mxu0 }
 0x412   :  { %v2964_v42 = vpop.f32.mrf.mxu0 }
 0x413   :  { %v2998_v4 = vpop.f32.mrf.mxu1  ;;  %v2965_v36 = vadd.f32 %v2964_v42, %v2963_v35 }
 0x415   :  { %v2999_v7 = vpop.f32.mrf.mxu1  ;;  %v2536_v16 = vadd.f32 %v2965_v36, %v2924_v59 }
 0x416   :  { %v3000_v17 = vadd.f32 %v2999_v7, %v2998_v4 }
 0x418   :  { %v2606_v21 = vadd.f32 %v3000_v17, %v2536_v16 }
 0x431   :  { %v2675_v0 = vpop.f32.mrf.mxu0 }
 0x432   :  { %v2676_v32 = vadd.f32 %v2675_v0, %v2606_v21 }
 0x433   :  { %v3086_v55 = vpop.f32.mrf.mxu0 }
 0x434   :  { %v2679_v11 = vmax.f32 %v2676_v32, 0.0 }
 0x436   :  { %3120 = vmatmul.mubr.f32.vlgmr.msra.gmra.mxu1 %v2679_v11 }
 0x4f6   :  { %v2769_v38 = vpop.f32.mrf.mxu1 }
 0x4f7   :  { %v2770_v57 = vadd.f32 %v2925_v29, %v2769_v38 }
 0x4f8   :  { %v3121_v24 = vpop.f32.mrf.mxu1 }
 0x4f9   :  { %v2773_v8 = vmax.f32 %v2770_v57, 0.0 }
 0x4fb   :  { %3155 = vmatmul.mubr.f32.vlgmr.msra.gmra.mxu0 %v2773_v8 }
 0x5bb   :  { %v2863_v49 = vpop.f32.mrf.mxu0 }
 0x5bc   :  { %v2864_v63 = vadd.f32 %v2926_v5, %v2863_v49 }
 0x5bd   :  { %v3156_v48 = vpop.f32.mrf.mxu0 }
 0x5be   :  { %2867 = vst [vmem:[%s4630_s11] sm:$0xff] %v2864_v63 }
 0x5bf   :  { %2872 = vsyncpa [#allocation11], 1 }
 0x5c0   :  { %2873 = vsyncmov [#allocation9] }
 0x5c3   :  { %s2874_s18 = vpop.sfrf %2873 }
 0x5c4   :  { %p2927_p10 = scmp.ne.s32.totalorder %s2874_s18, 0 }
 0x5c6   :  { %2878 = shalt.err (%p2927_p10)  }
 0x5c7   :  { %2880 = vsyncmov [#allocation9 + $0x1] }
 0x5ca   :  { %s2881_s8 = vpop.sfrf %2880 }
 0x5cb   :  { %p2928_p11 = scmp.ne.s32.totalorder %s2881_s8, 0 }
 0x5cd   :  { %2885 = shalt.err (%p2928_p11)  }
 0x5ce   :  { %2887 = vsyncmov [#allocation9 + $0x2] }
 0x5d1   :  { %s2888_s19 = vpop.sfrf %2887 }
 0x5d2   :  { %p2929_p12 = scmp.ne.s32.totalorder %s2888_s19, 0 }
 0x5d4   :  { %2892 = shalt.err (%p2929_p12)  }
 0x5d5   :  { %2894 = vsyncmov [#allocation9 + $0x3] }
 0x5d8   :  { %s2895_s10 = vpop.sfrf %2894 }
 0x5d9   :  { %p2930_p13 = scmp.ne.s32.totalorder %s2895_s10, 0 }
 0x5db   :  { %2899 = shalt.err (%p2930_p13)  }

</bundles_post_ra>
